<compile_context>
chip_gen: v6e
topology: v6e:2x2x1
jax: 0.10.0
libtpu: 0.0.40
codegen_flags: <defaults>
</compile_context>

<pallas_src>
import functools
import math

import jax
import jax.numpy as jnp
import numpy as np
from jax import lax
from jax.experimental import pallas as pl
from jax.experimental.pallas import tpu as pltpu


# ----------------------------- in-kernel math helpers -----------------------------
def _recip(x):
    # EUP approximate reciprocal + 2 Newton-Raphson refinements (~f32 accuracy; keeps the
    # divide off the VALU).  One NR step would also fit the 1e-4 tolerance if more slack needed.
    r = pl.reciprocal(x, approx=True)
    r = r * (2.0 - x * r)
    r = r * (2.0 - x * r)
    return r


def _erf(x):
    # Abramowitz & Stegun 7.1.26 rational approximation, |err| <= 1.5e-7.
    # TODO(synk): Mosaic has no native erf lowering; PyTorch's exact-erf GELU is approximated.
    a1, a2, a3, a4, a5 = 0.254829592, -0.284496736, 1.421413741, -1.453152027, 1.061405429
    p = 0.3275911
    ax = jnp.abs(x)
    t = _recip(1.0 + p * ax)
    poly = t * (a1 + t * (a2 + t * (a3 + t * (a4 + t * a5))))
    y = 1.0 - poly * jnp.exp(-ax * ax)
    return jnp.where(x < 0.0, -y, y)


def _gelu(x):
    # PyTorch nn.GELU() default: exact erf-based GELU.
    return 0.5 * x * (1.0 + _erf(x * (1.0 / math.sqrt(2.0))))


def _atan(x):
    # Cephes atanf-style: range reduction + degree-7 odd polynomial, |err| ~ few f32 ULP.
    # Divides go through the EUP approx reciprocal (+NR), not true VALU divides.
    # TODO(synk): Mosaic has no native arctan lowering; approximated here.
    ax = jnp.abs(x)
    big = ax > 2.414213562373095       # tan(3*pi/8)
    med = ax > 0.4142135623730951      # tan(pi/8)
    inv_big = _recip(jnp.maximum(ax, 1.0))   # clamp keeps the unselected (ax~0) branch finite
    inv_med = _recip(ax + 1.0)
    xr = jnp.where(big, -inv_big, jnp.where(med, (ax - 1.0) * inv_med, ax))
    off = jnp.where(big, jnp.float32(0.5 * math.pi),
                    jnp.where(med, jnp.float32(0.25 * math.pi), jnp.float32(0.0)))
    z = xr * xr
    poly = (((8.05374449538e-2 * z - 1.38776856032e-1) * z + 1.99777106478e-1) * z
            - 3.33329491539e-1)
    y = off + poly * z * xr + xr
    return jnp.where(x < 0.0, -y, y)


# ------------------------- pltpu.roll sign-convention probe -------------------------
@functools.lru_cache(maxsize=None)
def _roll_convention():
    """Pin pltpu.roll's shift-sign convention with a tiny probe kernel (runs once, cached)."""
    def probe(x_ref, o_ref):
        o_ref[...] = pltpu.roll(x_ref[...], 1, axis=1)

    try:
        x = lax.broadcasted_iota(jnp.float32, (8, 128), 1)
        y = np.asarray(
            pl.pallas_call(probe, out_shape=jax.ShapeDtypeStruct((8, 128), jnp.float32))(x))
    except Exception:
        return "concat"
    if y[0, 0] == 127.0 and y[0, 1] == 0.0:
        return "np"      # out[i] = in[(i - shift) % n]   (numpy.roll convention)
    if y[0, 0] == 1.0 and y[0, 127] == 0.0:
        return "neg"     # out[i] = in[(i + shift) % n]
    return "concat"      # unknown -> fall back to slice+concatenate rolls


# ----------------------------------- kernel -----------------------------------
def _joint_cnn_kernel(x_ref, w1_ref, b1_ref, w2_ref, b2_ref, o_ref, *, H, W, B, roll_mode):
    HW = H * W

    def lane_roll(a, k):
        # result[:, i] = a[:, (i + k) % HW]
        k = k % HW
        if k == 0:
            return a
        if roll_mode == "np":
            return pltpu.roll(a, HW - k, axis=1)
        if roll_mode == "neg":
            return pltpu.roll(a, k, axis=1)
        return jnp.concatenate([a[:, k:], a[:, :k]], axis=1)

    col = lax.broadcasted_iota(jnp.int32, (1, HW), 1)
    wcol = (col & (W - 1)) if (W & (W - 1)) == 0 else lax.rem(col, W)
    is_first_col = wcol == 0
    is_last_col = wcol == (W - 1)

    def conv3x3_circular(x, w_mat, b):
        """x: (Cin_pad, HW) f32; w_mat: (Cout_pad, 9*Cin_pad), cols ordered (kh,kw,ci); b: (Cout_pad,1)."""
        rolls = {}

        def roll(k):
            kk = k % HW
            if kk not in rolls:
                rolls[kk] = lane_roll(x, kk)
            return rolls[kk]

        taps = []
        for kh in range(3):
            for kw in range(3):
                dh, dw = kh - 1, kw - 1
                k = dh * W + dw
                main = roll(k)
                if dw == 0:
                    taps.append(main)
                elif dw > 0:
                    # flat roll by +1 crosses a row boundary at w == W-1: fix with roll by (k - W)
                    taps.append(jnp.where(is_last_col, roll(k - W), main))
                else:
                    # flat roll by -1 crosses a row boundary at w == 0: fix with roll by (k + W)
                    taps.append(jnp.where(is_first_col, roll(k + W), main))
        xim = jnp.concatenate(taps, axis=0)          # (9*Cin_pad, HW): sublane-aligned stack
        return jnp.dot(w_mat, xim, preferred_element_type=jnp.float32) + b   # one MXU matmul

    w1 = w1_ref[...]
    b1 = b1_ref[...]
    w2 = w2_ref[...]
    b2 = b2_ref[...]

    # Small static per-step image loop; weights stay resident in VMEM across it.
    # TODO(synk): for large per-step batches switch to lax.fori_loop(..., unroll=True) to bound
    # live ranges (and re-derive the VMEM budget on v7x's 64 MiB).
    for i in range(B):
        x = x_ref[i].astype(jnp.float32)
        h = _gelu(conv3x3_circular(x, w1, b1))                 # conv1 + GELU
        y = _gelu(conv3x3_circular(h, w2, b2))                 # conv2 + GELU
        y = _atan(y) * jnp.float32(0.5 / math.pi)              # arctan(x)/pi/2
        o_ref[i] = y.astype(o_ref.dtype)


# ----------------------------------- wrapper -----------------------------------
def _round_up(v, m):
    return (v + m - 1) // m * m


def joint_cnn_pallas(plaq, rect, w1, b1, w2, b2, *, n_plaq_out=4, images_per_step=None):
    """plaq: (N,Cp,H,W); rect: (N,Cr,H,W); w*: PyTorch OIHW; b*: (C,). Returns (plaq_coeffs, rect_coeffs)."""
    N, Cp, H, W = plaq.shape
    Cr = rect.shape[1]
    Cin = Cp + Cr
    Cmid = w1.shape[0]
    Cout = w2.shape[0]
    HW = H * W

    Cin_p = _round_up(Cin, 8)
    Cmid_p = _round_up(Cmid, 8)
    Cout_p = _round_up(Cout, 8)

    # Channel concat + lane-dense flatten + channel zero-pad: one-time XLA ops in the wrapper.
    x = jnp.concatenate([plaq, rect], axis=1).reshape(N, Cin, HW)
    if Cin_p != Cin:
        x = jnp.pad(x, ((0, 0), (0, Cin_p - Cin), (0, 0)))

    # OIHW -> (O, kh, kw, I) -> zero-pad O and I -> (O_pad, 9*I_pad); matches in-kernel tap order.
    def prep_w(w, in_pad, out_pad):
        o, i = w.shape[0], w.shape[1]
        wt = jnp.transpose(w, (0, 2, 3, 1))
        wt = jnp.pad(wt, ((0, out_pad - o), (0, 0), (0, 0), (0, in_pad - i)))
        return wt.reshape(out_pad, 9 * in_pad).astype(jnp.float32)

    def prep_b(b, out_pad):
        return jnp.pad(b, (0, out_pad - b.shape[0])).reshape(out_pad, 1).astype(jnp.float32)

    w1m, b1m = prep_w(w1, Cin_p, Cmid_p), prep_b(b1, Cmid_p)
    w2m, b2m = prep_w(w2, Cmid_p, Cout_p), prep_b(b2, Cout_p)

    # Pack several images per grid step: on single-TC v5e/v6e the grid is a serial loop and each
    # step costs ~0.35us of pipeline overhead, comparable to this kernel's per-image compute.
    B = images_per_step if images_per_step is not None else min(N, 8)
    N_pad = _round_up(N, B)
    if N_pad != N:
        x = jnp.pad(x, ((0, N_pad - N), (0, 0), (0, 0)))
    steps = N_pad // B

    roll_mode = _roll_convention()
    kernel = functools.partial(_joint_cnn_kernel, H=H, W=W, B=B, roll_mode=roll_mode)

    out = pl.pallas_call(
        kernel,
        out_shape=jax.ShapeDtypeStruct((N_pad, Cout_p, HW), plaq.dtype),
        grid_spec=pltpu.PrefetchScalarGridSpec(
            num_scalar_prefetch=0,
            grid=(steps,),
            in_specs=[
                pl.BlockSpec((B, Cin_p, HW), lambda s: (s, 0, 0)),
                pl.BlockSpec((Cmid_p, 9 * Cin_p), lambda s: (0, 0)),
                pl.BlockSpec((Cmid_p, 1), lambda s: (0, 0)),
                pl.BlockSpec((Cout_p, 9 * Cmid_p), lambda s: (0, 0)),
                pl.BlockSpec((Cout_p, 1), lambda s: (0, 0)),
            ],
            out_specs=pl.BlockSpec((B, Cout_p, HW), lambda s: (s, 0, 0)),
        ),
        # TODO(synk): on v7x (2 TCs/chip) consider pltpu.CORE_PARALLEL on the batch grid axis;
        # plain "parallel" is a measured no-op on single-TC v5e/v6e and harmless here.
        compiler_params=pltpu.CompilerParams(dimension_semantics=("parallel",)),
    )(x, w1m, b1m, w2m, b2m)

    out = out[:N, :Cout].reshape(N, Cout, H, W)   # drop batch/channel padding, split in wrapper
    return out[:, :n_plaq_out], out[:, n_plaq_out:]


# ------------------------------ pure-JAX reference ------------------------------
def _ref_conv_circ(x_nchw, w_oihw, b):
    xp = jnp.pad(x_nchw, ((0, 0), (0, 0), (1, 1), (1, 1)), mode="wrap")
    y = lax.conv_general_dilated(xp, w_oihw, window_strides=(1, 1), padding="VALID",
                                 dimension_numbers=("NCHW", "OIHW", "NCHW"))
    return y + b[None, :, None, None]


def joint_cnn_ref(plaq, rect, w1, b1, w2, b2, *, n_plaq_out=4):
    x = jnp.concatenate([plaq, rect], axis=1)
    x = jax.nn.gelu(_ref_conv_circ(x, w1, b1), approximate=False)
    x = jax.nn.gelu(_ref_conv_circ(x, w2, b2), approximate=False)
    x = jnp.arctan(x) / jnp.pi / 2
    return x[:, :n_plaq_out], x[:, n_plaq_out:]


if __name__ == "__main__":
    N, H, W = 2, 16, 16
    C_PLAQ_IN, C_RECT_IN = 2, 4
    C_PLAQ_OUT, C_RECT_OUT = 4, 8
    Cin = C_PLAQ_IN + C_RECT_IN        # 6
    Cmid = 2 * Cin                     # 12
    Cout = C_PLAQ_OUT + C_RECT_OUT     # 12

    key = jax.random.PRNGKey(0)
    kp, kr, kw1, kb1, kw2, kb2 = jax.random.split(key, 6)

    plaq = jax.random.normal(kp, (N, C_PLAQ_IN, H, W), jnp.float32)
    rect = jax.random.normal(kr, (N, C_RECT_IN, H, W), jnp.float32)

    # Deterministic Conv2d-style init (uniform in +/- 1/sqrt(fan_in)).
    bnd1 = 1.0 / math.sqrt(Cin * 9)
    w1 = jax.random.uniform(kw1, (Cmid, Cin, 3, 3), jnp.float32, -bnd1, bnd1)
    b1 = jax.random.uniform(kb1, (Cmid,), jnp.float32, -bnd1, bnd1)
    bnd2 = 1.0 / math.sqrt(Cmid * 9)
    w2 = jax.random.uniform(kw2, (Cout, Cmid, 3, 3), jnp.float32, -bnd2, bnd2)
    b2 = jax.random.uniform(kb2, (Cout,), jnp.float32, -bnd2, bnd2)

    out_p, out_r = joint_cnn_pallas(plaq, rect, w1, b1, w2, b2, n_plaq_out=C_PLAQ_OUT)
    out_p, out_r = jax.block_until_ready((out_p, out_r))
    ref_p, ref_r = joint_cnn_ref(plaq, rect, w1, b1, w2, b2, n_plaq_out=C_PLAQ_OUT)

    np.testing.assert_allclose(np.asarray(out_p), np.asarray(ref_p), atol=1e-4, rtol=1e-4)
    np.testing.assert_allclose(np.asarray(out_r), np.asarray(ref_r), atol=1e-4, rtol=1e-4)
    print("KERNEL_OK")
</pallas_src>

<mosaic_0001>
module attributes {stable_mosaic.version = 11 : i64} {
  func.func @probe(%arg0: memref<8x128xf32, #tpu.memory_space<vmem>>, %arg1: memref<8x128xf32, #tpu.memory_space<vmem>>) attributes {dimension_semantics = [], scalar_prefetch = 0 : i64, scratch_operands = 0 : i64, tpu.core_type = #tpu.core_type<tc>} {
    %c0 = arith.constant 0 : index
    %c0_0 = arith.constant 0 : index
    %0 = vector.load %arg0[%c0, %c0_0] : memref<8x128xf32, #tpu.memory_space<vmem>>, vector<8x128xf32>
    %c1_i32 = arith.constant 1 : i32
    %1 = tpu.dynamic_rotate %0 by %c1_i32 dim 1 : vector<8x128xf32>, i32 -> vector<8x128xf32>
    %c0_1 = arith.constant 0 : index
    %c0_2 = arith.constant 0 : index
    %2 = vector.load %arg1[%c0_1, %c0_2] : memref<8x128xf32, #tpu.memory_space<vmem>>, vector<8x128xf32>
    tpu.vector_store %arg1[%c0_1, %c0_2], %1 {strides = array<i32>} : memref<8x128xf32, #tpu.memory_space<vmem>>, vector<8x128xf32>,
    return
  }
}

module attributes {stable_mosaic.version = 11 : i64} {
  func.func @_joint_cnn_kernel(%arg0: i32, %arg1: memref<2x8x256xf32, #tpu.memory_space<vmem>>, %arg2: memref<16x72xf32, #tpu.memory_space<vmem>>, %arg3: memref<16x1xf32, #tpu.memory_space<vmem>>, %arg4: memref<16x144xf32, #tpu.memory_space<vmem>>, %arg5: memref<16x1xf32, #tpu.memory_space<vmem>>, %arg6: memref<2x16x256xf32, #tpu.memory_space<vmem>>) attributes {dimension_semantics = [#tpu.dimension_semantics<parallel>], iteration_bounds = array<i64: 1>, scalar_prefetch = 0 : i64, scratch_operands = 0 : i64, tpu.core_type = #tpu.core_type<tc>, window_params = [{transform_indices = @transform_0, window_bounds = array<i64: 2, 8, 256>}, {pipeline_mode = #tpu.pipeline_mode<synchronous>, transform_indices = @transform_1, window_bounds = array<i64: 16, 72>}, {pipeline_mode = #tpu.pipeline_mode<synchronous>, transform_indices = @transform_2, window_bounds = array<i64: 16, 1>}, {pipeline_mode = #tpu.pipeline_mode<synchronous>, transform_indices = @transform_3, window_bounds = array<i64: 16, 144>}, {pipeline_mode = #tpu.pipeline_mode<synchronous>, transform_indices = @transform_4, window_bounds = array<i64: 16, 1>}, {transform_indices = @transform_5, window_bounds = array<i64: 2, 16, 256>}]} {
    %0 = tpu.iota {dimensions = array<i32: 1>} : vector<1x256xi32>
    %c15_i32 = arith.constant 15 : i32
    %1 = vector.broadcast %c15_i32 : i32 to vector<1x256xi32>
    %2 = arith.andi %0, %1 : vector<1x256xi32>
    %c0_i32 = arith.constant 0 : i32
    %3 = vector.broadcast %c0_i32 : i32 to vector<1x256xi32>
    %4 = arith.cmpi eq, %2, %3 : vector<1x256xi32>
    %c15_i32_0 = arith.constant 15 : i32
    %5 = vector.broadcast %c15_i32_0 : i32 to vector<1x256xi32>
    %6 = arith.cmpi eq, %2, %5 : vector<1x256xi32>
    %c0 = arith.constant 0 : index
    %c0_1 = arith.constant 0 : index
    %7 = vector.load %arg2[%c0, %c0_1] : memref<16x72xf32, #tpu.memory_space<vmem>>, vector<16x72xf32>
    %c0_2 = arith.constant 0 : index
    %c0_3 = arith.constant 0 : index
    %8 = vector.load %arg3[%c0_2, %c0_3] : memref<16x1xf32, #tpu.memory_space<vmem>>, vector<16x1xf32>
    %c0_4 = arith.constant 0 : index
    %c0_5 = arith.constant 0 : index
    %9 = vector.load %arg4[%c0_4, %c0_5] : memref<16x144xf32, #tpu.memory_space<vmem>>, vector<16x144xf32>
    %c0_6 = arith.constant 0 : index
    %c0_7 = arith.constant 0 : index
    %10 = vector.load %arg5[%c0_6, %c0_7] : memref<16x1xf32, #tpu.memory_space<vmem>>, vector<16x1xf32>
    %c0_8 = arith.constant 0 : index
    %c0_9 = arith.constant 0 : index
    %c0_10 = arith.constant 0 : index
    %11 = vector.load %arg1[%c0_8, %c0_9, %c0_10] : memref<2x8x256xf32, #tpu.memory_space<vmem>>, vector<1x8x256xf32>
    %12 = vector.shape_cast %11 : vector<1x8x256xf32> to vector<8x256xf32>
    %13 = vector.extract_strided_slice %12 {offsets = [0, 239], sizes = [8, 17], strides = [1, 1]} : vector<8x256xf32> to vector<8x17xf32>
    %14 = vector.extract_strided_slice %12 {offsets = [0, 0], sizes = [8, 239], strides = [1, 1]} : vector<8x256xf32> to vector<8x239xf32>
    %15 = tpu.concatenate %13, %14 in 1 : vector<8x17xf32>, vector<8x239xf32> -> vector<8x256xf32>
    %16 = vector.extract_strided_slice %12 {offsets = [0, 255], sizes = [8, 1], strides = [1, 1]} : vector<8x256xf32> to vector<8x1xf32>
    %17 = vector.extract_strided_slice %12 {offsets = [0, 0], sizes = [8, 255], strides = [1, 1]} : vector<8x256xf32> to vector<8x255xf32>
    %18 = tpu.concatenate %16, %17 in 1 : vector<8x1xf32>, vector<8x255xf32> -> vector<8x256xf32>
    %19 = vector.shape_cast %4 : vector<1x256xi1> to vector<1x256xi1>
    %20 = vector.broadcast %19 : vector<1x256xi1> to vector<8x256xi1>
    %21 = arith.select %20, %18, %15 : vector<8x256xi1>, vector<8x256xf32>
    %22 = vector.extract_strided_slice %12 {offsets = [0, 240], sizes = [8, 16], strides = [1, 1]} : vector<8x256xf32> to vector<8x16xf32>
    %23 = vector.extract_strided_slice %12 {offsets = [0, 0], sizes = [8, 240], strides = [1, 1]} : vector<8x256xf32> to vector<8x240xf32>
    %24 = tpu.concatenate %22, %23 in 1 : vector<8x16xf32>, vector<8x240xf32> -> vector<8x256xf32>
    %25 = vector.extract_strided_slice %12 {offsets = [0, 241], sizes = [8, 15], strides = [1, 1]} : vector<8x256xf32> to vector<8x15xf32>
    %26 = vector.extract_strided_slice %12 {offsets = [0, 0], sizes = [8, 241], strides = [1, 1]} : vector<8x256xf32> to vector<8x241xf32>
    %27 = tpu.concatenate %25, %26 in 1 : vector<8x15xf32>, vector<8x241xf32> -> vector<8x256xf32>
    %28 = vector.extract_strided_slice %12 {offsets = [0, 225], sizes = [8, 31], strides = [1, 1]} : vector<8x256xf32> to vector<8x31xf32>
    %29 = vector.extract_strided_slice %12 {offsets = [0, 0], sizes = [8, 225], strides = [1, 1]} : vector<8x256xf32> to vector<8x225xf32>
    %30 = tpu.concatenate %28, %29 in 1 : vector<8x31xf32>, vector<8x225xf32> -> vector<8x256xf32>
    %31 = vector.shape_cast %6 : vector<1x256xi1> to vector<1x256xi1>
    %32 = vector.broadcast %31 : vector<1x256xi1> to vector<8x256xi1>
    %33 = arith.select %32, %30, %27 : vector<8x256xi1>, vector<8x256xf32>
    %34 = vector.extract_strided_slice %12 {offsets = [0, 15], sizes = [8, 241], strides = [1, 1]} : vector<8x256xf32> to vector<8x241xf32>
    %35 = vector.extract_strided_slice %12 {offsets = [0, 0], sizes = [8, 15], strides = [1, 1]} : vector<8x256xf32> to vector<8x15xf32>
    %36 = tpu.concatenate %34, %35 in 1 : vector<8x241xf32>, vector<8x15xf32> -> vector<8x256xf32>
    %37 = vector.shape_cast %4 : vector<1x256xi1> to vector<1x256xi1>
    %38 = vector.broadcast %37 : vector<1x256xi1> to vector<8x256xi1>
    %39 = arith.select %38, %36, %18 : vector<8x256xi1>, vector<8x256xf32>
    %40 = vector.extract_strided_slice %12 {offsets = [0, 1], sizes = [8, 255], strides = [1, 1]} : vector<8x256xf32> to vector<8x255xf32>
    %41 = vector.extract_strided_slice %12 {offsets = [0, 0], sizes = [8, 1], strides = [1, 1]} : vector<8x256xf32> to vector<8x1xf32>
    %42 = tpu.concatenate %40, %41 in 1 : vector<8x255xf32>, vector<8x1xf32> -> vector<8x256xf32>
    %43 = vector.shape_cast %6 : vector<1x256xi1> to vector<1x256xi1>
    %44 = vector.broadcast %43 : vector<1x256xi1> to vector<8x256xi1>
    %45 = arith.select %44, %27, %42 : vector<8x256xi1>, vector<8x256xf32>
    %46 = vector.extract_strided_slice %12 {offsets = [0, 31], sizes = [8, 225], strides = [1, 1]} : vector<8x256xf32> to vector<8x225xf32>
    %47 = vector.extract_strided_slice %12 {offsets = [0, 0], sizes = [8, 31], strides = [1, 1]} : vector<8x256xf32> to vector<8x31xf32>
    %48 = tpu.concatenate %46, %47 in 1 : vector<8x225xf32>, vector<8x31xf32> -> vector<8x256xf32>
    %49 = vector.shape_cast %4 : vector<1x256xi1> to vector<1x256xi1>
    %50 = vector.broadcast %49 : vector<1x256xi1> to vector<8x256xi1>
    %51 = arith.select %50, %48, %36 : vector<8x256xi1>, vector<8x256xf32>
    %52 = vector.extract_strided_slice %12 {offsets = [0, 16], sizes = [8, 240], strides = [1, 1]} : vector<8x256xf32> to vector<8x240xf32>
    %53 = vector.extract_strided_slice %12 {offsets = [0, 0], sizes = [8, 16], strides = [1, 1]} : vector<8x256xf32> to vector<8x16xf32>
    %54 = tpu.concatenate %52, %53 in 1 : vector<8x240xf32>, vector<8x16xf32> -> vector<8x256xf32>
    %55 = vector.extract_strided_slice %12 {offsets = [0, 17], sizes = [8, 239], strides = [1, 1]} : vector<8x256xf32> to vector<8x239xf32>
    %56 = vector.extract_strided_slice %12 {offsets = [0, 0], sizes = [8, 17], strides = [1, 1]} : vector<8x256xf32> to vector<8x17xf32>
    %57 = tpu.concatenate %55, %56 in 1 : vector<8x239xf32>, vector<8x17xf32> -> vector<8x256xf32>
    %58 = vector.shape_cast %6 : vector<1x256xi1> to vector<1x256xi1>
    %59 = vector.broadcast %58 : vector<1x256xi1> to vector<8x256xi1>
    %60 = arith.select %59, %42, %57 : vector<8x256xi1>, vector<8x256xf32>
    %61 = tpu.concatenate %21, %24, %33, %39, %12, %45, %51, %54, %60 in 0 : vector<8x256xf32>, vector<8x256xf32>, vector<8x256xf32>, vector<8x256xf32>, vector<8x256xf32>, vector<8x256xf32>, vector<8x256xf32>, vector<8x256xf32>, vector<8x256xf32> -> vector<72x256xf32>
    %cst = arith.constant dense<0.000000e+00> : vector<16x256xf32>
    %62 = tpu.matmul %7, %61, %cst {dimension_numbers = #tpu.dot_dimension_numbers<[1], [0], [0], [1], [0, 0, 1, 1], [], []>} : vector<16x72xf32>, vector<72x256xf32>, vector<16x256xf32> -> vector<16x256xf32>
    %63 = vector.broadcast %8 : vector<16x1xf32> to vector<16x256xf32>
    %64 = arith.addf %62, %63 : vector<16x256xf32>
    %cst_11 = arith.constant 5.000000e-01 : f32
    %65 = vector.broadcast %cst_11 : f32 to vector<16x256xf32>
    %66 = arith.mulf %65, %64 : vector<16x256xf32>
    %cst_12 = arith.constant 0.707106769 : f32
    %67 = vector.broadcast %cst_12 : f32 to vector<16x256xf32>
    %68 = arith.mulf %64, %67 : vector<16x256xf32>
    %69 = math.absf %68 : vector<16x256xf32>
    %cst_13 = arith.constant 0.327591091 : f32
    %70 = vector.broadcast %cst_13 : f32 to vector<16x256xf32>
    %71 = arith.mulf %70, %69 : vector<16x256xf32>
    %cst_14 = arith.constant 1.000000e+00 : f32
    %72 = vector.broadcast %cst_14 : f32 to vector<16x256xf32>
    %73 = arith.addf %72, %71 : vector<16x256xf32>
    %74 = tpu.reciprocal %73 {approx = true} : vector<16x256xf32> -> vector<16x256xf32>
    %75 = arith.mulf %73, %74 : vector<16x256xf32>
    %cst_15 = arith.constant 2.000000e+00 : f32
    %76 = vector.broadcast %cst_15 : f32 to vector<16x256xf32>
    %77 = arith.subf %76, %75 : vector<16x256xf32>
    %78 = arith.mulf %74, %77 : vector<16x256xf32>
    %79 = arith.mulf %73, %78 : vector<16x256xf32>
    %cst_16 = arith.constant 2.000000e+00 : f32
    %80 = vector.broadcast %cst_16 : f32 to vector<16x256xf32>
    %81 = arith.subf %80, %79 : vector<16x256xf32>
    %82 = arith.mulf %78, %81 : vector<16x256xf32>
    %cst_17 = arith.constant 1.06140542 : f32
    %83 = vector.broadcast %cst_17 : f32 to vector<16x256xf32>
    %84 = arith.mulf %82, %83 : vector<16x256xf32>
    %cst_18 = arith.constant -1.45315206 : f32
    %85 = vector.broadcast %cst_18 : f32 to vector<16x256xf32>
    %86 = arith.addf %85, %84 : vector<16x256xf32>
    %87 = arith.mulf %82, %86 : vector<16x256xf32>
    %cst_19 = arith.constant 1.42141378 : f32
    %88 = vector.broadcast %cst_19 : f32 to vector<16x256xf32>
    %89 = arith.addf %88, %87 : vector<16x256xf32>
    %90 = arith.mulf %82, %89 : vector<16x256xf32>
    %cst_20 = arith.constant -0.284496725 : f32
    %91 = vector.broadcast %cst_20 : f32 to vector<16x256xf32>
    %92 = arith.addf %91, %90 : vector<16x256xf32>
    %93 = arith.mulf %82, %92 : vector<16x256xf32>
    %cst_21 = arith.constant 0.254829586 : f32
    %94 = vector.broadcast %cst_21 : f32 to vector<16x256xf32>
    %95 = arith.addf %94, %93 : vector<16x256xf32>
    %96 = arith.mulf %82, %95 : vector<16x256xf32>
    %cst_22 = arith.constant 0.000000e+00 : f32
    %97 = vector.broadcast %cst_22 : f32 to vector<16x256xf32>
    %98 = arith.subf %97, %69 : vector<16x256xf32>
    %99 = arith.mulf %98, %69 : vector<16x256xf32>
    %100 = math.exp %99 : vector<16x256xf32>
    %101 = arith.mulf %96, %100 : vector<16x256xf32>
    %cst_23 = arith.constant 1.000000e+00 : f32
    %102 = vector.broadcast %cst_23 : f32 to vector<16x256xf32>
    %103 = arith.subf %102, %101 : vector<16x256xf32>
    %cst_24 = arith.constant 0.000000e+00 : f32
    %104 = vector.broadcast %cst_24 : f32 to vector<16x256xf32>
    %105 = arith.cmpf olt, %68, %104 : vector<16x256xf32>
    %cst_25 = arith.constant 0.000000e+00 : f32
    %106 = vector.broadcast %cst_25 : f32 to vector<16x256xf32>
    %107 = arith.subf %106, %103 : vector<16x256xf32>
    %108 = arith.select %105, %107, %103 : vector<16x256xi1>, vector<16x256xf32>
    %cst_26 = arith.constant 1.000000e+00 : f32
    %109 = vector.broadcast %cst_26 : f32 to vector<16x256xf32>
    %110 = arith.addf %109, %108 : vector<16x256xf32>
    %111 = arith.mulf %66, %110 : vector<16x256xf32>
    %112 = vector.extract_strided_slice %111 {offsets = [0, 239], sizes = [16, 17], strides = [1, 1]} : vector<16x256xf32> to vector<16x17xf32>
    %113 = vector.extract_strided_slice %111 {offsets = [0, 0], sizes = [16, 239], strides = [1, 1]} : vector<16x256xf32> to vector<16x239xf32>
    %114 = tpu.concatenate %112, %113 in 1 : vector<16x17xf32>, vector<16x239xf32> -> vector<16x256xf32>
    %115 = vector.extract_strided_slice %111 {offsets = [0, 255], sizes = [16, 1], strides = [1, 1]} : vector<16x256xf32> to vector<16x1xf32>
    %116 = vector.extract_strided_slice %111 {offsets = [0, 0], sizes = [16, 255], strides = [1, 1]} : vector<16x256xf32> to vector<16x255xf32>
    %117 = tpu.concatenate %115, %116 in 1 : vector<16x1xf32>, vector<16x255xf32> -> vector<16x256xf32>
    %118 = vector.shape_cast %4 : vector<1x256xi1> to vector<1x256xi1>
    %119 = vector.broadcast %118 : vector<1x256xi1> to vector<16x256xi1>
    %120 = arith.select %119, %117, %114 : vector<16x256xi1>, vector<16x256xf32>
    %121 = vector.extract_strided_slice %111 {offsets = [0, 240], sizes = [16, 16], strides = [1, 1]} : vector<16x256xf32> to vector<16x16xf32>
    %122 = vector.extract_strided_slice %111 {offsets = [0, 0], sizes = [16, 240], strides = [1, 1]} : vector<16x256xf32> to vector<16x240xf32>
    %123 = tpu.concatenate %121, %122 in 1 : vector<16x16xf32>, vector<16x240xf32> -> vector<16x256xf32>
    %124 = vector.extract_strided_slice %111 {offsets = [0, 241], sizes = [16, 15], strides = [1, 1]} : vector<16x256xf32> to vector<16x15xf32>
    %125 = vector.extract_strided_slice %111 {offsets = [0, 0], sizes = [16, 241], strides = [1, 1]} : vector<16x256xf32> to vector<16x241xf32>
    %126 = tpu.concatenate %124, %125 in 1 : vector<16x15xf32>, vector<16x241xf32> -> vector<16x256xf32>
    %127 = vector.extract_strided_slice %111 {offsets = [0, 225], sizes = [16, 31], strides = [1, 1]} : vector<16x256xf32> to vector<16x31xf32>
    %128 = vector.extract_strided_slice %111 {offsets = [0, 0], sizes = [16, 225], strides = [1, 1]} : vector<16x256xf32> to vector<16x225xf32>
    %129 = tpu.concatenate %127, %128 in 1 : vector<16x31xf32>, vector<16x225xf32> -> vector<16x256xf32>
    %130 = vector.shape_cast %6 : vector<1x256xi1> to vector<1x256xi1>
    %131 = vector.broadcast %130 : vector<1x256xi1> to vector<16x256xi1>
    %132 = arith.select %131, %129, %126 : vector<16x256xi1>, vector<16x256xf32>
    %133 = vector.extract_strided_slice %111 {offsets = [0, 15], sizes = [16, 241], strides = [1, 1]} : vector<16x256xf32> to vector<16x241xf32>
    %134 = vector.extract_strided_slice %111 {offsets = [0, 0], sizes = [16, 15], strides = [1, 1]} : vector<16x256xf32> to vector<16x15xf32>
    %135 = tpu.concatenate %133, %134 in 1 : vector<16x241xf32>, vector<16x15xf32> -> vector<16x256xf32>
    %136 = vector.shape_cast %4 : vector<1x256xi1> to vector<1x256xi1>
    %137 = vector.broadcast %136 : vector<1x256xi1> to vector<16x256xi1>
    %138 = arith.select %137, %135, %117 : vector<16x256xi1>, vector<16x256xf32>
    %139 = vector.extract_strided_slice %111 {offsets = [0, 1], sizes = [16, 255], strides = [1, 1]} : vector<16x256xf32> to vector<16x255xf32>
    %140 = vector.extract_strided_slice %111 {offsets = [0, 0], sizes = [16, 1], strides = [1, 1]} : vector<16x256xf32> to vector<16x1xf32>
    %141 = tpu.concatenate %139, %140 in 1 : vector<16x255xf32>, vector<16x1xf32> -> vector<16x256xf32>
    %142 = vector.shape_cast %6 : vector<1x256xi1> to vector<1x256xi1>
    %143 = vector.broadcast %142 : vector<1x256xi1> to vector<16x256xi1>
    %144 = arith.select %143, %126, %141 : vector<16x256xi1>, vector<16x256xf32>
    %145 = vector.extract_strided_slice %111 {offsets = [0, 31], sizes = [16, 225], strides = [1, 1]} : vector<16x256xf32> to vector<16x225xf32>
    %146 = vector.extract_strided_slice %111 {offsets = [0, 0], sizes = [16, 31], strides = [1, 1]} : vector<16x256xf32> to vector<16x31xf32>
    %147 = tpu.concatenate %145, %146 in 1 : vector<16x225xf32>, vector<16x31xf32> -> vector<16x256xf32>
    %148 = vector.shape_cast %4 : vector<1x256xi1> to vector<1x256xi1>
    %149 = vector.broadcast %148 : vector<1x256xi1> to vector<16x256xi1>
    %150 = arith.select %149, %147, %135 : vector<16x256xi1>, vector<16x256xf32>
    %151 = vector.extract_strided_slice %111 {offsets = [0, 16], sizes = [16, 240], strides = [1, 1]} : vector<16x256xf32> to vector<16x240xf32>
    %152 = vector.extract_strided_slice %111 {offsets = [0, 0], sizes = [16, 16], strides = [1, 1]} : vector<16x256xf32> to vector<16x16xf32>
    %153 = tpu.concatenate %151, %152 in 1 : vector<16x240xf32>, vector<16x16xf32> -> vector<16x256xf32>
    %154 = vector.extract_strided_slice %111 {offsets = [0, 17], sizes = [16, 239], strides = [1, 1]} : vector<16x256xf32> to vector<16x239xf32>
    %155 = vector.extract_strided_slice %111 {offsets = [0, 0], sizes = [16, 17], strides = [1, 1]} : vector<16x256xf32> to vector<16x17xf32>
    %156 = tpu.concatenate %154, %155 in 1 : vector<16x239xf32>, vector<16x17xf32> -> vector<16x256xf32>
    %157 = vector.shape_cast %6 : vector<1x256xi1> to vector<1x256xi1>
    %158 = vector.broadcast %157 : vector<1x256xi1> to vector<16x256xi1>
    %159 = arith.select %158, %141, %156 : vector<16x256xi1>, vector<16x256xf32>
    %160 = tpu.concatenate %120, %123, %132, %138, %111, %144, %150, %153, %159 in 0 : vector<16x256xf32>, vector<16x256xf32>, vector<16x256xf32>, vector<16x256xf32>, vector<16x256xf32>, vector<16x256xf32>, vector<16x256xf32>, vector<16x256xf32>, vector<16x256xf32> -> vector<144x256xf32>
    %cst_27 = arith.constant dense<0.000000e+00> : vector<16x256xf32>
    %161 = tpu.matmul %9, %160, %cst_27 {dimension_numbers = #tpu.dot_dimension_numbers<[1], [0], [0], [1], [0, 0, 1, 1], [], []>} : vector<16x144xf32>, vector<144x256xf32>, vector<16x256xf32> -> vector<16x256xf32>
    %162 = vector.broadcast %10 : vector<16x1xf32> to vector<16x256xf32>
    %163 = arith.addf %161, %162 : vector<16x256xf32>
    %cst_28 = arith.constant 5.000000e-01 : f32
    %164 = vector.broadcast %cst_28 : f32 to vector<16x256xf32>
    %165 = arith.mulf %164, %163 : vector<16x256xf32>
    %cst_29 = arith.constant 0.707106769 : f32
    %166 = vector.broadcast %cst_29 : f32 to vector<16x256xf32>
    %167 = arith.mulf %163, %166 : vector<16x256xf32>
    %168 = math.absf %167 : vector<16x256xf32>
    %cst_30 = arith.constant 0.327591091 : f32
    %169 = vector.broadcast %cst_30 : f32 to vector<16x256xf32>
    %170 = arith.mulf %169, %168 : vector<16x256xf32>
    %cst_31 = arith.constant 1.000000e+00 : f32
    %171 = vector.broadcast %cst_31 : f32 to vector<16x256xf32>
    %172 = arith.addf %171, %170 : vector<16x256xf32>
    %173 = tpu.reciprocal %172 {approx = true} : vector<16x256xf32> -> vector<16x256xf32>
    %174 = arith.mulf %172, %173 : vector<16x256xf32>
    %cst_32 = arith.constant 2.000000e+00 : f32
    %175 = vector.broadcast %cst_32 : f32 to vector<16x256xf32>
    %176 = arith.subf %175, %174 : vector<16x256xf32>
    %177 = arith.mulf %173, %176 : vector<16x256xf32>
    %178 = arith.mulf %172, %177 : vector<16x256xf32>
    %cst_33 = arith.constant 2.000000e+00 : f32
    %179 = vector.broadcast %cst_33 : f32 to vector<16x256xf32>
    %180 = arith.subf %179, %178 : vector<16x256xf32>
    %181 = arith.mulf %177, %180 : vector<16x256xf32>
    %cst_34 = arith.constant 1.06140542 : f32
    %182 = vector.broadcast %cst_34 : f32 to vector<16x256xf32>
    %183 = arith.mulf %181, %182 : vector<16x256xf32>
    %cst_35 = arith.constant -1.45315206 : f32
    %184 = vector.broadcast %cst_35 : f32 to vector<16x256xf32>
    %185 = arith.addf %184, %183 : vector<16x256xf32>
    %186 = arith.mulf %181, %185 : vector<16x256xf32>
    %cst_36 = arith.constant 1.42141378 : f32
    %187 = vector.broadcast %cst_36 : f32 to vector<16x256xf32>
    %188 = arith.addf %187, %186 : vector<16x256xf32>
    %189 = arith.mulf %181, %188 : vector<16x256xf32>
    %cst_37 = arith.constant -0.284496725 : f32
    %190 = vector.broadcast %cst_37 : f32 to vector<16x256xf32>
    %191 = arith.addf %190, %189 : vector<16x256xf32>
    %192 = arith.mulf %181, %191 : vector<16x256xf32>
    %cst_38 = arith.constant 0.254829586 : f32
    %193 = vector.broadcast %cst_38 : f32 to vector<16x256xf32>
    %194 = arith.addf %193, %192 : vector<16x256xf32>
    %195 = arith.mulf %181, %194 : vector<16x256xf32>
    %cst_39 = arith.constant 0.000000e+00 : f32
    %196 = vector.broadcast %cst_39 : f32 to vector<16x256xf32>
    %197 = arith.subf %196, %168 : vector<16x256xf32>
    %198 = arith.mulf %197, %168 : vector<16x256xf32>
    %199 = math.exp %198 : vector<16x256xf32>
    %200 = arith.mulf %195, %199 : vector<16x256xf32>
    %cst_40 = arith.constant 1.000000e+00 : f32
    %201 = vector.broadcast %cst_40 : f32 to vector<16x256xf32>
    %202 = arith.subf %201, %200 : vector<16x256xf32>
    %cst_41 = arith.constant 0.000000e+00 : f32
    %203 = vector.broadcast %cst_41 : f32 to vector<16x256xf32>
    %204 = arith.cmpf olt, %167, %203 : vector<16x256xf32>
    %cst_42 = arith.constant 0.000000e+00 : f32
    %205 = vector.broadcast %cst_42 : f32 to vector<16x256xf32>
    %206 = arith.subf %205, %202 : vector<16x256xf32>
    %207 = arith.select %204, %206, %202 : vector<16x256xi1>, vector<16x256xf32>
    %cst_43 = arith.constant 1.000000e+00 : f32
    %208 = vector.broadcast %cst_43 : f32 to vector<16x256xf32>
    %209 = arith.addf %208, %207 : vector<16x256xf32>
    %210 = arith.mulf %165, %209 : vector<16x256xf32>
    %211 = math.absf %210 : vector<16x256xf32>
    %cst_44 = arith.constant 2.41421366 : f32
    %212 = vector.broadcast %cst_44 : f32 to vector<16x256xf32>
    %213 = arith.cmpf ogt, %211, %212 : vector<16x256xf32>
    %cst_45 = arith.constant 0.414213568 : f32
    %214 = vector.broadcast %cst_45 : f32 to vector<16x256xf32>
    %215 = arith.cmpf ogt, %211, %214 : vector<16x256xf32>
    %cst_46 = arith.constant 1.000000e+00 : f32
    %216 = vector.broadcast %cst_46 : f32 to vector<16x256xf32>
    %217 = arith.maximumf %211, %216 : vector<16x256xf32>
    %218 = tpu.reciprocal %217 {approx = true} : vector<16x256xf32> -> vector<16x256xf32>
    %219 = arith.mulf %217, %218 : vector<16x256xf32>
    %cst_47 = arith.constant 2.000000e+00 : f32
    %220 = vector.broadcast %cst_47 : f32 to vector<16x256xf32>
    %221 = arith.subf %220, %219 : vector<16x256xf32>
    %222 = arith.mulf %218, %221 : vector<16x256xf32>
    %223 = arith.mulf %217, %222 : vector<16x256xf32>
    %cst_48 = arith.constant 2.000000e+00 : f32
    %224 = vector.broadcast %cst_48 : f32 to vector<16x256xf32>
    %225 = arith.subf %224, %223 : vector<16x256xf32>
    %226 = arith.mulf %222, %225 : vector<16x256xf32>
    %cst_49 = arith.constant 1.000000e+00 : f32
    %227 = vector.broadcast %cst_49 : f32 to vector<16x256xf32>
    %228 = arith.addf %211, %227 : vector<16x256xf32>
    %229 = tpu.reciprocal %228 {approx = true} : vector<16x256xf32> -> vector<16x256xf32>
    %230 = arith.mulf %228, %229 : vector<16x256xf32>
    %cst_50 = arith.constant 2.000000e+00 : f32
    %231 = vector.broadcast %cst_50 : f32 to vector<16x256xf32>
    %232 = arith.subf %231, %230 : vector<16x256xf32>
    %233 = arith.mulf %229, %232 : vector<16x256xf32>
    %234 = arith.mulf %228, %233 : vector<16x256xf32>
    %cst_51 = arith.constant 2.000000e+00 : f32
    %235 = vector.broadcast %cst_51 : f32 to vector<16x256xf32>
    %236 = arith.subf %235, %234 : vector<16x256xf32>
    %237 = arith.mulf %233, %236 : vector<16x256xf32>
    %cst_52 = arith.constant 0.000000e+00 : f32
    %238 = vector.broadcast %cst_52 : f32 to vector<16x256xf32>
    %239 = arith.subf %238, %226 : vector<16x256xf32>
    %cst_53 = arith.constant 1.000000e+00 : f32
    %240 = vector.broadcast %cst_53 : f32 to vector<16x256xf32>
    %241 = arith.subf %211, %240 : vector<16x256xf32>
    %242 = arith.mulf %241, %237 : vector<16x256xf32>
    %243 = arith.select %215, %242, %211 : vector<16x256xi1>, vector<16x256xf32>
    %244 = arith.select %213, %239, %243 : vector<16x256xi1>, vector<16x256xf32>
    %cst_54 = arith.constant 0.785398185 : f32
    %cst_55 = arith.constant 0.000000e+00 : f32
    %245 = vector.broadcast %cst_54 : f32 to vector<16x256xf32>
    %246 = vector.broadcast %cst_55 : f32 to vector<16x256xf32>
    %247 = arith.select %215, %245, %246 : vector<16x256xi1>, vector<16x256xf32>
    %cst_56 = arith.constant 1.57079637 : f32
    %248 = vector.broadcast %cst_56 : f32 to vector<16x256xf32>
    %249 = arith.select %213, %248, %247 : vector<16x256xi1>, vector<16x256xf32>
    %250 = arith.mulf %244, %244 : vector<16x256xf32>
    %cst_57 = arith.constant 0.0805374458 : f32
    %251 = vector.broadcast %cst_57 : f32 to vector<16x256xf32>
    %252 = arith.mulf %251, %250 : vector<16x256xf32>
    %cst_58 = arith.constant 0.138776854 : f32
    %253 = vector.broadcast %cst_58 : f32 to vector<16x256xf32>
    %254 = arith.subf %252, %253 : vector<16x256xf32>
    %255 = arith.mulf %254, %250 : vector<16x256xf32>
    %cst_59 = arith.constant 0.199777111 : f32
    %256 = vector.broadcast %cst_59 : f32 to vector<16x256xf32>
    %257 = arith.addf %255, %256 : vector<16x256xf32>
    %258 = arith.mulf %257, %250 : vector<16x256xf32>
    %cst_60 = arith.constant 0.333329499 : f32
    %259 = vector.broadcast %cst_60 : f32 to vector<16x256xf32>
    %260 = arith.subf %258, %259 : vector<16x256xf32>
    %261 = arith.mulf %260, %250 : vector<16x256xf32>
    %262 = arith.mulf %261, %244 : vector<16x256xf32>
    %263 = arith.addf %249, %262 : vector<16x256xf32>
    %264 = arith.addf %263, %244 : vector<16x256xf32>
    %cst_61 = arith.constant 0.000000e+00 : f32
    %265 = vector.broadcast %cst_61 : f32 to vector<16x256xf32>
    %266 = arith.cmpf olt, %210, %265 : vector<16x256xf32>
    %cst_62 = arith.constant 0.000000e+00 : f32
    %267 = vector.broadcast %cst_62 : f32 to vector<16x256xf32>
    %268 = arith.subf %267, %264 : vector<16x256xf32>
    %269 = arith.select %266, %268, %264 : vector<16x256xi1>, vector<16x256xf32>
    %cst_63 = arith.constant 0.159154937 : f32
    %270 = vector.broadcast %cst_63 : f32 to vector<16x256xf32>
    %271 = arith.mulf %269, %270 : vector<16x256xf32>
    %c0_64 = arith.constant 0 : index
    %c0_65 = arith.constant 0 : index
    %c0_66 = arith.constant 0 : index
    %272 = vector.load %arg6[%c0_64, %c0_65, %c0_66] : memref<2x16x256xf32, #tpu.memory_space<vmem>>, vector<1x16x256xf32>
    %273 = vector.shape_cast %272 : vector<1x16x256xf32> to vector<16x256xf32>
    %274 = vector.shape_cast %271 : vector<16x256xf32> to vector<1x16x256xf32>
    tpu.vector_store %arg6[%c0_64, %c0_65, %c0_66], %274 {strides = array<i32>} : memref<2x16x256xf32, #tpu.memory_space<vmem>>, vector<1x16x256xf32>,
    %c1 = arith.constant 1 : index
    %c0_67 = arith.constant 0 : index
    %c0_68 = arith.constant 0 : index
    %275 = vector.load %arg1[%c1, %c0_67, %c0_68] : memref<2x8x256xf32, #tpu.memory_space<vmem>>, vector<1x8x256xf32>
    %276 = vector.shape_cast %275 : vector<1x8x256xf32> to vector<8x256xf32>
    %277 = vector.extract_strided_slice %276 {offsets = [0, 239], sizes = [8, 17], strides = [1, 1]} : vector<8x256xf32> to vector<8x17xf32>
    %278 = vector.extract_strided_slice %276 {offsets = [0, 0], sizes = [8, 239], strides = [1, 1]} : vector<8x256xf32> to vector<8x239xf32>
    %279 = tpu.concatenate %277, %278 in 1 : vector<8x17xf32>, vector<8x239xf32> -> vector<8x256xf32>
    %280 = vector.extract_strided_slice %276 {offsets = [0, 255], sizes = [8, 1], strides = [1, 1]} : vector<8x256xf32> to vector<8x1xf32>
    %281 = vector.extract_strided_slice %276 {offsets = [0, 0], sizes = [8, 255], strides = [1, 1]} : vector<8x256xf32> to vector<8x255xf32>
    %282 = tpu.concatenate %280, %281 in 1 : vector<8x1xf32>, vector<8x255xf32> -> vector<8x256xf32>
    %283 = vector.shape_cast %4 : vector<1x256xi1> to vector<1x256xi1>
    %284 = vector.broadcast %283 : vector<1x256xi1> to vector<8x256xi1>
    %285 = arith.select %284, %282, %279 : vector<8x256xi1>, vector<8x256xf32>
    %286 = vector.extract_strided_slice %276 {offsets = [0, 240], sizes = [8, 16], strides = [1, 1]} : vector<8x256xf32> to vector<8x16xf32>
    %287 = vector.extract_strided_slice %276 {offsets = [0, 0], sizes = [8, 240], strides = [1, 1]} : vector<8x256xf32> to vector<8x240xf32>
    %288 = tpu.concatenate %286, %287 in 1 : vector<8x16xf32>, vector<8x240xf32> -> vector<8x256xf32>
    %289 = vector.extract_strided_slice %276 {offsets = [0, 241], sizes = [8, 15], strides = [1, 1]} : vector<8x256xf32> to vector<8x15xf32>
    %290 = vector.extract_strided_slice %276 {offsets = [0, 0], sizes = [8, 241], strides = [1, 1]} : vector<8x256xf32> to vector<8x241xf32>
    %291 = tpu.concatenate %289, %290 in 1 : vector<8x15xf32>, vector<8x241xf32> -> vector<8x256xf32>
    %292 = vector.extract_strided_slice %276 {offsets = [0, 225], sizes = [8, 31], strides = [1, 1]} : vector<8x256xf32> to vector<8x31xf32>
    %293 = vector.extract_strided_slice %276 {offsets = [0, 0], sizes = [8, 225], strides = [1, 1]} : vector<8x256xf32> to vector<8x225xf32>
    %294 = tpu.concatenate %292, %293 in 1 : vector<8x31xf32>, vector<8x225xf32> -> vector<8x256xf32>
    %295 = vector.shape_cast %6 : vector<1x256xi1> to vector<1x256xi1>
    %296 = vector.broadcast %295 : vector<1x256xi1> to vector<8x256xi1>
    %297 = arith.select %296, %294, %291 : vector<8x256xi1>, vector<8x256xf32>
    %298 = vector.extract_strided_slice %276 {offsets = [0, 15], sizes = [8, 241], strides = [1, 1]} : vector<8x256xf32> to vector<8x241xf32>
    %299 = vector.extract_strided_slice %276 {offsets = [0, 0], sizes = [8, 15], strides = [1, 1]} : vector<8x256xf32> to vector<8x15xf32>
    %300 = tpu.concatenate %298, %299 in 1 : vector<8x241xf32>, vector<8x15xf32> -> vector<8x256xf32>
    %301 = vector.shape_cast %4 : vector<1x256xi1> to vector<1x256xi1>
    %302 = vector.broadcast %301 : vector<1x256xi1> to vector<8x256xi1>
    %303 = arith.select %302, %300, %282 : vector<8x256xi1>, vector<8x256xf32>
    %304 = vector.extract_strided_slice %276 {offsets = [0, 1], sizes = [8, 255], strides = [1, 1]} : vector<8x256xf32> to vector<8x255xf32>
    %305 = vector.extract_strided_slice %276 {offsets = [0, 0], sizes = [8, 1], strides = [1, 1]} : vector<8x256xf32> to vector<8x1xf32>
    %306 = tpu.concatenate %304, %305 in 1 : vector<8x255xf32>, vector<8x1xf32> -> vector<8x256xf32>
    %307 = vector.shape_cast %6 : vector<1x256xi1> to vector<1x256xi1>
    %308 = vector.broadcast %307 : vector<1x256xi1> to vector<8x256xi1>
    %309 = arith.select %308, %291, %306 : vector<8x256xi1>, vector<8x256xf32>
    %310 = vector.extract_strided_slice %276 {offsets = [0, 31], sizes = [8, 225], strides = [1, 1]} : vector<8x256xf32> to vector<8x225xf32>
    %311 = vector.extract_strided_slice %276 {offsets = [0, 0], sizes = [8, 31], strides = [1, 1]} : vector<8x256xf32> to vector<8x31xf32>
    %312 = tpu.concatenate %310, %311 in 1 : vector<8x225xf32>, vector<8x31xf32> -> vector<8x256xf32>
    %313 = vector.shape_cast %4 : vector<1x256xi1> to vector<1x256xi1>
    %314 = vector.broadcast %313 : vector<1x256xi1> to vector<8x256xi1>
    %315 = arith.select %314, %312, %300 : vector<8x256xi1>, vector<8x256xf32>
    %316 = vector.extract_strided_slice %276 {offsets = [0, 16], sizes = [8, 240], strides = [1, 1]} : vector<8x256xf32> to vector<8x240xf32>
    %317 = vector.extract_strided_slice %276 {offsets = [0, 0], sizes = [8, 16], strides = [1, 1]} : vector<8x256xf32> to vector<8x16xf32>
    %318 = tpu.concatenate %316, %317 in 1 : vector<8x240xf32>, vector<8x16xf32> -> vector<8x256xf32>
    %319 = vector.extract_strided_slice %276 {offsets = [0, 17], sizes = [8, 239], strides = [1, 1]} : vector<8x256xf32> to vector<8x239xf32>
    %320 = vector.extract_strided_slice %276 {offsets = [0, 0], sizes = [8, 17], strides = [1, 1]} : vector<8x256xf32> to vector<8x17xf32>
    %321 = tpu.concatenate %319, %320 in 1 : vector<8x239xf32>, vector<8x17xf32> -> vector<8x256xf32>
    %322 = vector.shape_cast %6 : vector<1x256xi1> to vector<1x256xi1>
    %323 = vector.broadcast %322 : vector<1x256xi1> to vector<8x256xi1>
    %324 = arith.select %323, %306, %321 : vector<8x256xi1>, vector<8x256xf32>
    %325 = tpu.concatenate %285, %288, %297, %303, %276, %309, %315, %318, %324 in 0 : vector<8x256xf32>, vector<8x256xf32>, vector<8x256xf32>, vector<8x256xf32>, vector<8x256xf32>, vector<8x256xf32>, vector<8x256xf32>, vector<8x256xf32>, vector<8x256xf32> -> vector<72x256xf32>
    %cst_69 = arith.constant dense<0.000000e+00> : vector<16x256xf32>
    %326 = tpu.matmul %7, %325, %cst_69 {dimension_numbers = #tpu.dot_dimension_numbers<[1], [0], [0], [1], [0, 0, 1, 1], [], []>} : vector<16x72xf32>, vector<72x256xf32>, vector<16x256xf32> -> vector<16x256xf32>
    %327 = vector.broadcast %8 : vector<16x1xf32> to vector<16x256xf32>
    %328 = arith.addf %326, %327 : vector<16x256xf32>
    %cst_70 = arith.constant 5.000000e-01 : f32
    %329 = vector.broadcast %cst_70 : f32 to vector<16x256xf32>
    %330 = arith.mulf %329, %328 : vector<16x256xf32>
    %cst_71 = arith.constant 0.707106769 : f32
    %331 = vector.broadcast %cst_71 : f32 to vector<16x256xf32>
    %332 = arith.mulf %328, %331 : vector<16x256xf32>
    %333 = math.absf %332 : vector<16x256xf32>
    %cst_72 = arith.constant 0.327591091 : f32
    %334 = vector.broadcast %cst_72 : f32 to vector<16x256xf32>
    %335 = arith.mulf %334, %333 : vector<16x256xf32>
    %cst_73 = arith.constant 1.000000e+00 : f32
    %336 = vector.broadcast %cst_73 : f32 to vector<16x256xf32>
    %337 = arith.addf %336, %335 : vector<16x256xf32>
    %338 = tpu.reciprocal %337 {approx = true} : vector<16x256xf32> -> vector<16x256xf32>
    %339 = arith.mulf %337, %338 : vector<16x256xf32>
    %cst_74 = arith.constant 2.000000e+00 : f32
    %340 = vector.broadcast %cst_74 : f32 to vector<16x256xf32>
    %341 = arith.subf %340, %339 : vector<16x256xf32>
    %342 = arith.mulf %338, %341 : vector<16x256xf32>
    %343 = arith.mulf %337, %342 : vector<16x256xf32>
    %cst_75 = arith.constant 2.000000e+00 : f32
    %344 = vector.broadcast %cst_75 : f32 to vector<16x256xf32>
    %345 = arith.subf %344, %343 : vector<16x256xf32>
    %346 = arith.mulf %342, %345 : vector<16x256xf32>
    %cst_76 = arith.constant 1.06140542 : f32
    %347 = vector.broadcast %cst_76 : f32 to vector<16x256xf32>
    %348 = arith.mulf %346, %347 : vector<16x256xf32>
    %cst_77 = arith.constant -1.45315206 : f32
    %349 = vector.broadcast %cst_77 : f32 to vector<16x256xf32>
    %350 = arith.addf %349, %348 : vector<16x256xf32>
    %351 = arith.mulf %346, %350 : vector<16x256xf32>
    %cst_78 = arith.constant 1.42141378 : f32
    %352 = vector.broadcast %cst_78 : f32 to vector<16x256xf32>
    %353 = arith.addf %352, %351 : vector<16x256xf32>
    %354 = arith.mulf %346, %353 : vector<16x256xf32>
    %cst_79 = arith.constant -0.284496725 : f32
    %355 = vector.broadcast %cst_79 : f32 to vector<16x256xf32>
    %356 = arith.addf %355, %354 : vector<16x256xf32>
    %357 = arith.mulf %346, %356 : vector<16x256xf32>
    %cst_80 = arith.constant 0.254829586 : f32
    %358 = vector.broadcast %cst_80 : f32 to vector<16x256xf32>
    %359 = arith.addf %358, %357 : vector<16x256xf32>
    %360 = arith.mulf %346, %359 : vector<16x256xf32>
    %cst_81 = arith.constant 0.000000e+00 : f32
    %361 = vector.broadcast %cst_81 : f32 to vector<16x256xf32>
    %362 = arith.subf %361, %333 : vector<16x256xf32>
    %363 = arith.mulf %362, %333 : vector<16x256xf32>
    %364 = math.exp %363 : vector<16x256xf32>
    %365 = arith.mulf %360, %364 : vector<16x256xf32>
    %cst_82 = arith.constant 1.000000e+00 : f32
    %366 = vector.broadcast %cst_82 : f32 to vector<16x256xf32>
    %367 = arith.subf %366, %365 : vector<16x256xf32>
    %cst_83 = arith.constant 0.000000e+00 : f32
    %368 = vector.broadcast %cst_83 : f32 to vector<16x256xf32>
    %369 = arith.cmpf olt, %332, %368 : vector<16x256xf32>
    %cst_84 = arith.constant 0.000000e+00 : f32
    %370 = vector.broadcast %cst_84 : f32 to vector<16x256xf32>
    %371 = arith.subf %370, %367 : vector<16x256xf32>
    %372 = arith.select %369, %371, %367 : vector<16x256xi1>, vector<16x256xf32>
    %cst_85 = arith.constant 1.000000e+00 : f32
    %373 = vector.broadcast %cst_85 : f32 to vector<16x256xf32>
    %374 = arith.addf %373, %372 : vector<16x256xf32>
    %375 = arith.mulf %330, %374 : vector<16x256xf32>
    %376 = vector.extract_strided_slice %375 {offsets = [0, 239], sizes = [16, 17], strides = [1, 1]} : vector<16x256xf32> to vector<16x17xf32>
    %377 = vector.extract_strided_slice %375 {offsets = [0, 0], sizes = [16, 239], strides = [1, 1]} : vector<16x256xf32> to vector<16x239xf32>
    %378 = tpu.concatenate %376, %377 in 1 : vector<16x17xf32>, vector<16x239xf32> -> vector<16x256xf32>
    %379 = vector.extract_strided_slice %375 {offsets = [0, 255], sizes = [16, 1], strides = [1, 1]} : vector<16x256xf32> to vector<16x1xf32>
    %380 = vector.extract_strided_slice %375 {offsets = [0, 0], sizes = [16, 255], strides = [1, 1]} : vector<16x256xf32> to vector<16x255xf32>
    %381 = tpu.concatenate %379, %380 in 1 : vector<16x1xf32>, vector<16x255xf32> -> vector<16x256xf32>
    %382 = vector.shape_cast %4 : vector<1x256xi1> to vector<1x256xi1>
    %383 = vector.broadcast %382 : vector<1x256xi1> to vector<16x256xi1>
    %384 = arith.select %383, %381, %378 : vector<16x256xi1>, vector<16x256xf32>
    %385 = vector.extract_strided_slice %375 {offsets = [0, 240], sizes = [16, 16], strides = [1, 1]} : vector<16x256xf32> to vector<16x16xf32>
    %386 = vector.extract_strided_slice %375 {offsets = [0, 0], sizes = [16, 240], strides = [1, 1]} : vector<16x256xf32> to vector<16x240xf32>
    %387 = tpu.concatenate %385, %386 in 1 : vector<16x16xf32>, vector<16x240xf32> -> vector<16x256xf32>
    %388 = vector.extract_strided_slice %375 {offsets = [0, 241], sizes = [16, 15], strides = [1, 1]} : vector<16x256xf32> to vector<16x15xf32>
    %389 = vector.extract_strided_slice %375 {offsets = [0, 0], sizes = [16, 241], strides = [1, 1]} : vector<16x256xf32> to vector<16x241xf32>
    %390 = tpu.concatenate %388, %389 in 1 : vector<16x15xf32>, vector<16x241xf32> -> vector<16x256xf32>
    %391 = vector.extract_strided_slice %375 {offsets = [0, 225], sizes = [16, 31], strides = [1, 1]} : vector<16x256xf32> to vector<16x31xf32>
    %392 = vector.extract_strided_slice %375 {offsets = [0, 0], sizes = [16, 225], strides = [1, 1]} : vector<16x256xf32> to vector<16x225xf32>
    %393 = tpu.concatenate %391, %392 in 1 : vector<16x31xf32>, vector<16x225xf32> -> vector<16x256xf32>
    %394 = vector.shape_cast %6 : vector<1x256xi1> to vector<1x256xi1>
    %395 = vector.broadcast %394 : vector<1x256xi1> to vector<16x256xi1>
    %396 = arith.select %395, %393, %390 : vector<16x256xi1>, vector<16x256xf32>
    %397 = vector.extract_strided_slice %375 {offsets = [0, 15], sizes = [16, 241], strides = [1, 1]} : vector<16x256xf32> to vector<16x241xf32>
    %398 = vector.extract_strided_slice %375 {offsets = [0, 0], sizes = [16, 15], strides = [1, 1]} : vector<16x256xf32> to vector<16x15xf32>
    %399 = tpu.concatenate %397, %398 in 1 : vector<16x241xf32>, vector<16x15xf32> -> vector<16x256xf32>
    %400 = vector.shape_cast %4 : vector<1x256xi1> to vector<1x256xi1>
    %401 = vector.broadcast %400 : vector<1x256xi1> to vector<16x256xi1>
    %402 = arith.select %401, %399, %381 : vector<16x256xi1>, vector<16x256xf32>
    %403 = vector.extract_strided_slice %375 {offsets = [0, 1], sizes = [16, 255], strides = [1, 1]} : vector<16x256xf32> to vector<16x255xf32>
    %404 = vector.extract_strided_slice %375 {offsets = [0, 0], sizes = [16, 1], strides = [1, 1]} : vector<16x256xf32> to vector<16x1xf32>
    %405 = tpu.concatenate %403, %404 in 1 : vector<16x255xf32>, vector<16x1xf32> -> vector<16x256xf32>
    %406 = vector.shape_cast %6 : vector<1x256xi1> to vector<1x256xi1>
    %407 = vector.broadcast %406 : vector<1x256xi1> to vector<16x256xi1>
    %408 = arith.select %407, %390, %405 : vector<16x256xi1>, vector<16x256xf32>
    %409 = vector.extract_strided_slice %375 {offsets = [0, 31], sizes = [16, 225], strides = [1, 1]} : vector<16x256xf32> to vector<16x225xf32>
    %410 = vector.extract_strided_slice %375 {offsets = [0, 0], sizes = [16, 31], strides = [1, 1]} : vector<16x256xf32> to vector<16x31xf32>
    %411 = tpu.concatenate %409, %410 in 1 : vector<16x225xf32>, vector<16x31xf32> -> vector<16x256xf32>
    %412 = vector.shape_cast %4 : vector<1x256xi1> to vector<1x256xi1>
    %413 = vector.broadcast %412 : vector<1x256xi1> to vector<16x256xi1>
    %414 = arith.select %413, %411, %399 : vector<16x256xi1>, vector<16x256xf32>
    %415 = vector.extract_strided_slice %375 {offsets = [0, 16], sizes = [16, 240], strides = [1, 1]} : vector<16x256xf32> to vector<16x240xf32>
    %416 = vector.extract_strided_slice %375 {offsets = [0, 0], sizes = [16, 16], strides = [1, 1]} : vector<16x256xf32> to vector<16x16xf32>
    %417 = tpu.concatenate %415, %416 in 1 : vector<16x240xf32>, vector<16x16xf32> -> vector<16x256xf32>
    %418 = vector.extract_strided_slice %375 {offsets = [0, 17], sizes = [16, 239], strides = [1, 1]} : vector<16x256xf32> to vector<16x239xf32>
    %419 = vector.extract_strided_slice %375 {offsets = [0, 0], sizes = [16, 17], strides = [1, 1]} : vector<16x256xf32> to vector<16x17xf32>
    %420 = tpu.concatenate %418, %419 in 1 : vector<16x239xf32>, vector<16x17xf32> -> vector<16x256xf32>
    %421 = vector.shape_cast %6 : vector<1x256xi1> to vector<1x256xi1>
    %422 = vector.broadcast %421 : vector<1x256xi1> to vector<16x256xi1>
    %423 = arith.select %422, %405, %420 : vector<16x256xi1>, vector<16x256xf32>
    %424 = tpu.concatenate %384, %387, %396, %402, %375, %408, %414, %417, %423 in 0 : vector<16x256xf32>, vector<16x256xf32>, vector<16x256xf32>, vector<16x256xf32>, vector<16x256xf32>, vector<16x256xf32>, vector<16x256xf32>, vector<16x256xf32>, vector<16x256xf32> -> vector<144x256xf32>
    %cst_86 = arith.constant dense<0.000000e+00> : vector<16x256xf32>
    %425 = tpu.matmul %9, %424, %cst_86 {dimension_numbers = #tpu.dot_dimension_numbers<[1], [0], [0], [1], [0, 0, 1, 1], [], []>} : vector<16x144xf32>, vector<144x256xf32>, vector<16x256xf32> -> vector<16x256xf32>
    %426 = vector.broadcast %10 : vector<16x1xf32> to vector<16x256xf32>
    %427 = arith.addf %425, %426 : vector<16x256xf32>
    %cst_87 = arith.constant 5.000000e-01 : f32
    %428 = vector.broadcast %cst_87 : f32 to vector<16x256xf32>
    %429 = arith.mulf %428, %427 : vector<16x256xf32>
    %cst_88 = arith.constant 0.707106769 : f32
    %430 = vector.broadcast %cst_88 : f32 to vector<16x256xf32>
    %431 = arith.mulf %427, %430 : vector<16x256xf32>
    %432 = math.absf %431 : vector<16x256xf32>
    %cst_89 = arith.constant 0.327591091 : f32
    %433 = vector.broadcast %cst_89 : f32 to vector<16x256xf32>
    %434 = arith.mulf %433, %432 : vector<16x256xf32>
    %cst_90 = arith.constant 1.000000e+00 : f32
    %435 = vector.broadcast %cst_90 : f32 to vector<16x256xf32>
    %436 = arith.addf %435, %434 : vector<16x256xf32>
    %437 = tpu.reciprocal %436 {approx = true} : vector<16x256xf32> -> vector<16x256xf32>
    %438 = arith.mulf %436, %437 : vector<16x256xf32>
    %cst_91 = arith.constant 2.000000e+00 : f32
    %439 = vector.broadcast %cst_91 : f32 to vector<16x256xf32>
    %440 = arith.subf %439, %438 : vector<16x256xf32>
    %441 = arith.mulf %437, %440 : vector<16x256xf32>
    %442 = arith.mulf %436, %441 : vector<16x256xf32>
    %cst_92 = arith.constant 2.000000e+00 : f32
    %443 = vector.broadcast %cst_92 : f32 to vector<16x256xf32>
    %444 = arith.subf %443, %442 : vector<16x256xf32>
    %445 = arith.mulf %441, %444 : vector<16x256xf32>
    %cst_93 = arith.constant 1.06140542 : f32
    %446 = vector.broadcast %cst_93 : f32 to vector<16x256xf32>
    %447 = arith.mulf %445, %446 : vector<16x256xf32>
    %cst_94 = arith.constant -1.45315206 : f32
    %448 = vector.broadcast %cst_94 : f32 to vector<16x256xf32>
    %449 = arith.addf %448, %447 : vector<16x256xf32>
    %450 = arith.mulf %445, %449 : vector<16x256xf32>
    %cst_95 = arith.constant 1.42141378 : f32
    %451 = vector.broadcast %cst_95 : f32 to vector<16x256xf32>
    %452 = arith.addf %451, %450 : vector<16x256xf32>
    %453 = arith.mulf %445, %452 : vector<16x256xf32>
    %cst_96 = arith.constant -0.284496725 : f32
    %454 = vector.broadcast %cst_96 : f32 to vector<16x256xf32>
    %455 = arith.addf %454, %453 : vector<16x256xf32>
    %456 = arith.mulf %445, %455 : vector<16x256xf32>
    %cst_97 = arith.constant 0.254829586 : f32
    %457 = vector.broadcast %cst_97 : f32 to vector<16x256xf32>
    %458 = arith.addf %457, %456 : vector<16x256xf32>
    %459 = arith.mulf %445, %458 : vector<16x256xf32>
    %cst_98 = arith.constant 0.000000e+00 : f32
    %460 = vector.broadcast %cst_98 : f32 to vector<16x256xf32>
    %461 = arith.subf %460, %432 : vector<16x256xf32>
    %462 = arith.mulf %461, %432 : vector<16x256xf32>
    %463 = math.exp %462 : vector<16x256xf32>
    %464 = arith.mulf %459, %463 : vector<16x256xf32>
    %cst_99 = arith.constant 1.000000e+00 : f32
    %465 = vector.broadcast %cst_99 : f32 to vector<16x256xf32>
    %466 = arith.subf %465, %464 : vector<16x256xf32>
    %cst_100 = arith.constant 0.000000e+00 : f32
    %467 = vector.broadcast %cst_100 : f32 to vector<16x256xf32>
    %468 = arith.cmpf olt, %431, %467 : vector<16x256xf32>
    %cst_101 = arith.constant 0.000000e+00 : f32
    %469 = vector.broadcast %cst_101 : f32 to vector<16x256xf32>
    %470 = arith.subf %469, %466 : vector<16x256xf32>
    %471 = arith.select %468, %470, %466 : vector<16x256xi1>, vector<16x256xf32>
    %cst_102 = arith.constant 1.000000e+00 : f32
    %472 = vector.broadcast %cst_102 : f32 to vector<16x256xf32>
    %473 = arith.addf %472, %471 : vector<16x256xf32>
    %474 = arith.mulf %429, %473 : vector<16x256xf32>
    %475 = math.absf %474 : vector<16x256xf32>
    %cst_103 = arith.constant 2.41421366 : f32
    %476 = vector.broadcast %cst_103 : f32 to vector<16x256xf32>
    %477 = arith.cmpf ogt, %475, %476 : vector<16x256xf32>
    %cst_104 = arith.constant 0.414213568 : f32
    %478 = vector.broadcast %cst_104 : f32 to vector<16x256xf32>
    %479 = arith.cmpf ogt, %475, %478 : vector<16x256xf32>
    %cst_105 = arith.constant 1.000000e+00 : f32
    %480 = vector.broadcast %cst_105 : f32 to vector<16x256xf32>
    %481 = arith.maximumf %475, %480 : vector<16x256xf32>
    %482 = tpu.reciprocal %481 {approx = true} : vector<16x256xf32> -> vector<16x256xf32>
    %483 = arith.mulf %481, %482 : vector<16x256xf32>
    %cst_106 = arith.constant 2.000000e+00 : f32
    %484 = vector.broadcast %cst_106 : f32 to vector<16x256xf32>
    %485 = arith.subf %484, %483 : vector<16x256xf32>
    %486 = arith.mulf %482, %485 : vector<16x256xf32>
    %487 = arith.mulf %481, %486 : vector<16x256xf32>
    %cst_107 = arith.constant 2.000000e+00 : f32
    %488 = vector.broadcast %cst_107 : f32 to vector<16x256xf32>
    %489 = arith.subf %488, %487 : vector<16x256xf32>
    %490 = arith.mulf %486, %489 : vector<16x256xf32>
    %cst_108 = arith.constant 1.000000e+00 : f32
    %491 = vector.broadcast %cst_108 : f32 to vector<16x256xf32>
    %492 = arith.addf %475, %491 : vector<16x256xf32>
    %493 = tpu.reciprocal %492 {approx = true} : vector<16x256xf32> -> vector<16x256xf32>
    %494 = arith.mulf %492, %493 : vector<16x256xf32>
    %cst_109 = arith.constant 2.000000e+00 : f32
    %495 = vector.broadcast %cst_109 : f32 to vector<16x256xf32>
    %496 = arith.subf %495, %494 : vector<16x256xf32>
    %497 = arith.mulf %493, %496 : vector<16x256xf32>
    %498 = arith.mulf %492, %497 : vector<16x256xf32>
    %cst_110 = arith.constant 2.000000e+00 : f32
    %499 = vector.broadcast %cst_110 : f32 to vector<16x256xf32>
    %500 = arith.subf %499, %498 : vector<16x256xf32>
    %501 = arith.mulf %497, %500 : vector<16x256xf32>
    %cst_111 = arith.constant 0.000000e+00 : f32
    %502 = vector.broadcast %cst_111 : f32 to vector<16x256xf32>
    %503 = arith.subf %502, %490 : vector<16x256xf32>
    %cst_112 = arith.constant 1.000000e+00 : f32
    %504 = vector.broadcast %cst_112 : f32 to vector<16x256xf32>
    %505 = arith.subf %475, %504 : vector<16x256xf32>
    %506 = arith.mulf %505, %501 : vector<16x256xf32>
    %507 = arith.select %479, %506, %475 : vector<16x256xi1>, vector<16x256xf32>
    %508 = arith.select %477, %503, %507 : vector<16x256xi1>, vector<16x256xf32>
    %cst_113 = arith.constant 0.785398185 : f32
    %cst_114 = arith.constant 0.000000e+00 : f32
    %509 = vector.broadcast %cst_113 : f32 to vector<16x256xf32>
    %510 = vector.broadcast %cst_114 : f32 to vector<16x256xf32>
    %511 = arith.select %479, %509, %510 : vector<16x256xi1>, vector<16x256xf32>
    %cst_115 = arith.constant 1.57079637 : f32
    %512 = vector.broadcast %cst_115 : f32 to vector<16x256xf32>
    %513 = arith.select %477, %512, %511 : vector<16x256xi1>, vector<16x256xf32>
    %514 = arith.mulf %508, %508 : vector<16x256xf32>
    %cst_116 = arith.constant 0.0805374458 : f32
    %515 = vector.broadcast %cst_116 : f32 to vector<16x256xf32>
    %516 = arith.mulf %515, %514 : vector<16x256xf32>
    %cst_117 = arith.constant 0.138776854 : f32
    %517 = vector.broadcast %cst_117 : f32 to vector<16x256xf32>
    %518 = arith.subf %516, %517 : vector<16x256xf32>
    %519 = arith.mulf %518, %514 : vector<16x256xf32>
    %cst_118 = arith.constant 0.199777111 : f32
    %520 = vector.broadcast %cst_118 : f32 to vector<16x256xf32>
    %521 = arith.addf %519, %520 : vector<16x256xf32>
    %522 = arith.mulf %521, %514 : vector<16x256xf32>
    %cst_119 = arith.constant 0.333329499 : f32
    %523 = vector.broadcast %cst_119 : f32 to vector<16x256xf32>
    %524 = arith.subf %522, %523 : vector<16x256xf32>
    %525 = arith.mulf %524, %514 : vector<16x256xf32>
    %526 = arith.mulf %525, %508 : vector<16x256xf32>
    %527 = arith.addf %513, %526 : vector<16x256xf32>
    %528 = arith.addf %527, %508 : vector<16x256xf32>
    %cst_120 = arith.constant 0.000000e+00 : f32
    %529 = vector.broadcast %cst_120 : f32 to vector<16x256xf32>
    %530 = arith.cmpf olt, %474, %529 : vector<16x256xf32>
    %cst_121 = arith.constant 0.000000e+00 : f32
    %531 = vector.broadcast %cst_121 : f32 to vector<16x256xf32>
    %532 = arith.subf %531, %528 : vector<16x256xf32>
    %533 = arith.select %530, %532, %528 : vector<16x256xi1>, vector<16x256xf32>
    %cst_122 = arith.constant 0.159154937 : f32
    %534 = vector.broadcast %cst_122 : f32 to vector<16x256xf32>
    %535 = arith.mulf %533, %534 : vector<16x256xf32>
    %c1_123 = arith.constant 1 : index
    %c0_124 = arith.constant 0 : index
    %c0_125 = arith.constant 0 : index
    %536 = vector.load %arg6[%c1_123, %c0_124, %c0_125] : memref<2x16x256xf32, #tpu.memory_space<vmem>>, vector<1x16x256xf32>
    %537 = vector.shape_cast %536 : vector<1x16x256xf32> to vector<16x256xf32>
    %538 = vector.shape_cast %535 : vector<16x256xf32> to vector<1x16x256xf32>
    tpu.vector_store %arg6[%c1_123, %c0_124, %c0_125], %538 {strides = array<i32>} : memref<2x16x256xf32, #tpu.memory_space<vmem>>, vector<1x16x256xf32>,
    return
  }
  func.func @transform_0(%arg0: i32) -> (i32, i32, i32) {
    %c0_i32 = arith.constant 0 : i32
    %c0_i32_0 = arith.constant 0 : i32
    %c0_i32_1 = arith.constant 0 : i32
    return %arg0, %c0_i32, %c0_i32_0 : i32, i32, i32
  }
  func.func @transform_1(%arg0: i32) -> (i32, i32) {
    %c0_i32 = arith.constant 0 : i32
    %c0_i32_0 = arith.constant 0 : i32
    %c0_i32_1 = arith.constant 0 : i32
    return %c0_i32, %c0_i32_0 : i32, i32
  }
  func.func @transform_2(%arg0: i32) -> (i32, i32) {
    %c0_i32 = arith.constant 0 : i32
    %c0_i32_0 = arith.constant 0 : i32
    %c0_i32_1 = arith.constant 0 : i32
    return %c0_i32, %c0_i32_0 : i32, i32
  }
  func.func @transform_3(%arg0: i32) -> (i32, i32) {
    %c0_i32 = arith.constant 0 : i32
    %c0_i32_0 = arith.constant 0 : i32
    %c0_i32_1 = arith.constant 0 : i32
    return %c0_i32, %c0_i32_0 : i32, i32
  }
  func.func @transform_4(%arg0: i32) -> (i32, i32) {
    %c0_i32 = arith.constant 0 : i32
    %c0_i32_0 = arith.constant 0 : i32
    %c0_i32_1 = arith.constant 0 : i32
    return %c0_i32, %c0_i32_0 : i32, i32
  }
  func.func @transform_5(%arg0: i32) -> (i32, i32, i32) {
    %c0_i32 = arith.constant 0 : i32
    %c0_i32_0 = arith.constant 0 : i32
    %c0_i32_1 = arith.constant 0 : i32
    return %arg0, %c0_i32, %c0_i32_0 : i32, i32, i32
  }
}

</mosaic_0001>

<bundles_post_ra>
// kernel: tpu_custom_call.1
= control target key start
LH: loop header
LB: loop body
LE: loop exit
PB: predicated region body
PF: predicated region fallthrough
CT: control target
= control target key end

     0   :  { %6 = vsyncpa [#allocation3], 0  ;;  %s106_s0 = inlined_call_operand.hbm [shape: f32[8,128], index: 0, kind: input, shape index: {}]   ;;  %s107_s1 = inlined_call_operand.hbm [shape: f32[8,128], index: 1, kind: output, shape index: {}]  }
   0x1   :  { %7 = vsyncpa [#allocation4], 0  ;;  %s87_s6 = smov [#allocation2]  }
   0x2   :  { %s14_s7 = sshll.u32 %s87_s6, 4  ;;  %s15_s7 = int_to_ptr.vmem [resolvable:$true] %s14_s7 }
   0x3   :  { %s51_s8 = scalar_lea.vmem %s15_s7, 128  ;;  %p56_p1 = scmp.lt.s32.totalorder %s15_s7, %s15_s7 }
   0x4   :  { %p52_p0 = scmp.ne.s32.totalorder %s15_s7, %s51_s8  ;;  %p57_p2 = scmp.lt.s32.totalorder %s51_s8, %s51_s8 }
   0x6   :  { %p58_p3 = por %p57_p2, %p56_p1 }
   0x8   :  { %p59_p4 = pnand %p58_p3, %p52_p0 }
   0xa   :  { %62 = shalt.err (!%p59_p4)
}
   0xb   :  { %17 = dma.hbm_to_vmem [thread:$0]  %s106_s0, 128, %s15_s7, [#allocation3]  }
   0xc   :  { %83 = dma.done.wait [#allocation3], 128  }
   0xd   :  { %84 = vsyncadd [#allocation3], 4294967168  ;;  %v21_v0 = vld [vmem:[#allocation2] sm:$0xff]  ;;  %s88_s11 = smov 1   ;;  %s89_s12 = smov [#allocation5]  }
   0xe   :  { %22 = vrot.lane.b32.xlu0 %v21_v0, %s88_s11  ;;  %s31_s13 = sshll.u32 %s89_s12, 4  ;;  %s32_s13 = int_to_ptr.vmem [resolvable:$true] %s31_s13 }
   0xf   :  { %s63_s14 = scalar_lea.vmem %s32_s13, 128  ;;  %p68_p6 = scmp.lt.s32.totalorder %s32_s13, %s32_s13 }
  0x10   :  { %p64_p5 = scmp.ne.s32.totalorder %s32_s13, %s63_s14  ;;  %p69_p7 = scmp.lt.s32.totalorder %s63_s14, %s63_s14 }
  0x12   :  { %p70_p8 = por %p69_p7, %p68_p6 }
  0x14   :  { %p71_p9 = pnand %p70_p8, %p64_p5 }
  0x80   :  { %v23_v1 = vpop.permute.xlu0 %22 }
  0x81   :  { %24 = vst [vmem:[#allocation5] sm:$0xff] %v23_v1 }
  0x82   :  { %74 = shalt.err (!%p71_p9)
}
  0x83   :  { %34 = dma.vmem_to_hbm [thread:$0]  %s32_s13, 128, %s107_s1, [#allocation4]  }
  0x84   :  { %85 = dma.done.wait [#allocation4], 128  }
  0x85   :  { %86 = vsyncadd [#allocation4], 4294967168 }
  0x86   :  { %38 = vsyncpa [#allocation3], 1 }
  0x87   :  { %39 = vsyncpa [#allocation4], 1 }

// kernel: tpu_custom_call.1
= control target key start
LH: loop header
LB: loop body
LE: loop exit
PB: predicated region body
PF: predicated region fallthrough
CT: control target
= control target key end

     0   :  { %10 = vsyncpa [#allocation3], 0  ;;  %s3774_s0 = inlined_call_operand.vmem [shape: f32[2,8,256], index: 0, kind: input, shape index: {}]   ;;  %s3775_s1 = inlined_call_operand.hbm [shape: f32[16,72], index: 1, kind: input, shape index: {}]   ;;  %s3776_s2 = inlined_call_operand.vmem [shape: f32[16,1], index: 2, kind: input, shape index: {}]   ;;  %s3777_s3 = inlined_call_operand.hbm [shape: f32[16,144], index: 3, kind: input, shape index: {}]   ;;  %s3778_s4 = inlined_call_operand.vmem [shape: f32[16,1], index: 4, kind: input, shape index: {}]   ;;  %s3779_s5 = inlined_call_operand.hbm [shape: f32[2,16,256], index: 5, kind: output, shape index: {}]  }
   0x1   :  { %11 = vsyncpa [#allocation6], 0 }
   0x2   :  { %12 = vsyncpa [#allocation4], 0  ;;  %s2139_s18 = smov [#allocation2]  }
   0x3   :  { %s20_s19 = sshll.u32 %s2139_s18, 4  ;;  %s21_s19 = int_to_ptr.vmem [resolvable:$true] %s20_s19 }
   0x4   :  { %s2081_s20 = scalar_lea.vmem %s21_s19, 256  ;;  %p2086_p1 = scmp.lt.s32.totalorder %s21_s19, %s21_s19 }
   0x5   :  { %p2082_p0 = scmp.ne.s32.totalorder %s21_s19, %s2081_s20  ;;  %p2087_p2 = scmp.lt.s32.totalorder %s2081_s20, %s2081_s20 }
   0x7   :  { %p2088_p3 = por %p2087_p2, %p2086_p1 }
   0x9   :  { %p2089_p4 = pnand %p2088_p3, %p2082_p0 }
   0xb   :  { %2092 = shalt.err (!%p2089_p4)
}
   0xc   :  { %s2140_s21 = smov 128   ;;  %s2141_s22 = smov 8  }
   0xd   :  { %26 = dma.hbm_to_vmem [thread:$0]  %s3775_s1, 256, %s21_s19, [#allocation3], %s2140_s21, %s2140_s21, %s2141_s22  }
   0xe   :  { %s2142_s25 = smov [#allocation5]  }
   0xf   :  { %s34_s26 = sshll.u32 %s2142_s25, 4  ;;  %s35_s26 = int_to_ptr.vmem [resolvable:$true] %s34_s26 }
  0x10   :  { %s2101_s27 = scalar_lea.vmem %s35_s26, 512  ;;  %p2106_p6 = scmp.lt.s32.totalorder %s35_s26, %s35_s26 }
  0x11   :  { %p2102_p5 = scmp.ne.s32.totalorder %s35_s26, %s2101_s27  ;;  %p2107_p7 = scmp.lt.s32.totalorder %s2101_s27, %s2101_s27 }
  0x13   :  { %p2108_p8 = por %p2107_p7, %p2106_p6 }
  0x15   :  { %p2109_p9 = pnand %p2108_p8, %p2102_p5 }
  0x17   :  { %2112 = shalt.err (!%p2109_p9)
}
  0x18   :  { %s2143_s28 = smov 256   ;;  %s2144_s29 = smov 16  }
  0x19   :  { %40 = dma.hbm_to_vmem [thread:$0]  %s3777_s3, 512, %s35_s26, [#allocation6], %s2143_s28, %s2143_s28, %s2144_s29  }
  0x1a   :  { %2133 = dma.done.wait [#allocation3], 256  }
  0x1b   :  { %2134 = vsyncadd [#allocation3], 4294967040 }
  0x1c   :  { %2135 = dma.done.wait [#allocation6], 512  }
  0x1d   :  { %2136 = vsyncadd [#allocation6], 4294966784  ;;  %v2199_v0 = vld [vmem:[%s3774_s0] sm:$0xff]  ;;  %s2145_s8 = smov 111   ;;  %s2146_s9 = smov 127   ;;  %v2208_v1 = vld [vmem:[%s3774_s0 + $0x8] sm:$0xff]  ;;  %v49_v8 = vlaneseq }
  0x1e   :  { %180 = vrot.lane.b32.xlu1 %v2199_v0, %s2145_s8  ;;  %146 = vrot.lane.b32.xlu0 %v2199_v0, %s2146_s9  ;;  %v2217_v2 = vld [vmem:[%s3774_s0 + $0x18] sm:$0xff]  ;;  %v2222_v3 = vld [vmem:[%s3774_s0 + $0x10] sm:$0xff]  ;;  %s2147_s15 = smov 112   ;;  %s2148_s0 = smov 113   ;;  %v3780_v4 = vmov 0.0   ;;  %v2155_v5 = vmov 0  }
  0x1f   :  { %s2149_s16 = smov 97   ;;  %s2150_s17 = smov 15   ;;  %273 = vmatprep.mubr.f32.mxu1 %v3780_v4  ;;  %1182 = vmatprep.mubr.f32.mxu0 %v3780_v4  ;;  %v60_v6 = vld [vmem:[%s3776_s2] sm:$0xff]  ;;  %v61_v7 = vld [vmem:[%s3776_s2 + $0x8] sm:$0xff]  ;;  %v50_v9 = vand.u32 127, %v49_v8  ;;  %vm150_vm0 = vcmask 1039360  }
  0x20   :  { %s2151_s18 = smov 1   ;;  %s2152_s19 = smov 31   ;;  %1976 = vset.pattern.permute.xlu1 %v2155_v5  ;;  %1975 = vset.pattern.permute.xlu0 %v2155_v5  ;;  %vm184_vm1 = vcmask 908288   ;;  %vm174_vm4 = vcmask 916480   ;;  %vm138_vm5 = vcmask 924672   ;;  %vm162_vm6 = vcmask 793600  }
  0x21   :  { %s2154_s20 = smov 17   ;;  %v51_v10 = vadd.s32 128, %v50_v9  ;;  %v52_v12 = vand.u32 15, %v50_v9  ;;  %vm113_vm9 = vcmask 121856   ;;  %vm87_vm10 = vcmask 7168  }
  0x22   :  { %182 = vrot.lane.b32.xlu1 %v2208_v1, %s2145_s8  ;;  %148 = vrot.lane.b32.xlu0 %v2208_v1, %s2146_s9  ;;  %vm123_vm11 = vcmask 252928   ;;  %vm103_vm12 = vcmask 130048   ;;  %vm77_vm13 = vcmask 138240   ;;  %vm202_vm14 = vcmask 588800  }
  0x23   :  { %v53_v11 = vand.u32 15, %v51_v10  ;;  %vm2308_vm3 = vcmp.eq.s32.totalorder %v52_v12, 15  ;;  %vm2348_vm8 = vcmp.eq.s32.totalorder %v52_v12, 0 }
  0x25   :  { %vm2304_vm2 = vcmp.eq.s32.totalorder %v53_v11, 15  ;;  %vm2344_vm7 = vcmp.eq.s32.totalorder %v53_v11, 0 }
  0x26   :  { %1078 = vrot.lane.b32.xlu1 %v2217_v2, %s2146_s9  ;;  %1076 = vrot.lane.b32.xlu0 %v2222_v3, %s2146_s9 }
  0x2a   :  { %1109 = vrot.lane.b32.xlu1 %v2217_v2, %s2145_s8  ;;  %1107 = vrot.lane.b32.xlu0 %v2222_v3, %s2145_s8 }
  0x2e   :  { %172 = vrot.lane.b32.xlu1 %v2208_v1, %s2147_s15  ;;  %170 = vrot.lane.b32.xlu0 %v2199_v0, %s2147_s15 }
  0x32   :  { %1100 = vrot.lane.b32.xlu1 %v2217_v2, %s2147_s15  ;;  %1098 = vrot.lane.b32.xlu0 %v2222_v3, %s2147_s15 }
  0x36   :  { %136 = vrot.lane.b32.xlu1 %v2208_v1, %s2148_s0  ;;  %134 = vrot.lane.b32.xlu0 %v2199_v0, %s2148_s0 }
  0x3a   :  { %160 = vrot.lane.b32.xlu1 %v2208_v1, %s2149_s16  ;;  %158 = vrot.lane.b32.xlu0 %v2199_v0, %s2149_s16 }
  0x3e   :  { %1067 = vrot.lane.b32.xlu1 %v2217_v2, %s2148_s0  ;;  %1065 = vrot.lane.b32.xlu0 %v2222_v3, %s2148_s0 }
  0x42   :  { %1089 = vrot.lane.b32.xlu1 %v2217_v2, %s2149_s16  ;;  %1087 = vrot.lane.b32.xlu0 %v2222_v3, %s2149_s16 }
  0x46   :  { %111 = vrot.lane.b32.xlu1 %v2199_v0, %s2150_s17  ;;  %108 = vrot.lane.b32.xlu0 %v2208_v1, %s2150_s17 }
  0x4a   :  { %1048 = vrot.lane.b32.xlu1 %v2222_v3, %s2150_s17  ;;  %1045 = vrot.lane.b32.xlu0 %v2217_v2, %s2150_s17 }
  0x4e   :  { %85 = vrot.lane.b32.xlu1 %v2199_v0, %s2151_s18  ;;  %82 = vrot.lane.b32.xlu0 %v2208_v1, %s2151_s18 }
  0x52   :  { %1028 = vrot.lane.b32.xlu1 %v2222_v3, %s2151_s18  ;;  %1025 = vrot.lane.b32.xlu0 %v2217_v2, %s2151_s18 }
  0x56   :  { %121 = vrot.lane.b32.xlu1 %v2199_v0, %s2152_s19  ;;  %118 = vrot.lane.b32.xlu0 %v2208_v1, %s2152_s19 }
  0x5a   :  { %1057 = vrot.lane.b32.xlu1 %v2222_v3, %s2152_s19  ;;  %1054 = vrot.lane.b32.xlu0 %v2217_v2, %s2152_s19 }
  0x5e   :  { %101 = vrot.lane.b32.xlu1 %v2199_v0, %s2144_s29  ;;  %98 = vrot.lane.b32.xlu0 %v2208_v1, %s2144_s29 }
  0x62   :  { %1039 = vrot.lane.b32.xlu1 %v2222_v3, %s2144_s29  ;;  %1036 = vrot.lane.b32.xlu0 %v2217_v2, %s2144_s29 }
  0x66   :  { %75 = vrot.lane.b32.xlu1 %v2199_v0, %s2154_s20  ;;  %71 = vrot.lane.b32.xlu0 %v2208_v1, %s2154_s20 }
  0x6a   :  { %1019 = vrot.lane.b32.xlu1 %v2222_v3, %s2154_s20  ;;  %1015 = vrot.lane.b32.xlu0 %v2217_v2, %s2154_s20 }
  0x6e   :  { %194 = vperm.xlu1 %1976, %v60_v6   ;;  %199 = vperm.xlu0 %1975, %v61_v7  }
  0x90   :  { %v181_v13 = vpop.permute.xlu1 %180  ;;  %v147_v14 = vpop.permute.xlu0 %146 }
  0x94   :  { %v183_v17 = vpop.permute.xlu1 %182  ;;  %v149_v18 = vpop.permute.xlu0 %148 }
  0x95   :  { %v2313_v19 = vsel %vm150_vm0, %v149_v18, %v147_v14  ;;  %v189_v20 = vsel %vm184_vm1, %v183_v17, %v181_v13  ;;  %v2317_v21 = vsel %vm150_vm0, %v147_v14, %v149_v18  ;;  %v185_v22 = vsel %vm184_vm1, %v181_v13, %v183_v17 }
  0x96   :  { %v191_v23 = vsel %vm2304_vm2, %v2313_v19, %v189_v20  ;;  %v190_v24 = vsel %vm2308_vm3, %v2317_v21, %v185_v22 }
  0x97   :  { %223 = vmatprep.subr.mxu1 %v191_v23 }
  0x98   :  { %v1079_v25 = vpop.permute.xlu1 %1078  ;;  %224 = vmatpush1.msra.mxu1 %v190_v24  ;;  %v1077_v26 = vpop.permute.xlu0 %1076 }
  0x99   :  { %v2327_v29 = vsel %vm150_vm0, %v1079_v25, %v1077_v26  ;;  %v2331_v31 = vsel %vm150_vm0, %v1077_v26, %v1079_v25 }
  0x9c   :  { %v1110_v27 = vpop.permute.xlu1 %1109  ;;  %v1108_v28 = vpop.permute.xlu0 %1107 }
  0x9d   :  { %v1115_v30 = vsel %vm184_vm1, %v1110_v27, %v1108_v28  ;;  %v1111_v32 = vsel %vm184_vm1, %v1108_v28, %v1110_v27 }
  0x9e   :  { %v1117_v33 = vsel %vm2304_vm2, %v2327_v29, %v1115_v30  ;;  %v1116_v34 = vsel %vm2308_vm3, %v2331_v31, %v1111_v32 }
  0x9f   :  { %1132 = vmatprep.subr.mxu0 %v1117_v33 }
  0xa0   :  { %v173_v35 = vpop.permute.xlu1 %172  ;;  %1133 = vmatpush1.msra.mxu0 %v1116_v34  ;;  %v171_v36 = vpop.permute.xlu0 %170 }
  0xa1   :  { %v179_v37 = vsel %vm174_vm4, %v173_v35, %v171_v36  ;;  %v175_v38 = vsel %vm174_vm4, %v171_v36, %v173_v35 }
  0xa2   :  { %225 = vmatprep.subr.mxu1 %v179_v37 }
  0xa3   :  { %226 = vmatpush1.msra.mxu1 %v175_v38 }
  0xa4   :  { %v1101_v39 = vpop.permute.xlu1 %1100  ;;  %v1099_v40 = vpop.permute.xlu0 %1098 }
  0xa5   :  { %v1106_v41 = vsel %vm174_vm4, %v1101_v39, %v1099_v40  ;;  %v1102_v42 = vsel %vm174_vm4, %v1099_v40, %v1101_v39 }
  0xa6   :  { %1134 = vmatprep.subr.mxu0 %v1106_v41 }
  0xa7   :  { %1135 = vmatpush1.msra.mxu0 %v1102_v42 }
  0xa8   :  { %v137_v43 = vpop.permute.xlu1 %136  ;;  %v135_v44 = vpop.permute.xlu0 %134 }
  0xa9   :  { %v139_v49 = vsel %vm138_vm5, %v135_v44, %v137_v43  ;;  %v143_v50 = vsel %vm138_vm5, %v137_v43, %v135_v44 }
  0xac   :  { %v161_v47 = vpop.permute.xlu1 %160  ;;  %v159_v48 = vpop.permute.xlu0 %158 }
  0xad   :  { %v163_v51 = vsel %vm162_vm6, %v159_v48, %v161_v47  ;;  %v167_v52 = vsel %vm162_vm6, %v161_v47, %v159_v48 }
  0xae   :  { %v169_v53 = vsel %vm2344_vm7, %v167_v52, %v143_v50  ;;  %v168_v54 = vsel %vm2348_vm8, %v163_v51, %v139_v49 }
  0xaf   :  { %227 = vmatprep.subr.mxu1 %v169_v53 }
  0xb0   :  { %v1068_v55 = vpop.permute.xlu1 %1067  ;;  %228 = vmatpush1.msra.mxu1 %v168_v54  ;;  %v1066_v56 = vpop.permute.xlu0 %1065 }
  0xb1   :  { %v1069_v59 = vsel %vm138_vm5, %v1066_v56, %v1068_v55  ;;  %v1073_v60 = vsel %vm138_vm5, %v1068_v55, %v1066_v56  ;;  %v58_v56 = vld [vmem:[#allocation2] sm:$0xff] }
  0xb4   :  { %v1090_v57 = vpop.permute.xlu1 %1089  ;;  %v1088_v58 = vpop.permute.xlu0 %1087 }
  0xb5   :  { %v1091_v61 = vsel %vm162_vm6, %v1088_v58, %v1090_v57  ;;  %v1095_v62 = vsel %vm162_vm6, %v1090_v57, %v1088_v58 }
  0xb6   :  { %v1097_v63 = vsel %vm2344_vm7, %v1095_v62, %v1073_v60  ;;  %v1096_v5 = vsel %vm2348_vm8, %v1091_v61, %v1069_v59 }
  0xb7   :  { %1136 = vmatprep.subr.mxu0 %v1097_v63  ;;  %v59_v63 = vld [vmem:[#allocation2 + $0x8] sm:$0xff] }
  0xb8   :  { %v112_v6 = vpop.permute.xlu1 %111  ;;  %1137 = vmatpush1.msra.mxu0 %v1096_v5  ;;  %v109_v7 = vpop.permute.xlu0 %108 }
  0xb9   :  { %v114_v8 = vsel %vm113_vm9, %v112_v6, %v109_v7  ;;  %v117_v9 = vsel %vm113_vm9, %v109_v7, %v112_v6 }
  0xba   :  { %v157_v10 = vsel %vm2304_vm2, %v114_v8, %v2313_v19  ;;  %v156_v11 = vsel %vm2308_vm3, %v117_v9, %v2317_v21 }
  0xbb   :  { %229 = vmatprep.subr.mxu1 %v157_v10 }
  0xbc   :  { %v1049_v12 = vpop.permute.xlu1 %1048  ;;  %230 = vmatpush1.msra.mxu1 %v156_v11  ;;  %v1046_v13 = vpop.permute.xlu0 %1045 }
  0xbd   :  { %v1050_v14 = vsel %vm113_vm9, %v1049_v12, %v1046_v13  ;;  %v1053_v17 = vsel %vm113_vm9, %v1046_v13, %v1049_v12  ;;  %231 = vmatprep.subr.mxu1 %v2208_v1 }
  0xbe   :  { %v1086_v18 = vsel %vm2304_vm2, %v1050_v14, %v2327_v29  ;;  %v1085_v19 = vsel %vm2308_vm3, %v1053_v17, %v2331_v31  ;;  %232 = vmatpush1.msra.mxu1 %v2199_v0 }
  0xbf   :  { %1138 = vmatprep.subr.mxu0 %v1086_v18 }
  0xc0   :  { %v86_v20 = vpop.permute.xlu1 %85  ;;  %1139 = vmatpush1.msra.mxu0 %v1085_v19  ;;  %v83_v21 = vpop.permute.xlu0 %82 }
  0xc1   :  { %v88_v22 = vsel %vm87_vm10, %v86_v20, %v83_v21  ;;  %v91_v23 = vsel %vm87_vm10, %v83_v21, %v86_v20  ;;  %1140 = vmatprep.subr.mxu0 %v2217_v2 }
  0xc2   :  { %v145_v1 = vsel %vm2344_vm7, %v143_v50, %v88_v22  ;;  %v144_v24 = vsel %vm2348_vm8, %v139_v49, %v91_v23  ;;  %1141 = vmatpush1.msra.mxu0 %v2222_v3 }
  0xc3   :  { %233 = vmatprep.subr.mxu1 %v145_v1 }
  0xc4   :  { %v1029_v0 = vpop.permute.xlu1 %1028  ;;  %234 = vmatpush1.msra.mxu1 %v144_v24  ;;  %v1026_v25 = vpop.permute.xlu0 %1025 }
  0xc5   :  { %v1030_v26 = vsel %vm87_vm10, %v1029_v0, %v1026_v25  ;;  %v1033_v27 = vsel %vm87_vm10, %v1026_v25, %v1029_v0 }
  0xc6   :  { %v1075_v28 = vsel %vm2344_vm7, %v1073_v60, %v1030_v26  ;;  %v1074_v2 = vsel %vm2348_vm8, %v1069_v59, %v1033_v27 }
  0xc7   :  { %1142 = vmatprep.subr.mxu0 %v1075_v28 }
  0xc8   :  { %v122_v29 = vpop.permute.xlu1 %121  ;;  %1143 = vmatpush1.msra.mxu0 %v1074_v2  ;;  %v119_v30 = vpop.permute.xlu0 %118 }
  0xc9   :  { %v124_v3 = vsel %vm123_vm11, %v122_v29, %v119_v30  ;;  %v127_v31 = vsel %vm123_vm11, %v119_v30, %v122_v29 }
  0xca   :  { %v133_v32 = vsel %vm2304_vm2, %v124_v3, %v114_v8  ;;  %v132_v33 = vsel %vm2308_vm3, %v127_v31, %v117_v9 }
  0xcb   :  { %235 = vmatprep.subr.mxu1 %v133_v32 }
  0xcc   :  { %v1058_v34 = vpop.permute.xlu1 %1057  ;;  %236 = vmatpush1.msra.mxu1 %v132_v33  ;;  %v1055_v35 = vpop.permute.xlu0 %1054 }
  0xcd   :  { %v1059_v36 = vsel %vm123_vm11, %v1058_v34, %v1055_v35  ;;  %v1062_v37 = vsel %vm123_vm11, %v1055_v35, %v1058_v34 }
  0xce   :  { %v1064_v38 = vsel %vm2304_vm2, %v1059_v36, %v1050_v14  ;;  %v1063_v39 = vsel %vm2308_vm3, %v1062_v37, %v1053_v17 }
  0xcf   :  { %1144 = vmatprep.subr.mxu0 %v1064_v38 }
  0xd0   :  { %v102_v40 = vpop.permute.xlu1 %101  ;;  %1145 = vmatpush1.msra.mxu0 %v1063_v39  ;;  %v99_v41 = vpop.permute.xlu0 %98 }
  0xd1   :  { %v104_v42 = vsel %vm103_vm12, %v102_v40, %v99_v41  ;;  %v107_v43 = vsel %vm103_vm12, %v99_v41, %v102_v40 }
  0xd2   :  { %237 = vmatprep.subr.mxu1 %v104_v42 }
  0xd3   :  { %238 = vmatpush1.msra.mxu1 %v107_v43 }
  0xd4   :  { %v1040_v44 = vpop.permute.xlu1 %1039  ;;  %v1037_v47 = vpop.permute.xlu0 %1036 }
  0xd5   :  { %v1041_v48 = vsel %vm103_vm12, %v1040_v44, %v1037_v47  ;;  %v1044_v49 = vsel %vm103_vm12, %v1037_v47, %v1040_v44 }
  0xd6   :  { %1146 = vmatprep.subr.mxu0 %v1041_v48 }
  0xd7   :  { %1147 = vmatpush1.msra.mxu0 %v1044_v49 }
  0xd8   :  { %v76_v50 = vpop.permute.xlu1 %75  ;;  %v72_v51 = vpop.permute.xlu0 %71 }
  0xd9   :  { %v78_v52 = vsel %vm77_vm13, %v76_v50, %v72_v51  ;;  %v81_v53 = vsel %vm77_vm13, %v72_v51, %v76_v50 }
  0xda   :  { %v97_v54 = vsel %vm2344_vm7, %v88_v22, %v78_v52  ;;  %v96_v55 = vsel %vm2348_vm8, %v91_v23, %v81_v53 }
  0xdb   :  { %239 = vmatprep.subr.mxu1 %v97_v54 }
  0xdc   :  { %v1020_v57 = vpop.permute.xlu1 %1019  ;;  %240 = vmatpush1.msra.mxu1 %v96_v55  ;;  %v1016_v58 = vpop.permute.xlu0 %1015 }
  0xdd   :  { %v1021_v59 = vsel %vm77_vm13, %v1020_v57, %v1016_v58  ;;  %v1024_v60 = vsel %vm77_vm13, %v1016_v58, %v1020_v57  ;;  %1923 = vmatmul.mubr.msk.f32.vlgmr.msra.gmra.mxu1 %vm202_vm14, %v58_v56 }
  0xde   :  { %v1035_v61 = vsel %vm2344_vm7, %v1030_v26, %v1021_v59  ;;  %279 = vmatprep.mubr.f32.mxu1 %v3780_v4  ;;  %v1034_v62 = vsel %vm2348_vm8, %v1033_v27, %v1024_v60 }
  0xdf   :  { %1148 = vmatprep.subr.mxu0 %v1035_v61 }
  0xe0   :  { %1149 = vmatpush1.msra.mxu0 %v1034_v62 }
  0xe1   :  { %1924 = vmatmul.mubr.msk.f32.gmra.mxu1 %vm202_vm14, %v59_v63  ;;  %1941 = vmatmul.mubr.msk.f32.vlgmr.msra.gmra.mxu0 %vm202_vm14, %v58_v56 }
  0xe2   :  { %1188 = vmatprep.mubr.f32.mxu0 %v3780_v4 }
  0xe5   :  { %1942 = vmatmul.mubr.msk.f32.gmra.mxu0 %vm202_vm14, %v59_v63 }
  0xe9   :  { %v195_v5 = vpop.permute.xlu1 %194  ;;  %v2454_v22 = vpop.permute.xlu0 %199 }
 0x19d   :  { %v275_v6 = vpop.f32.mrf.mxu1 }
 0x19e   :  { %v2434_v7 = vadd.f32 %v275_v6, %v195_v5 }
 0x19f   :  { %v277_v8 = vpop.f32.mrf.mxu1 }
 0x1a0   :  { %v2437_v9 = vmul.f32 0.70710677, %v2434_v7  ;;  %v2439_v10 = vadd.f32 %v277_v8, %v195_v5 }
 0x1a1   :  { %v1184_v11 = vpop.f32.mrf.mxu0  ;;  %v281_v23 = vpop.f32.mrf.mxu1 }
 0x1a2   :  { %v294_v12 = vand.u32 2147483647, %v2437_v9  ;;  %v2443_v13 = vmul.f32 0.70710677, %v2439_v10  ;;  %v2445_v14 = vadd.f32 %v1184_v11, %v195_v5  ;;  %v2458_v26 = vadd.f32 %v281_v23, %v2454_v22 }
 0x1a3   :  { %v1186_v24 = vpop.f32.mrf.mxu0  ;;  %vm394_vm15 = vcmp.lt.f32.partialorder %v2437_v9, 0.0 }
 0x1a4   :  { %v298_v17 = vmul.f32 0.3275911, %v294_v12  ;;  %v2448_v18 = vand.u32 2147483647, %v2443_v13  ;;  %v2451_v19 = vmul.f32 0.70710677, %v2445_v14  ;;  %v2460_v27 = vadd.f32 %v1186_v24, %v195_v5 }
 0x1a5   :  { %v1190_v2 = vpop.f32.mrf.mxu0  ;;  %v2466_v30 = vmul.f32 0.70710677, %v2458_v26  ;;  %v370_v47 = vsub.f32 0.0, %v294_v12 }
 0x1a6   :  { %v302_v20 = vadd.f32 1.0, %v298_v17  ;;  %v299_v21 = vmul.f32 0.3275911, %v2448_v18  ;;  %v1203_v1 = vand.u32 2147483647, %v2451_v19  ;;  %v2472_v31 = vadd.f32 %v1190_v2, %v2454_v22 }
 0x1a7   :  { %v2463_v29 = vmul.f32 0.70710677, %v2460_v27  ;;  %v2476_v33 = vand.u32 2147483647, %v2466_v30  ;;  %v374_v56 = vmul.f32 %v370_v47, %v294_v12  ;;  %vm1303_vm14 = vcmp.lt.f32.partialorder %v2451_v19, 0.0 }
 0x1a8   :  { %1977 = vrcp.f32 %v302_v20  ;;  %v303_v0 = vadd.f32 1.0, %v299_v21  ;;  %v1207_v25 = vmul.f32 0.3275911, %v1203_v1  ;;  %v2479_v34 = vmul.f32 0.70710677, %v2472_v31 }
 0x1a9   :  { %v2469_v3 = vand.u32 2147483647, %v2463_v29  ;;  %v300_v38 = vmul.f32 0.3275911, %v2476_v33  ;;  %v1279_v60 = vsub.f32 0.0, %v1203_v1 }
 0x1aa   :  { %1979 = vrcp.f32 %v303_v0  ;;  %v1211_v28 = vadd.f32 1.0, %v1207_v25  ;;  %v2483_v39 = vand.u32 2147483647, %v2479_v34  ;;  %v378_v8 = vmul.f32 1.442695, %v374_v56 }
 0x1ab   :  { %v1208_v32 = vmul.f32 0.3275911, %v2469_v3  ;;  %v2485_v48 = vadd.f32 1.0, %v300_v38 }
 0x1ac   :  { %1981 = vrcp.f32 %v1211_v28  ;;  %v1209_v49 = vmul.f32 0.3275911, %v2483_v39 }
 0x1ad   :  { %v1212_v35 = vadd.f32 1.0, %v1208_v32 }
 0x1ae   :  { %v2489_v57 = vadd.f32 1.0, %v1209_v49  ;;  %v1192_v49 = vpop.f32.mrf.mxu0 }
 0x1af   :  { %1983 = vrcp.f32 %v1212_v35  ;;  %v2505_v56 = vadd.f32 %v1192_v49, %v2454_v22 }
 0x1b0   :  { %1985 = vrcp.f32 %v2485_v48 }
 0x1b1   :  { %1987 = vrcp.f32 %v2489_v57 }
 0x1b2   :  { %1989 = vpow2.f32 %v378_v8 }
 0x1b5   :  { %v1978_v36 = vpop.eup %1977 }
 0x1b6   :  { %v310_v37 = vmul.f32 %v1978_v36, %v302_v20 }
 0x1b7   :  { %v1980_v40 = vpop.eup %1979 }
 0x1b8   :  { %v314_v41 = vsub.f32 2.0, %v310_v37  ;;  %v311_v42 = vmul.f32 %v1980_v40, %v303_v0 }
 0x1b9   :  { %v1982_v43 = vpop.eup %1981 }
 0x1ba   :  { %v318_v44 = vmul.f32 %v1978_v36, %v314_v41  ;;  %v315_v50 = vsub.f32 2.0, %v311_v42  ;;  %v1219_v51 = vmul.f32 %v1982_v43, %v1211_v28 }
 0x1bc   :  { %v322_v52 = vmul.f32 %v318_v44, %v302_v20  ;;  %v319_v53 = vmul.f32 %v1980_v40, %v315_v50  ;;  %v1223_v54 = vsub.f32 2.0, %v1219_v51  ;;  %v1984_v5 = vpop.eup %1983  ;;  %v1283_v20 = vmul.f32 %v1279_v60, %v1203_v1 }
 0x1bd   :  { %v1220_v12 = vmul.f32 %v1984_v5, %v1212_v35  ;;  %v1986_v1 = vpop.eup %1985 }
 0x1be   :  { %v326_v55 = vsub.f32 2.0, %v322_v52  ;;  %v323_v58 = vmul.f32 %v319_v53, %v303_v0  ;;  %v1227_v59 = vmul.f32 %v1982_v43, %v1223_v54  ;;  %v283_v0 = vpop.f32.mrf.mxu1 }
 0x1bf   :  { %v1224_v24 = vsub.f32 2.0, %v1220_v12  ;;  %v2496_v40 = vadd.f32 %v283_v0, %v2454_v22  ;;  %v2515_v22 = vmul.f32 0.70710677, %v2505_v56 }
 0x1c0   :  { %v330_v61 = vmul.f32 %v326_v55, %v318_v44  ;;  %v327_v62 = vsub.f32 2.0, %v323_v58  ;;  %v1231_v63 = vmul.f32 %v1227_v59, %v1211_v28  ;;  %v1287_v28 = vmul.f32 1.442695, %v1283_v20 }
 0x1c1   :  { %v1228_v36 = vmul.f32 %v1984_v5, %v1224_v24  ;;  %v2499_v52 = vmul.f32 0.70710677, %v2496_v40  ;;  %v312_v55 = vmul.f32 %v1986_v1, %v2485_v48 }
 0x1c2   :  { %v334_v6 = vmul.f32 1.0614054, %v330_v61  ;;  %v2492_v11 = vmul.f32 %v327_v62, %v319_v53  ;;  %v1235_v17 = vsub.f32 2.0, %v1231_v63  ;;  %1991 = vpow2.f32 %v1287_v28 }
 0x1c3   :  { %v1232_v41 = vmul.f32 %v1228_v36, %v1212_v35  ;;  %v1988_v35 = vpop.eup %1987  ;;  %v371_v63 = vsub.f32 0.0, %v2448_v18  ;;  %v316_v20 = vsub.f32 2.0, %v312_v55 }
 0x1c4   :  { %v338_v21 = vadd.f32 -1.4531521, %v334_v6  ;;  %v1239_v23 = vmul.f32 %v1235_v17, %v1227_v59  ;;  %v335_v2 = vmul.f32 1.0614054, %v2492_v11  ;;  %v2511_v6 = vand.u32 2147483647, %v2499_v52 }
 0x1c5   :  { %v1236_v47 = vsub.f32 2.0, %v1232_v41  ;;  %v1221_v12 = vmul.f32 %v1988_v35, %v2489_v57 }
 0x1c6   :  { %v342_v25 = vmul.f32 %v338_v21, %v330_v61  ;;  %v1243_v32 = vmul.f32 1.0614054, %v1239_v23  ;;  %v339_v43 = vadd.f32 -1.4531521, %v335_v2  ;;  %v1990_v21 = vpop.eup %1989 }
 0x1c7   :  { %v2501_v53 = vmul.f32 %v1236_v47, %v1228_v36  ;;  %v301_v36 = vmul.f32 0.3275911, %v2511_v6  ;;  %v1225_v41 = vsub.f32 2.0, %v1221_v12 }
 0x1c8   :  { %v346_v37 = vadd.f32 1.4214138, %v342_v25  ;;  %v1247_v38 = vadd.f32 -1.4531521, %v1243_v32  ;;  %v343_v58 = vmul.f32 %v339_v43, %v2492_v11  ;;  %v375_v32 = vmul.f32 %v371_v63, %v2448_v18 }
 0x1c9   :  { %v1244_v60 = vmul.f32 1.0614054, %v2501_v53  ;;  %v2527_v55 = vadd.f32 1.0, %v301_v36 }
 0x1ca   :  { %v350_v42 = vmul.f32 %v346_v37, %v330_v61  ;;  %v1251_v44 = vmul.f32 %v1247_v38, %v1239_v23  ;;  %v347_v24 = vadd.f32 1.4214138, %v343_v58  ;;  %v1280_v37 = vsub.f32 0.0, %v2469_v3 }
 0x1cb   :  { %v1248_v8 = vadd.f32 -1.4531521, %v1244_v60  ;;  %v320_v38 = vmul.f32 %v1986_v1, %v316_v20  ;;  %v1229_v60 = vmul.f32 %v1988_v35, %v1225_v41 }
 0x1cc   :  { %v354_v50 = vadd.f32 -0.28449672, %v350_v42  ;;  %v1255_v51 = vadd.f32 1.4214138, %v1251_v44  ;;  %v2522_v42 = vand.u32 2147483647, %v2515_v22  ;;  %v351_v43 = vmul.f32 %v347_v24, %v2492_v11 }
 0x1cd   :  { %v1252_v0 = vmul.f32 %v1248_v8, %v2501_v53  ;;  %v1284_v1 = vmul.f32 %v1280_v37, %v2469_v3  ;;  %v1195_v24 = vmul.f32 0.5, %v2445_v14 }
 0x1ce   :  { %v358_v54 = vmul.f32 %v354_v50, %v330_v61  ;;  %v1259_v59 = vmul.f32 %v1255_v51, %v1239_v23  ;;  %v286_v50 = vmul.f32 0.5, %v2434_v7  ;;  %v380_v51 = vmul.f32 1.442695, %v375_v32 }
 0x1cf   :  { %v1256_v47 = vadd.f32 1.4214138, %v1252_v0  ;;  %v1992_v49 = vpop.eup %1991  ;;  %v355_v63 = vadd.f32 -0.28449672, %v351_v43 }
 0x1d0   :  { %v362_v62 = vadd.f32 0.2548296, %v358_v54  ;;  %v1263_v5 = vadd.f32 -0.28449672, %v1259_v59  ;;  %v324_v59 = vmul.f32 %v320_v38, %v2485_v48  ;;  %1993 = vpow2.f32 %v380_v51 }
 0x1d1   :  { %v1260_v7 = vmul.f32 %v1256_v47, %v2501_v53  ;;  %1995 = vrcp.f32 %v2527_v55  ;;  %v359_v48 = vmul.f32 %v355_v63, %v2492_v11 }
 0x1d2   :  { %v366_v17 = vmul.f32 %v362_v62, %v330_v61  ;;  %v1267_v25 = vmul.f32 %v1263_v5, %v1239_v23  ;;  %v1210_v62 = vmul.f32 0.3275911, %v2522_v42  ;;  %v328_v20 = vsub.f32 2.0, %v324_v59 }
 0x1d3   :  { %v1264_v12 = vadd.f32 -0.28449672, %v1260_v7  ;;  %v363_v0 = vadd.f32 0.2548296, %v359_v48 }
 0x1d4   :  { %v386_v2 = vmul.f32 %v1990_v21, %v366_v17  ;;  %v1271_v28 = vadd.f32 0.2548296, %v1267_v25  ;;  %v1289_v17 = vmul.f32 1.442695, %v1284_v1  ;;  %v2537_v3 = vadd.f32 1.0, %v1210_v62 }
 0x1d5   :  { %v1233_v21 = vmul.f32 %v1229_v60, %v2489_v57  ;;  %v1268_v32 = vmul.f32 %v1264_v12, %v2501_v53  ;;  %v367_v14 = vmul.f32 %v363_v0, %v2492_v11 }
 0x1d6   :  { %v390_v61 = vsub.f32 1.0, %v386_v2  ;;  %v1275_v44 = vmul.f32 %v1271_v28, %v1239_v23  ;;  %1997 = vpow2.f32 %v1289_v17  ;;  %v2549_v2 = vmul.f32 %v328_v20, %v320_v38 }
 0x1d7   :  { %1999 = vrcp.f32 %v2537_v3  ;;  %v1237_v57 = vsub.f32 2.0, %v1233_v21  ;;  %v1272_v36 = vadd.f32 0.2548296, %v1268_v32 }
 0x1d8   :  { %v398_v18 = vsub.f32 0.0, %v390_v61  ;;  %v1295_v54 = vmul.f32 %v1992_v49, %v1275_v44  ;;  %v336_v28 = vmul.f32 1.0614054, %v2549_v2  ;;  %v372_v49 = vsub.f32 0.0, %v2476_v33 }
 0x1d9   :  { %v2558_v37 = vmul.f32 %v1237_v57, %v1229_v60  ;;  %v1276_v44 = vmul.f32 %v1272_v36, %v2501_v53  ;;  %v1281_v60 = vsub.f32 0.0, %v2483_v39 }
 0x1da   :  { %v402_v58 = vsel %vm394_vm15, %v398_v18, %v390_v61  ;;  %v1299_v5 = vsub.f32 1.0, %v1295_v54  ;;  %v340_v43 = vadd.f32 -1.4531521, %v336_v28  ;;  %v376_v53 = vmul.f32 %v372_v49, %v2476_v33 }
 0x1db   :  { %v406_v23 = vadd.f32 1.0, %v402_v58  ;;  %v1245_v47 = vmul.f32 1.0614054, %v2558_v37  ;;  %vm395_vm15 = vcmp.lt.f32.partialorder %v2443_v13, 0.0  ;;  %v1285_v17 = vmul.f32 %v1281_v60, %v2483_v39 }
 0x1dc   :  { %v1307_v9 = vsub.f32 0.0, %v1299_v5  ;;  %v344_v54 = vmul.f32 %v340_v43, %v2549_v2 }
 0x1dd   :  { %v2533_v8 = vmul.f32 %v406_v23, %v286_v50  ;;  %v1994_v61 = vpop.eup %1993  ;;  %v1249_v58 = vadd.f32 -1.4531521, %v1245_v47 }
 0x1de   :  { %v1311_v35 = vsel %vm1303_vm14, %v1307_v9, %v1299_v5  ;;  %v1996_v38 = vpop.eup %1995  ;;  %v387_v41 = vmul.f32 %v1994_v61, %v367_v14  ;;  %v348_v63 = vadd.f32 1.4214138, %v344_v54  ;;  %v382_v9 = vmul.f32 1.442695, %v376_v53 }
 0x1df   :  { %482 = vrot.lane.b32.xlu0 %v2533_v8, %s2150_s17  ;;  %582 = vrot.lane.b32.xlu1 %v2533_v8, %s2147_s15  ;;  %v1315_v19 = vadd.f32 1.0, %v1311_v35  ;;  %v313_v50 = vmul.f32 %v1996_v38, %v2527_v55  ;;  %v1253_v7 = vmul.f32 %v1249_v58, %v2558_v37  ;;  %vm1304_vm14 = vcmp.lt.f32.partialorder %v2463_v29, 0.0 }
 0x1e0   :  { %v391_v51 = vsub.f32 1.0, %v387_v41  ;;  %v352_v35 = vmul.f32 %v348_v63, %v2549_v2  ;;  %2001 = vpow2.f32 %v382_v9  ;;  %v287_v14 = vmul.f32 0.5, %v2439_v10 }
 0x1e1   :  { %v2546_v25 = vmul.f32 %v1315_v19, %v1195_v24  ;;  %v317_v59 = vsub.f32 2.0, %v313_v50  ;;  %v1257_v21 = vadd.f32 1.4214138, %v1253_v7  ;;  %v1291_v19 = vmul.f32 1.442695, %v1285_v17 }
 0x1e2   :  { %v399_v23 = vsub.f32 0.0, %v391_v51  ;;  %v356_v39 = vadd.f32 -0.28449672, %v352_v35  ;;  %v1196_v41 = vmul.f32 0.5, %v2460_v27  ;;  %v1282_v63 = vsub.f32 0.0, %v2522_v42 }
 0x1e3   :  { %1391 = vrot.lane.b32.xlu0 %v2546_v25, %s2150_s17  ;;  %1491 = vrot.lane.b32.xlu1 %v2546_v25, %s2147_s15  ;;  %v1998_v11 = vpop.eup %1997  ;;  %v321_v33 = vmul.f32 %v1996_v38, %v317_v59  ;;  %v1261_v32 = vmul.f32 %v1257_v21, %v2558_v37  ;;  %2003 = vpow2.f32 %v1291_v19 }
 0x1e4   :  { %v2000_v18 = vpop.eup %1999  ;;  %v1296_v1 = vmul.f32 %v1998_v11, %v1276_v44  ;;  %v403_v48 = vsel %vm395_vm15, %v399_v23, %v391_v51  ;;  %vm396_vm15 = vcmp.lt.f32.partialorder %v2466_v30, 0.0  ;;  %v288_v30 = vmul.f32 0.5, %v2458_v26 }
 0x1e5   :  { %v1222_v62 = vmul.f32 %v2000_v18, %v2537_v3  ;;  %v407_v24 = vadd.f32 1.0, %v403_v48  ;;  %v325_v13 = vmul.f32 %v321_v33, %v2527_v55  ;;  %v360_v55 = vmul.f32 %v356_v39, %v2549_v2 }
 0x1e6   :  { %v1300_v5 = vsub.f32 1.0, %v1296_v1  ;;  %v1265_v61 = vadd.f32 -0.28449672, %v1261_v32  ;;  %v1197_v26 = vmul.f32 0.5, %v2472_v31 }
 0x1e7   :  { %442 = vrot.lane.b32.xlu0 %v2533_v8, %s2151_s18  ;;  %516 = vrot.lane.b32.xlu1 %v2533_v8, %s2148_s0  ;;  %v1226_v20 = vsub.f32 2.0, %v1222_v62  ;;  %v2600_v28 = vmul.f32 %v407_v24, %v287_v14  ;;  %v329_v36 = vsub.f32 2.0, %v325_v13  ;;  %v364_v43 = vadd.f32 0.2548296, %v360_v55 }
 0x1e8   :  { %v1308_v12 = vsub.f32 0.0, %v1300_v5  ;;  %v1269_v47 = vmul.f32 %v1265_v61, %v2558_v37 }
 0x1e9   :  { %v1230_v57 = vmul.f32 %v2000_v18, %v1226_v20  ;;  %v2611_v44 = vmul.f32 %v329_v36, %v321_v33  ;;  %v1286_v20 = vmul.f32 %v1282_v63, %v2522_v42 }
 0x1ea   :  { %v1312_v0 = vsel %vm1304_vm14, %v1308_v12, %v1300_v5  ;;  %v1273_v50 = vadd.f32 0.2548296, %v1269_v47  ;;  %vm1305_vm14 = vcmp.lt.f32.partialorder %v2479_v34, 0.0 }
 0x1eb   :  { %1351 = vrot.lane.b32.xlu0 %v2546_v25, %s2151_s18  ;;  %560 = vrot.lane.b32.xlu1 %v2533_v8, %s2149_s16  ;;  %v1316_v29 = vadd.f32 1.0, %v1312_v0  ;;  %v1234_v38 = vmul.f32 %v1230_v57, %v2537_v3  ;;  %v368_v3 = vmul.f32 %v364_v43, %v2549_v2  ;;  %v337_v49 = vmul.f32 1.0614054, %v2611_v44 }
 0x1ec   :  { %v1277_v58 = vmul.f32 %v1273_v50, %v2558_v37  ;;  %v373_v2 = vsub.f32 0.0, %v2511_v6  ;;  %v1293_v19 = vmul.f32 1.442695, %v1286_v20 }
 0x1ed   :  { %v2609_v10 = vmul.f32 %v1316_v29, %v1196_v41  ;;  %v1238_v11 = vsub.f32 2.0, %v1234_v38  ;;  %v2002_v27 = vpop.eup %2001  ;;  %v341_v1 = vadd.f32 -1.4531521, %v337_v49  ;;  %v289_v49 = vmul.f32 0.5, %v2496_v40 }
 0x1ee   :  { %v388_v54 = vmul.f32 %v2002_v27, %v368_v3  ;;  %v377_v37 = vmul.f32 %v373_v2, %v2511_v6 }
 0x1ef   :  { %500 = vrot.lane.b32.xlu0 %v2533_v8, %s2152_s19  ;;  %1425 = vrot.lane.b32.xlu1 %v2546_v25, %s2148_s0  ;;  %v2620_v18 = vmul.f32 %v1238_v11, %v1230_v57  ;;  %v345_v60 = vmul.f32 %v341_v1, %v2611_v44 }
 0x1f0   :  { %v2004_v51 = vpop.eup %2003  ;;  %v392_v59 = vsub.f32 1.0, %v388_v54  ;;  %v384_v17 = vmul.f32 1.442695, %v377_v37 }
 0x1f1   :  { %v1246_v53 = vmul.f32 1.0614054, %v2620_v18  ;;  %v1297_v62 = vmul.f32 %v2004_v51, %v1277_v58  ;;  %v349_v7 = vadd.f32 1.4214138, %v345_v60 }
 0x1f2   :  { %v400_v5 = vsub.f32 0.0, %v392_v59  ;;  %2005 = vpow2.f32 %v384_v17  ;;  %v63_v17 = vld [vmem:[#allocation5 + $0x8] sm:$0xff] }
 0x1f3   :  { %1409 = vrot.lane.b32.xlu0 %v2546_v25, %s2152_s19  ;;  %1469 = vrot.lane.b32.xlu1 %v2546_v25, %s2149_s16  ;;  %v1250_v23 = vadd.f32 -1.4531521, %v1246_v53  ;;  %v1301_v9 = vsub.f32 1.0, %v1297_v62  ;;  %v353_v6 = vmul.f32 %v349_v7, %v2611_v44  ;;  %2007 = vpow2.f32 %v1293_v19 }
 0x1f4   :  { %v404_v48 = vsel %vm396_vm15, %v400_v5, %v392_v59  ;;  %vm397_vm15 = vcmp.lt.f32.partialorder %v2499_v52, 0.0  ;;  %1925 = vmatprep.mubr.msk.f32.mxu1 %vm103_vm12, %v63_v17  ;;  %1943 = vmatprep.mubr.msk.f32.mxu0 %vm103_vm12, %v63_v17 }
 0x1f5   :  { %v1254_v33 = vmul.f32 %v1250_v23, %v2620_v18  ;;  %v1309_v35 = vsub.f32 0.0, %v1301_v9  ;;  %v408_v21 = vadd.f32 1.0, %v404_v48  ;;  %v357_v24 = vadd.f32 -0.28449672, %v353_v6 }
 0x1f7   :  { %464 = vrot.lane.b32.xlu0 %v2533_v8, %s2144_s29  ;;  %538 = vrot.lane.b32.xlu1 %v2533_v8, %s2146_s9  ;;  %v1258_v12 = vadd.f32 1.4214138, %v1254_v33  ;;  %v1313_v13 = vsel %vm1305_vm14, %v1309_v35, %v1301_v9  ;;  %v2659_v34 = vmul.f32 %v408_v21, %v288_v30  ;;  %v361_v0 = vmul.f32 %v357_v24, %v2611_v44 }
 0x1f8   :  { %v1317_v39 = vadd.f32 1.0, %v1313_v13  ;;  %vm1306_vm14 = vcmp.lt.f32.partialorder %v2515_v22, 0.0  ;;  %v1198_v22 = vmul.f32 0.5, %v2505_v56 }
 0x1f9   :  { %v1262_v42 = vmul.f32 %v1258_v12, %v2620_v18  ;;  %v365_v14 = vadd.f32 0.2548296, %v361_v0 }
 0x1fa   :  { %v2667_v57 = vmul.f32 %v1317_v39, %v1197_v26 }
 0x1fb   :  { %1373 = vrot.lane.b32.xlu0 %v2546_v25, %s2144_s29  ;;  %1447 = vrot.lane.b32.xlu1 %v2546_v25, %s2146_s9  ;;  %v1266_v32 = vadd.f32 -0.28449672, %v1262_v42  ;;  %v369_v31 = vmul.f32 %v365_v14, %v2611_v44 }
 0x1fd   :  { %v1270_v29 = vmul.f32 %v1266_v32, %v2620_v18 }
 0x1ff   :  { %584 = vrot.lane.b32.xlu0 %v2600_v28, %s2147_s15  ;;  %476 = vrot.lane.b32.xlu1 %v2600_v28, %s2150_s17  ;;  %v2006_v55 = vpop.eup %2005  ;;  %v1274_v36 = vadd.f32 0.2548296, %v1270_v29 }
 0x200   :  { %v389_v61 = vmul.f32 %v2006_v55, %v369_v31  ;;  %v2008_v41 = vpop.eup %2007 }
 0x201   :  { %v1278_v38 = vmul.f32 %v1274_v36, %v2620_v18 }
 0x202   :  { %v393_v43 = vsub.f32 1.0, %v389_v61  ;;  %v67_v61 = vld [vmem:[%s3778_s4 + $0x8] sm:$0xff] }
 0x203   :  { %1493 = vrot.lane.b32.xlu0 %v2609_v10, %s2147_s15  ;;  %1385 = vrot.lane.b32.xlu1 %v2609_v10, %s2150_s17  ;;  %v1298_v47 = vmul.f32 %v2008_v41, %v1278_v38  ;;  %v66_v38 = vld [vmem:[%s3778_s4] sm:$0xff]  ;;  %s2156_s4 = smov [#allocation7]  }
 0x204   :  { %v401_v44 = vsub.f32 0.0, %v393_v43  ;;  %s1910_s30 = sshll.u32 %s2156_s4, 4  ;;  %s1911_s30 = int_to_ptr.vmem [resolvable:$true] %s1910_s30 }
 0x205   :  { %v1302_v11 = vsub.f32 1.0, %v1298_v47  ;;  %s2113_s6 = scalar_lea.vmem %s1911_s30, 1024  ;;  %p2118_p11 = scmp.lt.s32.totalorder %s1911_s30, %s1911_s30 }
 0x206   :  { %v405_v27 = vsel %vm397_vm15, %v401_v44, %v393_v43  ;;  %p2114_p10 = scmp.ne.s32.totalorder %s1911_s30, %s2113_s6  ;;  %p2119_p12 = scmp.lt.s32.totalorder %s2113_s6, %s2113_s6 }
 0x207   :  { %518 = vrot.lane.b32.xlu0 %v2600_v28, %s2148_s0  ;;  %436 = vrot.lane.b32.xlu1 %v2600_v28, %s2151_s18  ;;  %v1310_v3 = vsub.f32 0.0, %v1302_v11  ;;  %v409_v50 = vadd.f32 1.0, %v405_v27 }
 0x208   :  { %p2120_p13 = por %p2119_p12, %p2118_p11 }
 0x209   :  { %v1314_v52 = vsel %vm1306_vm14, %v1310_v3, %v1302_v11  ;;  %v2703_v18 = vmul.f32 %v409_v50, %v289_v49 }
 0x20a   :  { %v1318_v51 = vadd.f32 1.0, %v1314_v52  ;;  %p2121_p0 = pnand %p2120_p13, %p2114_p10 }
 0x20b   :  { %562 = vrot.lane.b32.xlu0 %v2600_v28, %s2149_s16  ;;  %1345 = vrot.lane.b32.xlu1 %v2609_v10, %s2151_s18 }
 0x20c   :  { %v2710_v40 = vmul.f32 %v1318_v51, %v1198_v22 }
 0x20f   :  { %1427 = vrot.lane.b32.xlu0 %v2609_v10, %s2148_s0  ;;  %494 = vrot.lane.b32.xlu1 %v2600_v28, %s2152_s19 }
 0x213   :  { %1471 = vrot.lane.b32.xlu0 %v2609_v10, %s2149_s16  ;;  %1403 = vrot.lane.b32.xlu1 %v2609_v10, %s2152_s19 }
 0x217   :  { %540 = vrot.lane.b32.xlu0 %v2600_v28, %s2146_s9  ;;  %458 = vrot.lane.b32.xlu1 %v2600_v28, %s2144_s29 }
 0x21b   :  { %1449 = vrot.lane.b32.xlu0 %v2609_v10, %s2146_s9  ;;  %1367 = vrot.lane.b32.xlu1 %v2609_v10, %s2144_s29 }
 0x21f   :  { %484 = vrot.lane.b32.xlu0 %v2659_v34, %s2150_s17  ;;  %586 = vrot.lane.b32.xlu1 %v2659_v34, %s2147_s15 }
 0x223   :  { %1393 = vrot.lane.b32.xlu0 %v2667_v57, %s2150_s17  ;;  %1495 = vrot.lane.b32.xlu1 %v2667_v57, %s2147_s15 }
 0x227   :  { %444 = vrot.lane.b32.xlu0 %v2659_v34, %s2151_s18  ;;  %520 = vrot.lane.b32.xlu1 %v2659_v34, %s2148_s0 }
 0x22b   :  { %1353 = vrot.lane.b32.xlu0 %v2667_v57, %s2151_s18  ;;  %564 = vrot.lane.b32.xlu1 %v2659_v34, %s2149_s16 }
 0x22f   :  { %502 = vrot.lane.b32.xlu0 %v2659_v34, %s2152_s19  ;;  %1429 = vrot.lane.b32.xlu1 %v2667_v57, %s2148_s0 }
 0x233   :  { %1411 = vrot.lane.b32.xlu0 %v2667_v57, %s2152_s19  ;;  %1473 = vrot.lane.b32.xlu1 %v2667_v57, %s2149_s16 }
 0x237   :  { %466 = vrot.lane.b32.xlu0 %v2659_v34, %s2144_s29  ;;  %542 = vrot.lane.b32.xlu1 %v2659_v34, %s2146_s9 }
 0x23b   :  { %1375 = vrot.lane.b32.xlu0 %v2667_v57, %s2144_s29  ;;  %1451 = vrot.lane.b32.xlu1 %v2667_v57, %s2146_s9 }
 0x23f   :  { %426 = vrot.lane.b32.xlu0 %v2659_v34, %s2154_s20  ;;  %478 = vrot.lane.b32.xlu1 %v2703_v18, %s2150_s17 }
 0x243   :  { %588 = vrot.lane.b32.xlu0 %v2703_v18, %s2147_s15  ;;  %1387 = vrot.lane.b32.xlu1 %v2710_v40, %s2150_s17 }
 0x247   :  { %1497 = vrot.lane.b32.xlu0 %v2710_v40, %s2147_s15  ;;  %416 = vrot.lane.b32.xlu1 %v2600_v28, %s2154_s20 }
 0x24b   :  { %522 = vrot.lane.b32.xlu0 %v2703_v18, %s2148_s0  ;;  %1325 = vrot.lane.b32.xlu1 %v2609_v10, %s2154_s20 }
 0x24f   :  { %566 = vrot.lane.b32.xlu0 %v2703_v18, %s2149_s16  ;;  %604 = vrot.lane.b32.xlu1 %v2659_v34, %s2145_s8 }
 0x251   :  { %v483_v56 = vpop.permute.xlu0 %482  ;;  %v583_v54 = vpop.permute.xlu1 %582 }
 0x253   :  { %1431 = vrot.lane.b32.xlu0 %v2710_v40, %s2148_s0  ;;  %1513 = vrot.lane.b32.xlu1 %v2667_v57, %s2145_s8 }
 0x255   :  { %v1392_v1 = vpop.permute.xlu0 %1391  ;;  %v1492_v58 = vpop.permute.xlu1 %1491 }
 0x257   :  { %1475 = vrot.lane.b32.xlu0 %v2710_v40, %s2149_s16  ;;  %438 = vrot.lane.b32.xlu1 %v2703_v18, %s2151_s18 }
 0x259   :  { %v443_v53 = vpop.permute.xlu0 %442  ;;  %v517_v2 = vpop.permute.xlu1 %516 }
 0x25b   :  { %544 = vrot.lane.b32.xlu0 %v2703_v18, %s2146_s9  ;;  %1347 = vrot.lane.b32.xlu1 %v2710_v40, %s2151_s18 }
 0x25d   :  { %v1352_v59 = vpop.permute.xlu0 %1351  ;;  %v561_v60 = vpop.permute.xlu1 %560 }
 0x25f   :  { %1453 = vrot.lane.b32.xlu0 %v2710_v40, %s2146_s9  ;;  %496 = vrot.lane.b32.xlu1 %v2703_v18, %s2152_s19 }
 0x261   :  { %v2744_v62 = vpop.permute.xlu0 %500  ;;  %v1426_v23 = vpop.permute.xlu1 %1425 }
 0x263   :  { %1335 = vrot.lane.b32.xlu0 %v2667_v57, %s2154_s20  ;;  %1405 = vrot.lane.b32.xlu1 %v2710_v40, %s2152_s19 }
 0x265   :  { %v2750_v37 = vpop.permute.xlu0 %1409  ;;  %v2752_v63 = vpop.permute.xlu1 %1469 }
 0x267   :  { %424 = vrot.lane.b32.xlu0 %v2533_v8, %s2154_s20  ;;  %460 = vrot.lane.b32.xlu1 %v2703_v18, %s2144_s29 }
 0x269   :  { %v2758_v5 = vpop.permute.xlu0 %464  ;;  %v2760_v7 = vpop.permute.xlu1 %538 }
 0x26b   :  { %1333 = vrot.lane.b32.xlu0 %v2546_v25, %s2154_s20  ;;  %1369 = vrot.lane.b32.xlu1 %v2710_v40, %s2144_s29 }
 0x26d   :  { %v2766_v9 = vpop.permute.xlu0 %1373  ;;  %v2768_v33 = vpop.permute.xlu1 %1447 }
 0x26f   :  { %602 = vrot.lane.b32.xlu0 %v2600_v28, %s2145_s8  ;;  %418 = vrot.lane.b32.xlu1 %v2703_v18, %s2154_s20 }
 0x271   :  { %v585_v20 = vpop.permute.xlu0 %584  ;;  %v477_v48 = vpop.permute.xlu1 %476 }
 0x272   :  { %v2777_v6 = vsel %vm174_vm4, %v583_v54, %v585_v20  ;;  %v2780_v35 = vsel %vm113_vm9, %v483_v56, %v477_v48  ;;  %v2783_v12 = vsel %vm113_vm9, %v477_v48, %v483_v56  ;;  %v2786_v30 = vsel %vm174_vm4, %v585_v20, %v583_v54 }
 0x273   :  { %606 = vrot.lane.b32.xlu0 %v2703_v18, %s2145_s8  ;;  %1327 = vrot.lane.b32.xlu1 %v2710_v40, %s2154_s20 }
 0x275   :  { %v1494_v21 = vpop.permute.xlu0 %1493  ;;  %v1386_v24 = vpop.permute.xlu1 %1385 }
 0x276   :  { %v2793_v13 = vsel %vm174_vm4, %v1492_v58, %v1494_v21  ;;  %v2796_v42 = vsel %vm113_vm9, %v1392_v1, %v1386_v24  ;;  %v2799_v19 = vsel %vm113_vm9, %v1386_v24, %v1392_v1  ;;  %v2802_v39 = vsel %vm174_vm4, %v1494_v21, %v1492_v58 }
 0x277   :  { %1515 = vrot.lane.b32.xlu0 %v2710_v40, %s2145_s8  ;;  %600 = vrot.lane.b32.xlu1 %v2533_v8, %s2145_s8 }
 0x279   :  { %v519_v0 = vpop.permute.xlu0 %518  ;;  %v437_v32 = vpop.permute.xlu1 %436 }
 0x27a   :  { %v2809_v26 = vsel %vm138_vm5, %v517_v2, %v519_v0  ;;  %v2812_v14 = vsel %vm138_vm5, %v519_v0, %v517_v2  ;;  %v2815_v29 = vsel %vm87_vm10, %v443_v53, %v437_v32  ;;  %v2818_v55 = vsel %vm87_vm10, %v437_v32, %v443_v53 }
 0x27b   :  { %1511 = vrot.lane.b32.xlu0 %v2609_v10, %s2145_s8  ;;  %1509 = vrot.lane.b32.xlu1 %v2546_v25, %s2145_s8 }
 0x27d   :  { %v563_v41 = vpop.permute.xlu0 %562  ;;  %v1346_v43 = vpop.permute.xlu1 %1345 }
 0x27e   :  { %v2839_v47 = vsel %vm162_vm6, %v561_v60, %v563_v41  ;;  %v2842_v44 = vsel %vm162_vm6, %v563_v41, %v561_v60  ;;  %v2845_v11 = vsel %vm87_vm10, %v1352_v59, %v1346_v43  ;;  %v2848_v27 = vsel %vm87_vm10, %v1346_v43, %v1352_v59 }
 0x27f   :  { %629 = vperm.xlu0 %1975, %v67_v61   ;;  %624 = vperm.xlu1 %1976, %v66_v38  }
 0x281   :  { %v1428_v50 = vpop.permute.xlu0 %1427  ;;  %v495_v52 = vpop.permute.xlu1 %494 }
 0x282   :  { %v2859_v51 = vsel %vm138_vm5, %v1426_v23, %v1428_v50  ;;  %v2862_v22 = vsel %vm138_vm5, %v1428_v50, %v1426_v23  ;;  %v2866_v56 = vsel %vm123_vm11, %v2744_v62, %v495_v52  ;;  %v2870_v54 = vsel %vm123_vm11, %v495_v52, %v2744_v62 }
 0x285   :  { %v1472_v59 = vpop.permute.xlu0 %1471  ;;  %v1404_v60 = vpop.permute.xlu1 %1403 }
 0x286   :  { %v2890_v62 = vsel %vm162_vm6, %v2752_v63, %v1472_v59  ;;  %v2894_v23 = vsel %vm162_vm6, %v1472_v59, %v2752_v63  ;;  %v2898_v17 = vsel %vm123_vm11, %v2750_v37, %v1404_v60  ;;  %v2902_v20 = vsel %vm123_vm11, %v1404_v60, %v2750_v37 }
 0x287   :  { %3796 = vst [vmem:[#allocation11_spill] sm:$0xff] %v2898_v17  ;;  %3797 = vst [vmem:[#allocation12_spill] sm:$0xff] %v2902_v20 }
 0x289   :  { %v541_v24 = vpop.permute.xlu0 %540  ;;  %v459_v0 = vpop.permute.xlu1 %458 }
 0x28a   :  { %v2922_v32 = vsel %vm150_vm0, %v2760_v7, %v541_v24  ;;  %v2926_v61 = vsel %vm150_vm0, %v541_v24, %v2760_v7  ;;  %v2930_v38 = vsel %vm103_vm12, %v459_v0, %v2758_v5  ;;  %v2934_v41 = vsel %vm103_vm12, %v2758_v5, %v459_v0 }
 0x28b   :  { %3798 = vst [vmem:[#allocation13_spill] sm:$0xff] %v2930_v38  ;;  %3799 = vst [vmem:[#allocation14_spill] sm:$0xff] %v2934_v41 }
 0x28d   :  { %v1450_v7 = vpop.permute.xlu0 %1449  ;;  %v1368_v52 = vpop.permute.xlu1 %1367 }
 0x28e   :  { %v2946_v59 = vsel %vm150_vm0, %v2768_v33, %v1450_v7  ;;  %v2950_v5 = vsel %vm150_vm0, %v1450_v7, %v2768_v33  ;;  %v2954_v60 = vsel %vm103_vm12, %v1368_v52, %v2766_v9  ;;  %v2958_v24 = vsel %vm103_vm12, %v2766_v9, %v1368_v52 }
 0x28f   :  { %3800 = vst [vmem:[#allocation15_spill] sm:$0xff] %v2954_v60  ;;  %3801 = vst [vmem:[#allocation16_spill] sm:$0xff] %v2958_v24 }
 0x291   :  { %v2968_v33 = vpop.permute.xlu0 %484  ;;  %v587_v7 = vpop.permute.xlu1 %586 }
 0x295   :  { %v2970_v37 = vpop.permute.xlu0 %1393  ;;  %v1496_v63 = vpop.permute.xlu1 %1495 }
 0x299   :  { %v2972_v2 = vpop.permute.xlu0 %444  ;;  %v521_v9 = vpop.permute.xlu1 %520 }
 0x29d   :  { %v2974_v52 = vpop.permute.xlu0 %1353  ;;  %v565_v53 = vpop.permute.xlu1 %564 }
 0x2a1   :  { %v2976_v58 = vpop.permute.xlu0 %502  ;;  %v1430_v1 = vpop.permute.xlu1 %1429 }
 0x2a5   :  { %v2978_v36 = vpop.permute.xlu0 %1411  ;;  %v1474_v31 = vpop.permute.xlu1 %1473 }
 0x2a9   :  { %v2980_v0 = vpop.permute.xlu0 %466  ;;  %v543_v4 = vpop.permute.xlu1 %542 }
 0x2ad   :  { %v2982_v50 = vpop.permute.xlu0 %1375  ;;  %v2984_v43 = vpop.permute.xlu1 %1451 }
 0x2ae   :  { %3802 = vst [vmem:[#allocation17_spill] sm:$0xff] %v2982_v50 }
 0x2b1   :  { %v2986_v21 = vpop.permute.xlu0 %426  ;;  %v479_v48 = vpop.permute.xlu1 %478 }
 0x2b2   :  { %3803 = vst [vmem:[#allocation18_spill] sm:$0xff] %v2986_v21 }
 0x2b5   :  { %v589_v49 = vpop.permute.xlu0 %588  ;;  %v1388_v3 = vpop.permute.xlu1 %1387 }
 0x2b6   :  { %v591_v60 = vsel %vm174_vm4, %v587_v7, %v589_v49  ;;  %v599_v24 = vsel %vm174_vm4, %v589_v49, %v587_v7 }
 0x2b7   :  { %638 = vmatprep.subr.mxu1 %v599_v24 }
 0x2b8   :  { %639 = vmatpush1.msra.mxu1 %v591_v60 }
 0x2b9   :  { %v1498_v20 = vpop.permute.xlu0 %1497  ;;  %640 = vmatprep.subr.mxu1 %v2786_v30  ;;  %v2991_v38 = vpop.permute.xlu1 %416 }
 0x2ba   :  { %v1500_v50 = vsel %vm174_vm4, %v1496_v63, %v1498_v20  ;;  %641 = vmatpush1.msra.mxu1 %v2777_v6  ;;  %v1508_v17 = vsel %vm174_vm4, %v1498_v20, %v1496_v63 }
 0x2bb   :  { %1531 = vmatprep.subr.mxu0 %v1508_v17 }
 0x2bc   :  { %1532 = vmatpush1.msra.mxu0 %v1500_v50 }
 0x2bd   :  { %v523_v41 = vpop.permute.xlu0 %522  ;;  %1533 = vmatprep.subr.mxu0 %v2802_v39  ;;  %v2997_v21 = vpop.permute.xlu1 %1325 }
 0x2be   :  { %1534 = vmatpush1.msra.mxu0 %v2793_v13  ;;  %v3003_v30 = vsel %vm138_vm5, %v521_v9, %v523_v41  ;;  %v533_v24 = vsel %vm138_vm5, %v523_v41, %v521_v9  ;;  %v3804_v41 = vsel %vm2344_vm7, %v2842_v44, %v2812_v14 }
 0x2c1   :  { %v567_v49 = vpop.permute.xlu0 %566  ;;  %v3000_v60 = vpop.permute.xlu1 %604 }
 0x2c2   :  { %v569_v6 = vsel %vm162_vm6, %v565_v53, %v567_v49  ;;  %v577_v17 = vsel %vm162_vm6, %v567_v49, %v565_v53  ;;  %v3805_v53 = vsel %vm2348_vm8, %v2839_v47, %v2809_v26 }
 0x2c3   :  { %v581_v20 = vsel %vm2344_vm7, %v577_v17, %v533_v24  ;;  %v580_v39 = vsel %vm2348_vm8, %v569_v6, %v3003_v30 }
 0x2c4   :  { %642 = vmatprep.subr.mxu1 %v581_v20 }
 0x2c5   :  { %v1432_v13 = vpop.permute.xlu0 %1431  ;;  %643 = vmatpush1.msra.mxu1 %v580_v39  ;;  %v3013_v63 = vpop.permute.xlu1 %1513 }
 0x2c6   :  { %644 = vmatprep.subr.mxu1 %v3804_v41  ;;  %v3026_v9 = vsel %vm138_vm5, %v1430_v1, %v1432_v13  ;;  %v1442_v49 = vsel %vm138_vm5, %v1432_v13, %v1430_v1  ;;  %v487_v41 = vsel %vm113_vm9, %v2968_v33, %v479_v48  ;;  %v493_v1 = vsel %vm113_vm9, %v479_v48, %v2968_v33 }
 0x2c7   :  { %645 = vmatpush1.msra.mxu1 %v3805_v53  ;;  %v3806_v53 = vsel %vm2344_vm7, %v2894_v23, %v2862_v22  ;;  %v1396_v23 = vsel %vm113_vm9, %v2970_v37, %v1388_v3 }
 0x2c9   :  { %v1476_v50 = vpop.permute.xlu0 %1475  ;;  %v439_v7 = vpop.permute.xlu1 %438 }
 0x2ca   :  { %v1478_v6 = vsel %vm162_vm6, %v1474_v31, %v1476_v50  ;;  %v1486_v17 = vsel %vm162_vm6, %v1476_v50, %v1474_v31  ;;  %v3807_v50 = vsel %vm2348_vm8, %v2890_v62, %v2859_v51 }
 0x2cb   :  { %v1490_v44 = vsel %vm2344_vm7, %v1486_v17, %v1442_v49  ;;  %v1489_v20 = vsel %vm2348_vm8, %v1478_v6, %v3026_v9  ;;  %v1402_v17 = vsel %vm113_vm9, %v1388_v3, %v2970_v37 }
 0x2cc   :  { %1535 = vmatprep.subr.mxu0 %v1490_v44 }
 0x2cd   :  { %v545_v47 = vpop.permute.xlu0 %544  ;;  %1536 = vmatpush1.msra.mxu0 %v1489_v20  ;;  %v1348_v39 = vpop.permute.xlu1 %1347  ;;  %v3808_v20 = vsel %vm2304_vm2, %v2780_v35, %v2926_v61 }
 0x2ce   :  { %v3041_v13 = vsel %vm150_vm0, %v543_v4, %v545_v47  ;;  %v3044_v31 = vsel %vm150_vm0, %v545_v47, %v543_v4  ;;  %1537 = vmatprep.subr.mxu0 %v3806_v53  ;;  %v3809_v47 = vsel %vm2308_vm3, %v2783_v12, %v2922_v32  ;;  %v3097_v53 = vsel %vm87_vm10, %v439_v7, %v2972_v2 }
 0x2cf   :  { %1538 = vmatpush1.msra.mxu0 %v3807_v50  ;;  %v559_v48 = vsel %vm2304_vm2, %v487_v41, %v3044_v31  ;;  %v558_v4 = vsel %vm2308_vm3, %v493_v1, %v3041_v13 }
 0x2d0   :  { %646 = vmatprep.subr.mxu1 %v559_v48 }
 0x2d1   :  { %v1454_v33 = vpop.permute.xlu0 %1453  ;;  %647 = vmatpush1.msra.mxu1 %v558_v4  ;;  %v497_v6 = vpop.permute.xlu1 %496  ;;  %v3810_v4 = vsel %vm2304_vm2, %v2796_v42, %v2950_v5 }
 0x2d2   :  { %v3068_v62 = vsel %vm150_vm0, %v2984_v43, %v1454_v33  ;;  %v3072_v44 = vsel %vm150_vm0, %v1454_v33, %v2984_v43  ;;  %648 = vmatprep.subr.mxu1 %v3808_v20  ;;  %v3092_v43 = vsel %vm87_vm10, %v2972_v2, %v439_v7  ;;  %v505_v2 = vsel %vm123_vm11, %v2976_v58, %v497_v6 }
 0x2d3   :  { %649 = vmatpush1.msra.mxu1 %v3809_v47  ;;  %v1468_v3 = vsel %vm2304_vm2, %v1396_v23, %v3072_v44  ;;  %v1467_v37 = vsel %vm2308_vm3, %v1402_v17, %v3068_v62  ;;  %v3130_v7 = vsel %vm87_vm10, %v1348_v39, %v2974_v52  ;;  %v3818_v47 = vld [vmem:[#allocation18_spill] sm:$0xff] }
 0x2d4   :  { %650 = vmatprep.subr.mxu1 %v2703_v18  ;;  %1539 = vmatprep.subr.mxu0 %v1468_v3  ;;  %v3811_v18 = vsel %vm2308_vm3, %v2799_v19, %v2946_v59  ;;  %v3819_v3 = vld [vmem:[#allocation14_spill] sm:$0xff] }
 0x2d5   :  { %v3099_v50 = vpop.permute.xlu0 %1335  ;;  %651 = vmatpush1.msra.mxu1 %v2659_v34  ;;  %1540 = vmatpush1.msra.mxu0 %v1467_v37  ;;  %v1406_v48 = vpop.permute.xlu1 %1405  ;;  %v537_v34 = vsel %vm2344_vm7, %v533_v24, %v3092_v43  ;;  %v511_v24 = vsel %vm123_vm11, %v497_v6, %v2976_v58 }
 0x2d6   :  { %652 = vmatprep.subr.mxu1 %v2600_v28  ;;  %1541 = vmatprep.subr.mxu0 %v3810_v4  ;;  %v3119_v28 = vsel %vm87_vm10, %v2974_v52, %v1348_v39  ;;  %v3813_v52 = vsel %vm2348_vm8, %v2809_v26, %v2818_v55  ;;  %v1420_v26 = vsel %vm123_vm11, %v1406_v48, %v2978_v36  ;;  %v3823_v4 = vld [vmem:[#allocation12_spill] sm:$0xff] }
 0x2d7   :  { %653 = vmatpush1.msra.mxu1 %v2533_v8  ;;  %1542 = vmatpush1.msra.mxu0 %v3811_v18  ;;  %v536_v8 = vsel %vm2348_vm8, %v3003_v30, %v3097_v53  ;;  %v1446_v58 = vsel %vm2344_vm7, %v1442_v49, %v3119_v28  ;;  %v3814_v39 = vsel %vm2304_vm2, %v2866_v56, %v2780_v35 }
 0x2d8   :  { %654 = vmatprep.subr.mxu1 %v537_v34  ;;  %1543 = vmatprep.subr.mxu0 %v2710_v40  ;;  %v3812_v40 = vsel %vm2344_vm7, %v2812_v14, %v2815_v29  ;;  %v1414_v14 = vsel %vm123_vm11, %v2978_v36, %v1406_v48  ;;  %v3816_v36 = vsel %vm2308_vm3, %v2870_v54, %v2783_v12  ;;  %v3822_v48 = vld [vmem:[#allocation13_spill] sm:$0xff] }
 0x2d9   :  { %v425_v33 = vpop.permute.xlu0 %424  ;;  %655 = vmatpush1.msra.mxu1 %v536_v8  ;;  %1544 = vmatpush1.msra.mxu0 %v2667_v57  ;;  %v461_v20 = vpop.permute.xlu1 %460  ;;  %v515_v57 = vsel %vm2304_vm2, %v505_v2, %v487_v41  ;;  %v3815_v41 = vsel %vm2344_vm7, %v2862_v22, %v2845_v11  ;;  %v1424_v56 = vsel %vm2304_vm2, %v1414_v14, %v1396_v23  ;;  %v3825_v34 = vld [vmem:[#allocation17_spill] sm:$0xff]  ;;  %v3827_v14 = vld [vmem:[#allocation15_spill] sm:$0xff] }
 0x2da   :  { %656 = vmatprep.subr.mxu1 %v3812_v40  ;;  %1545 = vmatprep.subr.mxu0 %v2609_v10  ;;  %v514_v10 = vsel %vm2308_vm3, %v511_v24, %v493_v1  ;;  %v469_v35 = vsel %vm103_vm12, %v2980_v0, %v461_v20  ;;  %v475_v22 = vsel %vm103_vm12, %v461_v20, %v2980_v0 }
 0x2db   :  { %657 = vmatpush1.msra.mxu1 %v3813_v52  ;;  %1546 = vmatpush1.msra.mxu0 %v2546_v25  ;;  %v1445_v25 = vsel %vm2348_vm8, %v3026_v9, %v3130_v7  ;;  %v3817_v9 = vsel %vm2348_vm8, %v2859_v51, %v2848_v27  ;;  %v1423_v12 = vsel %vm2308_vm3, %v1420_v26, %v1402_v17  ;;  %v3820_v17 = vld [vmem:[#allocation11_spill] sm:$0xff] }
 0x2dc   :  { %658 = vmatprep.subr.mxu1 %v515_v57  ;;  %1547 = vmatprep.subr.mxu0 %v1446_v58  ;;  %v428_v54 = vsel %vm77_vm13, %v425_v33, %v2991_v38  ;;  %v434_v6 = vsel %vm77_vm13, %v2991_v38, %v425_v33  ;;  %v3821_v37 = vsel %vm2304_vm2, %v3820_v17, %v2796_v42  ;;  %v3826_v57 = vld [vmem:[#allocation16_spill] sm:$0xff] }
 0x2dd   :  { %v1334_v30 = vpop.permute.xlu0 %1333  ;;  %659 = vmatpush1.msra.mxu1 %v514_v10  ;;  %1548 = vmatpush1.msra.mxu0 %v1445_v25  ;;  %v1370_v49 = vpop.permute.xlu1 %1369  ;;  %v3824_v38 = vsel %vm2308_vm3, %v3823_v4, %v2799_v19  ;;  %v455_v19 = vsel %vm2344_vm7, %v2815_v29, %v428_v54 }
 0x2de   :  { %660 = vmatprep.subr.mxu1 %v3814_v39  ;;  %1549 = vmatprep.subr.mxu0 %v3815_v41  ;;  %v1378_v2 = vsel %vm103_vm12, %v3825_v34, %v1370_v49  ;;  %v1384_v8 = vsel %vm103_vm12, %v1370_v49, %v3825_v34  ;;  %v1337_v24 = vsel %vm77_vm13, %v1334_v30, %v2997_v21  ;;  %v65_v49 = vld [vmem:[#allocation5 + $0x18] sm:$0xff] }
 0x2df   :  { %661 = vmatpush1.msra.mxu1 %v3816_v36  ;;  %1550 = vmatpush1.msra.mxu0 %v3817_v9  ;;  %v64_v36 = vld [vmem:[#allocation5 + $0x10] sm:$0xff] }
 0x2e0   :  { %662 = vmatprep.subr.mxu1 %v469_v35  ;;  %1551 = vmatprep.subr.mxu0 %v1424_v56 }
 0x2e1   :  { %v603_v1 = vpop.permute.xlu0 %602  ;;  %663 = vmatpush1.msra.mxu1 %v475_v22  ;;  %1552 = vmatpush1.msra.mxu0 %v1423_v12  ;;  %v419_v51 = vpop.permute.xlu1 %418 }
 0x2e2   :  { %v429_v23 = vsel %vm77_vm13, %v3818_v47, %v419_v51  ;;  %v435_v0 = vsel %vm77_vm13, %v419_v51, %v3818_v47  ;;  %664 = vmatprep.subr.mxu1 %v3819_v3  ;;  %1553 = vmatprep.subr.mxu0 %v3821_v37 }
 0x2e3   :  { %665 = vmatpush1.msra.mxu1 %v3822_v48  ;;  %1554 = vmatpush1.msra.mxu0 %v3824_v38  ;;  %v457_v18 = vsel %vm2344_vm7, %v3092_v43, %v429_v23  ;;  %v456_v42 = vsel %vm2348_vm8, %v3097_v53, %v435_v0  ;;  %v1343_v43 = vsel %vm77_vm13, %v2997_v21, %v1334_v30 }
 0x2e4   :  { %666 = vmatprep.subr.mxu1 %v457_v18  ;;  %1555 = vmatprep.subr.mxu0 %v1378_v2  ;;  %v454_v53 = vsel %vm2348_vm8, %v2818_v55, %v434_v6 }
 0x2e5   :  { %v607_v33 = vpop.permute.xlu0 %606  ;;  %667 = vmatpush1.msra.mxu1 %v456_v42  ;;  %1556 = vmatpush1.msra.mxu0 %v1384_v8  ;;  %v1328_v20 = vpop.permute.xlu1 %1327 }
 0x2e6   :  { %v609_v40 = vsel %vm184_vm1, %v3000_v60, %v607_v33  ;;  %v617_v29 = vsel %vm184_vm1, %v607_v33, %v3000_v60  ;;  %v1338_v52 = vsel %vm77_vm13, %v3099_v50, %v1328_v20  ;;  %v1344_v21 = vsel %vm77_vm13, %v1328_v20, %v3099_v50  ;;  %668 = vmatprep.subr.mxu1 %v455_v19 }
 0x2e7   :  { %1557 = vmatprep.subr.mxu0 %v3826_v57  ;;  %669 = vmatpush1.msra.mxu1 %v454_v53  ;;  %v621_v55 = vsel %vm2304_vm2, %v3044_v31, %v617_v29  ;;  %v1366_v58 = vsel %vm2344_vm7, %v3119_v28, %v1338_v52  ;;  %v620_v60 = vsel %vm2308_vm3, %v3041_v13, %v609_v40 }
 0x2e8   :  { %1558 = vmatpush1.msra.mxu0 %v3827_v14  ;;  %698 = vmatprep.subr.mxu1 %v621_v55  ;;  %v1365_v50 = vsel %vm2348_vm8, %v3130_v7, %v1344_v21  ;;  %v1364_v31 = vsel %vm2344_vm7, %v2845_v11, %v1337_v24  ;;  %v1363_v28 = vsel %vm2348_vm8, %v2848_v27, %v1343_v43 }
 0x2e9   :  { %1559 = vmatprep.subr.mxu0 %v1366_v58  ;;  %v1516_v10 = vpop.permute.xlu0 %1515  ;;  %699 = vmatpush2.msra.mxu1 %v620_v60  ;;  %v601_v25 = vpop.permute.xlu1 %600 }
 0x2ea   :  { %v1518_v13 = vsel %vm184_vm1, %v3013_v63, %v1516_v10  ;;  %v1526_v26 = vsel %vm184_vm1, %v1516_v10, %v3013_v63  ;;  %1560 = vmatpush1.msra.mxu0 %v1365_v50  ;;  %v608_v7 = vsel %vm184_vm1, %v601_v25, %v603_v1  ;;  %v616_v30 = vsel %vm184_vm1, %v603_v1, %v601_v25  ;;  %v62_v63 = vld [vmem:[#allocation5] sm:$0xff] }
 0x2eb   :  { %1561 = vmatprep.subr.mxu0 %v1364_v31  ;;  %v619_v45 = vsel %vm2304_vm2, %v2926_v61, %v616_v30  ;;  %v1530_v46 = vsel %vm2304_vm2, %v3072_v44, %v1526_v26  ;;  %v618_v11 = vsel %vm2308_vm3, %v2922_v32, %v608_v7  ;;  %v1529_v27 = vsel %vm2308_vm3, %v3068_v62, %v1518_v13 }
 0x2ec   :  { %1562 = vmatpush1.msra.mxu0 %v1363_v28  ;;  %700 = vmatprep.subr.mxu1 %v619_v45 }
 0x2ed   :  { %1591 = vmatprep.subr.mxu0 %v1530_v46  ;;  %v1512_v39 = vpop.permute.xlu0 %1511  ;;  %701 = vmatpush2.msra.mxu1 %v618_v11  ;;  %v1510_v61 = vpop.permute.xlu1 %1509 }
 0x2ee   :  { %1592 = vmatpush2.msra.mxu0 %v1529_v27  ;;  %v1517_v41 = vsel %vm184_vm1, %v1510_v61, %v1512_v39  ;;  %v1525_v44 = vsel %vm184_vm1, %v1512_v39, %v1510_v61  ;;  %703 = vmatmul.mubr.f32.vlgmr.msra.gmra.mxu1 %v62_v63 }
 0x2ef   :  { %v1528_v32 = vsel %vm2304_vm2, %v2950_v5, %v1525_v44  ;;  %1926 = vmatprep.mubr.msk.f32.mxu1 %vm103_vm12, %v65_v49  ;;  %v1527_v62 = vsel %vm2308_vm3, %v2946_v59, %v1517_v41 }
 0x2f0   :  { %1593 = vmatprep.subr.mxu0 %v1528_v32 }
 0x2f1   :  { %1594 = vmatpush2.msra.mxu0 %v1527_v62 }
 0x2f2   :  { %709 = vmatmul.mubr.f32.gmra.mxu1 %v64_v36  ;;  %1596 = vmatmul.mubr.f32.vlgmr.msra.gmra.mxu0 %v62_v63 }
 0x2f3   :  { %1944 = vmatprep.mubr.msk.f32.mxu0 %vm103_vm12, %v65_v49 }
 0x2f6   :  { %1602 = vmatmul.mubr.f32.gmra.mxu0 %v64_v36 }
 0x2fa   :  { %v625_v9 = vpop.permute.xlu1 %624  ;;  %v630_v12 = vpop.permute.xlu0 %629 }
 0x3ae   :  { %v704_v35 = vpop.f32.mrf.mxu1 }
 0x3af   :  { %v3286_v56 = vadd.f32 %v704_v35, %v625_v9 }
 0x3b0   :  { %v706_v15 = vpop.f32.mrf.mxu1 }
 0x3b1   :  { %v3289_v5 = vmul.f32 0.70710677, %v3286_v56  ;;  %v3291_v22 = vadd.f32 %v706_v15, %v625_v9 }
 0x3b2   :  { %v710_v16 = vpop.f32.mrf.mxu1  ;;  %v1597_v59 = vpop.f32.mrf.mxu0 }
 0x3b3   :  { %v723_v54 = vand.u32 2147483647, %v3289_v5  ;;  %v3295_v1 = vmul.f32 0.70710677, %v3291_v22  ;;  %v3297_v51 = vadd.f32 %v710_v16, %v630_v12  ;;  %v3299_v6 = vadd.f32 %v1597_v59, %v625_v9 }
 0x3b4   :  { %v1599_v17 = vpop.f32.mrf.mxu0  ;;  %v712_v18 = vpop.f32.mrf.mxu1  ;;  %vm823_vm0 = vcmp.lt.f32.partialorder %v3289_v5, 0.0 }
 0x3b5   :  { %v727_v47 = vmul.f32 0.3275911, %v723_v54  ;;  %v724_v23 = vand.u32 2147483647, %v3295_v1  ;;  %v3303_v0 = vmul.f32 0.70710677, %v3297_v51  ;;  %v3310_v19 = vadd.f32 %v712_v18, %v630_v12 }
 0x3b6   :  { %v3306_v3 = vmul.f32 0.70710677, %v3299_v6  ;;  %v1603_v8 = vpop.f32.mrf.mxu0  ;;  %v3312_v24 = vadd.f32 %v1599_v17, %v625_v9  ;;  %v799_v7 = vsub.f32 0.0, %v723_v54  ;;  %vm824_vm1 = vcmp.lt.f32.partialorder %v3295_v1, 0.0 }
 0x3b7   :  { %v731_v37 = vadd.f32 1.0, %v727_v47  ;;  %v728_v48 = vmul.f32 0.3275911, %v724_v23  ;;  %v725_v4 = vand.u32 2147483647, %v3303_v0  ;;  %v3329_v21 = vadd.f32 %v1603_v8, %v630_v12 }
 0x3b8   :  { %v1616_v38 = vand.u32 2147483647, %v3306_v3  ;;  %v3317_v20 = vmul.f32 0.70710677, %v3310_v19  ;;  %v3320_v53 = vmul.f32 0.70710677, %v3312_v24  ;;  %v1605_v40 = vpop.f32.mrf.mxu0  ;;  %v803_v32 = vmul.f32 %v799_v7, %v723_v54 }
 0x3b9   :  { %2009 = vrcp.f32 %v731_v37  ;;  %v732_v34 = vadd.f32 1.0, %v728_v48  ;;  %v729_v2 = vmul.f32 0.3275911, %v725_v4  ;;  %v3332_v55 = vadd.f32 %v1605_v40, %v630_v12 }
 0x3ba   :  { %v1620_v42 = vmul.f32 0.3275911, %v1616_v38  ;;  %v3324_v29 = vand.u32 2147483647, %v3317_v20  ;;  %v3327_v52 = vand.u32 2147483647, %v3320_v53 }
 0x3bb   :  { %2011 = vrcp.f32 %v732_v34  ;;  %v733_v43 = vadd.f32 1.0, %v729_v2  ;;  %3828 = vst [vmem:[#allocation18_spill] sm:$0xff] %v3332_v55  ;;  %v3336_v60 = vmul.f32 0.70710677, %v3329_v21  ;;  %v3341_v50 = vmul.f32 0.70710677, %v3332_v55 }
 0x3bc   :  { %v3314_v33 = vadd.f32 1.0, %v1620_v42  ;;  %v730_v57 = vmul.f32 0.3275911, %v3324_v29  ;;  %v1621_v58 = vmul.f32 0.3275911, %v3327_v52  ;;  %v800_v45 = vsub.f32 0.0, %v724_v23 }
 0x3bd   :  { %2013 = vrcp.f32 %v733_v43  ;;  %v3346_v25 = vand.u32 2147483647, %v3336_v60  ;;  %v3350_v31 = vand.u32 2147483647, %v3341_v50  ;;  %v801_v63 = vsub.f32 0.0, %v725_v4 }
 0x3be   :  { %2015 = vrcp.f32 %v3314_v33  ;;  %v3338_v14 = vadd.f32 1.0, %v730_v57  ;;  %v3343_v10 = vadd.f32 1.0, %v1621_v58  ;;  %v1692_v61 = vsub.f32 0.0, %v1616_v38 }
 0x3bf   :  { %v1622_v13 = vmul.f32 0.3275911, %v3346_v25  ;;  %v1623_v30 = vmul.f32 0.3275911, %v3350_v31  ;;  %v804_v9 = vmul.f32 %v800_v45, %v724_v23  ;;  %v805_v16 = vmul.f32 %v801_v63, %v725_v4 }
 0x3c0   :  { %2017 = vrcp.f32 %v3338_v14  ;;  %v1696_v17 = vmul.f32 %v1692_v61, %v1616_v38  ;;  %v807_v18 = vmul.f32 1.442695, %v803_v32  ;;  %v3363_v54 = vmul.f32 0.5, %v3286_v56 }
 0x3c1   :  { %2019 = vrcp.f32 %v3343_v10  ;;  %v3355_v46 = vadd.f32 1.0, %v1622_v13  ;;  %v3357_v49 = vadd.f32 1.0, %v1623_v30  ;;  %v809_v8 = vmul.f32 1.442695, %v804_v9 }
 0x3c2   :  { %v811_v23 = vmul.f32 1.442695, %v805_v16  ;;  %v3368_v4 = vmul.f32 0.5, %v3291_v22  ;;  %v1700_v38 = vmul.f32 1.442695, %v1696_v17  ;;  %vm825_vm2 = vcmp.lt.f32.partialorder %v3303_v0, 0.0 }
 0x3c3   :  { %2021 = vrcp.f32 %v3355_v46  ;;  %vm1716_vm3 = vcmp.lt.f32.partialorder %v3306_v3, 0.0  ;;  %vm826_vm6 = vcmp.lt.f32.partialorder %v3317_v20, 0.0  ;;  %vm1717_vm9 = vcmp.lt.f32.partialorder %v3320_v53, 0.0 }
 0x3c4   :  { %2023 = vrcp.f32 %v3357_v49  ;;  %v3517_v20 = vmul.f32 0.5, %v3329_v21  ;;  %vm1718_vm15 = vcmp.lt.f32.partialorder %v3336_v60, 0.0 }
 0x3c5   :  { %2025 = vpow2.f32 %v807_v18 }
 0x3c6   :  { %v2010_v28 = vpop.eup %2009  ;;  %2027 = vpow2.f32 %v809_v8 }
 0x3c7   :  { %v739_v26 = vmul.f32 %v2010_v28, %v731_v37  ;;  %2029 = vpow2.f32 %v811_v23 }
 0x3c8   :  { %v2012_v11 = vpop.eup %2011  ;;  %2031 = vpow2.f32 %v1700_v38 }
 0x3c9   :  { %v743_v27 = vsub.f32 2.0, %v739_v26  ;;  %v740_v39 = vmul.f32 %v2012_v11, %v732_v34 }
 0x3ca   :  { %v2014_v41 = vpop.eup %2013 }
 0x3cb   :  { %v747_v44 = vmul.f32 %v2010_v28, %v743_v27  ;;  %v2016_v62 = vpop.eup %2015  ;;  %v744_v36 = vsub.f32 2.0, %v740_v39  ;;  %v741_v35 = vmul.f32 %v2014_v41, %v733_v43 }
 0x3cc   :  { %v1632_v59 = vmul.f32 %v2016_v62, %v3314_v33 }
 0x3cd   :  { %v751_v15 = vmul.f32 %v747_v44, %v731_v37  ;;  %v748_v12 = vmul.f32 %v2012_v11, %v744_v36  ;;  %v745_v47 = vsub.f32 2.0, %v741_v35  ;;  %v2018_v37 = vpop.eup %2017 }
 0x3ce   :  { %v1636_v2 = vsub.f32 2.0, %v1632_v59  ;;  %v2020_v26 = vpop.eup %2019  ;;  %v742_v56 = vmul.f32 %v2018_v37, %v3338_v14 }
 0x3cf   :  { %v755_v48 = vsub.f32 2.0, %v751_v15  ;;  %v752_v42 = vmul.f32 %v748_v12, %v732_v34  ;;  %v749_v40 = vmul.f32 %v2014_v41, %v745_v47  ;;  %v1633_v11 = vmul.f32 %v2020_v26, %v3343_v10 }
 0x3d0   :  { %v1640_v58 = vmul.f32 %v2016_v62, %v1636_v2  ;;  %v746_v63 = vsub.f32 2.0, %v742_v56  ;;  %v2022_v41 = vpop.eup %2021  ;;  %v802_v62 = vsub.f32 0.0, %v3324_v29 }
 0x3d1   :  { %v3365_v57 = vmul.f32 %v755_v48, %v747_v44  ;;  %v756_v28 = vsub.f32 2.0, %v752_v42  ;;  %v753_v13 = vmul.f32 %v749_v40, %v733_v43  ;;  %v1637_v61 = vsub.f32 2.0, %v1633_v11  ;;  %v2024_v36 = vpop.eup %2023 }
 0x3d2   :  { %v1644_v34 = vmul.f32 %v1640_v58, %v3314_v33  ;;  %v750_v32 = vmul.f32 %v2018_v37, %v746_v63  ;;  %v1634_v16 = vmul.f32 %v2022_v41, %v3355_v46  ;;  %v1635_v17 = vmul.f32 %v2024_v36, %v3357_v49 }
 0x3d3   :  { %v763_v7 = vmul.f32 1.0614054, %v3365_v57  ;;  %v3373_v30 = vmul.f32 %v756_v28, %v748_v12  ;;  %v757_v45 = vsub.f32 2.0, %v753_v13  ;;  %v1641_v15 = vmul.f32 %v2020_v26, %v1637_v61  ;;  %v2026_v61 = vpop.eup %2025 }
 0x3d4   :  { %v1648_v22 = vsub.f32 2.0, %v1644_v34  ;;  %v754_v47 = vmul.f32 %v750_v32, %v3338_v14  ;;  %v1638_v42 = vsub.f32 2.0, %v1634_v16  ;;  %v806_v34 = vmul.f32 %v802_v62, %v3324_v29  ;;  %v2028_v62 = vpop.eup %2027 }
 0x3d5   :  { %v767_v27 = vadd.f32 -1.4531521, %v763_v7  ;;  %v764_v43 = vmul.f32 1.0614054, %v3373_v30  ;;  %v3377_v39 = vmul.f32 %v757_v45, %v749_v40  ;;  %v1645_v2 = vmul.f32 %v1641_v15, %v3343_v10  ;;  %v2030_v16 = vpop.eup %2029 }
 0x3d6   :  { %v3380_v44 = vmul.f32 %v1648_v22, %v1640_v58  ;;  %v758_v23 = vsub.f32 2.0, %v754_v47  ;;  %v1639_v58 = vsub.f32 2.0, %v1635_v17  ;;  %v1642_v38 = vmul.f32 %v2022_v41, %v1638_v42  ;;  %v2032_v17 = vpop.eup %2031 }
 0x3d7   :  { %v771_v33 = vmul.f32 %v767_v27, %v3365_v57  ;;  %v768_v9 = vadd.f32 -1.4531521, %v764_v43  ;;  %v765_v35 = vmul.f32 1.0614054, %v3377_v39  ;;  %v1649_v13 = vsub.f32 2.0, %v1645_v2 }
 0x3d8   :  { %v1656_v12 = vmul.f32 1.0614054, %v3380_v44  ;;  %v3393_v7 = vmul.f32 %v758_v23, %v750_v32  ;;  %v1646_v11 = vmul.f32 %v1642_v38, %v3355_v46  ;;  %v1643_v43 = vmul.f32 %v2024_v36, %v1639_v58 }
 0x3d9   :  { %v775_v59 = vadd.f32 1.4214138, %v771_v33  ;;  %v772_v48 = vmul.f32 %v768_v9, %v3373_v30  ;;  %v769_v18 = vadd.f32 -1.4531521, %v765_v35  ;;  %v3397_v45 = vmul.f32 %v1649_v13, %v1641_v15 }
 0x3da   :  { %v1660_v40 = vadd.f32 -1.4531521, %v1656_v12  ;;  %v766_v63 = vmul.f32 1.0614054, %v3393_v7  ;;  %v1650_v29 = vsub.f32 2.0, %v1646_v11  ;;  %v1693_v46 = vsub.f32 0.0, %v3327_v52 }
 0x3db   :  { %v779_v8 = vmul.f32 %v775_v59, %v3365_v57  ;;  %v776_v37 = vadd.f32 1.4214138, %v772_v48  ;;  %v773_v28 = vmul.f32 %v769_v18, %v3377_v39  ;;  %v1657_v32 = vmul.f32 1.0614054, %v3397_v45 }
 0x3dc   :  { %v1664_v14 = vmul.f32 %v1660_v40, %v3380_v44  ;;  %v770_v15 = vadd.f32 -1.4531521, %v766_v63  ;;  %v813_v12 = vmul.f32 1.442695, %v806_v34  ;;  %v1647_v42 = vmul.f32 %v1643_v43, %v3357_v49 }
 0x3dd   :  { %v783_v26 = vadd.f32 -0.28449672, %v779_v8  ;;  %v780_v10 = vmul.f32 %v776_v37, %v3373_v30  ;;  %v777_v56 = vadd.f32 1.4214138, %v773_v28  ;;  %v1661_v47 = vadd.f32 -1.4531521, %v1657_v32 }
 0x3de   :  { %v1668_v22 = vadd.f32 1.4214138, %v1664_v14  ;;  %v774_v2 = vmul.f32 %v770_v15, %v3393_v7  ;;  %v3413_v58 = vmul.f32 %v1650_v29, %v1642_v38  ;;  %v1694_v49 = vsub.f32 0.0, %v3346_v25 }
 0x3df   :  { %v787_v27 = vmul.f32 %v783_v26, %v3365_v57  ;;  %v784_v41 = vadd.f32 -0.28449672, %v780_v10  ;;  %v781_v33 = vmul.f32 %v777_v56, %v3377_v39  ;;  %v1665_v23 = vmul.f32 %v1661_v47, %v3397_v45 }
 0x3e0   :  { %v1672_v35 = vmul.f32 %v1668_v22, %v3380_v44  ;;  %v778_v13 = vadd.f32 1.4214138, %v774_v2  ;;  %v1651_v38 = vsub.f32 2.0, %v1647_v42  ;;  %2033 = vpow2.f32 %v813_v12 }
 0x3e1   :  { %v791_v9 = vadd.f32 0.2548296, %v787_v27  ;;  %v788_v59 = vmul.f32 %v784_v41, %v3373_v30  ;;  %v785_v36 = vadd.f32 -0.28449672, %v781_v33  ;;  %v1669_v34 = vadd.f32 1.4214138, %v1665_v23 }
 0x3e2   :  { %v1676_v18 = vadd.f32 -0.28449672, %v1672_v35  ;;  %v782_v11 = vmul.f32 %v778_v13, %v3393_v7  ;;  %v1658_v63 = vmul.f32 1.0614054, %v3413_v58  ;;  %v717_v32 = vmul.f32 0.5, %v3297_v51 }
 0x3e3   :  { %v795_v48 = vmul.f32 %v791_v9, %v3365_v57  ;;  %v792_v8 = vadd.f32 0.2548296, %v788_v59  ;;  %v789_v40 = vmul.f32 %v785_v36, %v3377_v39  ;;  %v1697_v57 = vmul.f32 %v1693_v46, %v3327_v52 }
 0x3e4   :  { %v1680_v28 = vmul.f32 %v1676_v18, %v3380_v44  ;;  %v786_v41 = vadd.f32 -0.28449672, %v782_v11  ;;  %v3429_v15 = vmul.f32 %v1651_v38, %v1643_v43  ;;  %v1698_v51 = vmul.f32 %v1694_v49, %v3346_v25 }
 0x3e5   :  { %v815_v37 = vmul.f32 %v2026_v61, %v795_v48  ;;  %v796_v26 = vmul.f32 %v792_v8, %v3373_v30  ;;  %v793_v14 = vadd.f32 0.2548296, %v789_v40  ;;  %v1673_v30 = vmul.f32 %v1669_v34, %v3397_v45 }
 0x3e6   :  { %v1684_v56 = vadd.f32 0.2548296, %v1680_v28  ;;  %v1702_v9 = vmul.f32 1.442695, %v1697_v57  ;;  %v1659_v25 = vmul.f32 1.0614054, %v3429_v15 }
 0x3e7   :  { %v819_v10 = vsub.f32 1.0, %v815_v37  ;;  %v816_v27 = vmul.f32 %v2028_v62, %v796_v26  ;;  %v797_v22 = vmul.f32 %v793_v14, %v3377_v39  ;;  %v790_v39 = vmul.f32 %v786_v41, %v3393_v7 }
 0x3e8   :  { %v1688_v52 = vmul.f32 %v1684_v56, %v3380_v44  ;;  %v1662_v44 = vadd.f32 -1.4531521, %v1658_v63  ;;  %v1677_v47 = vadd.f32 -0.28449672, %v1673_v30  ;;  %2035 = vpow2.f32 %v1702_v9 }
 0x3e9   :  { %v827_v61 = vsub.f32 0.0, %v819_v10  ;;  %v820_v33 = vsub.f32 1.0, %v816_v27  ;;  %v817_v29 = vmul.f32 %v2030_v16, %v797_v22  ;;  %v794_v48 = vadd.f32 0.2548296, %v790_v39 }
 0x3ea   :  { %v1708_v62 = vmul.f32 %v2032_v17, %v1688_v52  ;;  %v1666_v42 = vmul.f32 %v1662_v44, %v3413_v58  ;;  %v1681_v40 = vmul.f32 %v1677_v47, %v3397_v45  ;;  %v1704_v28 = vmul.f32 1.442695, %v1698_v51 }
 0x3eb   :  { %v831_v35 = vsel %vm823_vm0, %v827_v61, %v819_v10  ;;  %v828_v59 = vsub.f32 0.0, %v820_v33  ;;  %v821_v36 = vsub.f32 1.0, %v817_v29  ;;  %v798_v37 = vmul.f32 %v794_v48, %v3393_v7 }
 0x3ec   :  { %v835_v46 = vadd.f32 1.0, %v831_v35  ;;  %v1712_v12 = vsub.f32 1.0, %v1708_v62  ;;  %v1608_v57 = vmul.f32 0.5, %v3299_v6  ;;  %v1663_v34 = vadd.f32 -1.4531521, %v1659_v25 }
 0x3ed   :  { %v832_v5 = vsel %vm824_vm1, %v828_v59, %v820_v33  ;;  %v829_v17 = vsub.f32 0.0, %v821_v36  ;;  %v2034_v49 = vpop.eup %2033  ;;  %v1685_v7 = vadd.f32 0.2548296, %v1681_v40  ;;  %v1670_v56 = vadd.f32 1.4214138, %v1666_v42 }
 0x3ee   :  { %v3434_v16 = vmul.f32 %v835_v46, %v3363_v54  ;;  %v836_v43 = vadd.f32 1.0, %v832_v5  ;;  %v1720_v18 = vsub.f32 0.0, %v1712_v12  ;;  %v818_v38 = vmul.f32 %v2034_v49, %v798_v37 }
 0x3ef   :  { %v833_v0 = vsel %vm825_vm2, %v829_v17, %v821_v36  ;;  %v1667_v61 = vmul.f32 %v1663_v34, %v3429_v15  ;;  %v1689_v30 = vmul.f32 %v1685_v7, %v3397_v45  ;;  %v1674_v33 = vmul.f32 %v1670_v56, %v3413_v58 }
 0x3f0   :  { %v3440_v2 = vand.u32 2147483647, %v3434_v16  ;;  %v3445_v54 = vmul.f32 %v836_v43, %v3368_v4  ;;  %v837_v1 = vadd.f32 1.0, %v833_v0  ;;  %v1724_v8 = vsel %vm1716_vm3, %v1720_v18, %v1712_v12 }
 0x3f1   :  { %v1695_v4 = vsub.f32 0.0, %v3350_v31  ;;  %v1728_v14 = vadd.f32 1.0, %v1724_v8  ;;  %v3493_v29 = vmul.f32 0.5, %v3312_v24  ;;  %v1678_v46 = vadd.f32 -0.28449672, %v1674_v33 }
 0x3f2   :  { %v3449_v23 = vmax.f32 %v3440_v2, 1.0  ;;  %v3452_v3 = vadd.f32 1.0, %v3440_v2  ;;  %v3456_v13 = vand.u32 2147483647, %v3445_v54  ;;  %v3461_v26 = vmul.f32 %v837_v1, %v717_v32 }
 0x3f3   :  { %v3474_v27 = vmul.f32 %v1728_v14, %v1608_v57  ;;  %v1699_v22 = vmul.f32 %v1695_v4, %v3350_v31  ;;  %v718_v31 = vmul.f32 0.5, %v3310_v19  ;;  %v822_v32 = vsub.f32 1.0, %v818_v38 }
 0x3f4   :  { %2037 = vrcp.f32 %v3449_v23  ;;  %v3465_v10 = vmax.f32 %v3456_v13, 1.0  ;;  %v3468_v11 = vadd.f32 1.0, %v3456_v13  ;;  %v3471_v6 = vand.u32 2147483647, %v3461_v26 }
 0x3f5   :  { %2039 = vrcp.f32 %v3452_v3  ;;  %v3486_v41 = vand.u32 2147483647, %v3474_v27  ;;  %vm851_vm4 = vcmp.gt.f32.partialorder %v3440_v2, 0.41421357  ;;  %v1706_v35 = vmul.f32 1.442695, %v1699_v22  ;;  %v2036_v62 = vpop.eup %2035 }
 0x3f6   :  { %2041 = vpow2.f32 %v1704_v28  ;;  %v3479_v63 = vmax.f32 %v3471_v6, 1.0  ;;  %v3483_v52 = vadd.f32 1.0, %v3471_v6  ;;  %vm852_vm5 = vcmp.gt.f32.partialorder %v3456_v13, 0.41421357 }
 0x3f7   :  { %2043 = vrcp.f32 %v3465_v10  ;;  %v3498_v9 = vmax.f32 %v3486_v41, 1.0  ;;  %v3502_v45 = vadd.f32 1.0, %v3486_v41  ;;  %v830_v39 = vsub.f32 0.0, %v822_v32 }
 0x3f8   :  { %2045 = vrcp.f32 %v3468_v11  ;;  %v1671_v19 = vadd.f32 1.4214138, %v1667_v61  ;;  %v1709_v24 = vmul.f32 %v2036_v62, %v1689_v30  ;;  %vm847_vm7 = vcmp.gt.f32.partialorder %v3440_v2, 2.4142137 }
 0x3f9   :  { %2047 = vrcp.f32 %v3479_v63  ;;  %v3829_v59 = vmov 0.0   ;;  %v834_v44 = vsel %vm826_vm6, %v830_v39, %v822_v32  ;;  %vm848_vm8 = vcmp.gt.f32.partialorder %v3456_v13, 2.4142137 }
 0x3fa   :  { %2049 = vrcp.f32 %v3483_v52  ;;  %v939_v36 = vsel %vm851_vm4, 0.7853982, %v3829_v59  ;;  %v940_v12 = vsel %vm852_vm5, 0.7853982, %v3829_v59  ;;  %v838_v47 = vadd.f32 1.0, %v834_v44 }
 0x3fb   :  { %2051 = vrcp.f32 %v3498_v9  ;;  %v1713_v51 = vsub.f32 1.0, %v1709_v24  ;;  %v1675_v5 = vmul.f32 %v1671_v19, %v3429_v15  ;;  %v3521_v48 = vadd.f32 -1.0, %v3440_v2 }
 0x3fc   :  { %2053 = vrcp.f32 %v3502_v45  ;;  %v3525_v43 = vsel %vm847_vm7, 1.5707964, %v939_v36  ;;  %vm853_vm10 = vcmp.gt.f32.partialorder %v3471_v6, 0.41421357  ;;  %v3528_v18 = vmul.f32 %v838_v47, %v718_v31 }
 0x3fd   :  { %2055 = vpow2.f32 %v1706_v35  ;;  %v3532_v21 = vadd.f32 -1.0, %v3456_v13  ;;  %v3536_v25 = vsel %vm848_vm8, 1.5707964, %v940_v12  ;;  %vm1744_vm11 = vcmp.gt.f32.partialorder %v3486_v41, 0.41421357 }
 0x3fe   :  { %3830 = vst [vmem:[#allocation14_spill] sm:$0xff] %v3528_v18  ;;  %v3543_v40 = vand.u32 2147483647, %v3528_v18  ;;  %v1721_v37 = vsub.f32 0.0, %v1713_v51  ;;  %v1682_v28 = vmul.f32 %v1678_v46, %v3413_v58  ;;  %v3547_v14 = vadd.f32 -1.0, %v3471_v6 }
 0x3ff   :  { %v3552_v34 = vsel %vm853_vm10, 0.7853982, %v3829_v59  ;;  %v3555_v49 = vadd.f32 -1.0, %v3486_v41  ;;  %v3561_v22 = vsel %vm1744_vm11, 0.7853982, %v3829_v59  ;;  %vm991_vm14 = vcmp.lt.f32.partialorder %v3434_v16, 0.0 }
 0x400   :  { %v3563_v61 = vadd.f32 -0.28449672, %v1675_v5  ;;  %v3567_v31 = vmax.f32 %v3543_v40, 1.0  ;;  %v3570_v32 = vadd.f32 1.0, %v3543_v40  ;;  %v1725_v19 = vsel %vm1717_vm9, %v1721_v37, %v1713_v51 }
 0x401   :  { %v2038_v17 = vpop.eup %2037  ;;  %v1686_v24 = vadd.f32 0.2548296, %v1682_v28  ;;  %vm849_vm12 = vcmp.gt.f32.partialorder %v3471_v6, 2.4142137  ;;  %vm1740_vm13 = vcmp.gt.f32.partialorder %v3486_v41, 2.4142137 }
 0x402   :  { %v2040_v0 = vpop.eup %2039  ;;  %v863_v42 = vmul.f32 %v2038_v17, %v3449_v23  ;;  %2057 = vrcp.f32 %v3567_v31  ;;  %vm854_vm0 = vcmp.gt.f32.partialorder %v3543_v40, 0.41421357  ;;  %vm992_vm1 = vcmp.lt.f32.partialorder %v3445_v54, 0.0 }
 0x403   :  { %v3539_v1 = vpop.eup %2041  ;;  %v895_v8 = vmul.f32 %v2040_v0, %v3452_v3  ;;  %2059 = vrcp.f32 %v3570_v32  ;;  %vm850_vm2 = vcmp.gt.f32.partialorder %v3543_v40, 2.4142137  ;;  %vm1719_vm3 = vcmp.lt.f32.partialorder %v3341_v50, 0.0 }
 0x404   :  { %v2044_v57 = vpop.eup %2043  ;;  %v867_v4 = vsub.f32 2.0, %v863_v42 }
 0x405   :  { %v2046_v7 = vpop.eup %2045  ;;  %v899_v56 = vsub.f32 2.0, %v895_v8  ;;  %v864_v38 = vmul.f32 %v2044_v57, %v3465_v10  ;;  %v1729_v8 = vadd.f32 1.0, %v1725_v19 }
 0x406   :  { %v871_v30 = vmul.f32 %v2038_v17, %v867_v4  ;;  %v896_v33 = vmul.f32 %v2046_v7, %v3468_v11  ;;  %v2048_v35 = vpop.eup %2047 }
 0x407   :  { %v903_v62 = vmul.f32 %v2040_v0, %v899_v56  ;;  %v868_v39 = vsub.f32 2.0, %v864_v38  ;;  %v2050_v46 = vpop.eup %2049  ;;  %v865_v12 = vmul.f32 %v2048_v35, %v3479_v63 }
 0x408   :  { %v875_v36 = vmul.f32 %v871_v30, %v3449_v23  ;;  %v900_v44 = vsub.f32 2.0, %v896_v33  ;;  %v897_v17 = vmul.f32 %v2050_v46, %v3483_v52  ;;  %v2052_v0 = vpop.eup %2051 }
 0x409   :  { %v907_v47 = vmul.f32 %v903_v62, %v3452_v3  ;;  %v872_v5 = vmul.f32 %v2044_v57, %v868_v39  ;;  %v869_v51 = vsub.f32 2.0, %v865_v12  ;;  %v2054_v37 = vpop.eup %2053  ;;  %v1756_v56 = vmul.f32 %v2052_v0, %v3498_v9 }
 0x40a   :  { %v879_v42 = vsub.f32 2.0, %v875_v36  ;;  %v904_v53 = vmul.f32 %v2046_v7, %v900_v44  ;;  %v901_v4 = vsub.f32 2.0, %v897_v17  ;;  %v1788_v33 = vmul.f32 %v2054_v37, %v3502_v45  ;;  %v3584_v39 = vpop.eup %2055 }
 0x40b   :  { %v911_v28 = vsub.f32 2.0, %v907_v47  ;;  %v876_v23 = vmul.f32 %v872_v5, %v3465_v10  ;;  %v873_v57 = vmul.f32 %v2048_v35, %v869_v51  ;;  %v1760_v44 = vsub.f32 2.0, %v1756_v56 }
 0x40c   :  { %v883_v38 = vmul.f32 %v879_v42, %v871_v30  ;;  %v908_v3 = vmul.f32 %v904_v53, %v3468_v11  ;;  %v905_v7 = vmul.f32 %v2050_v46, %v901_v4  ;;  %v1792_v10 = vsub.f32 2.0, %v1788_v33 }
 0x40d   :  { %v915_v18 = vmul.f32 %v911_v28, %v903_v62  ;;  %v880_v36 = vsub.f32 2.0, %v876_v23  ;;  %v877_v47 = vmul.f32 %v873_v57, %v3479_v63  ;;  %v1764_v30 = vmul.f32 %v2052_v0, %v1760_v44 }
 0x40e   :  { %v919_v19 = vsub.f32 0.0, %v883_v38  ;;  %v912_v12 = vsub.f32 2.0, %v908_v3  ;;  %v909_v11 = vmul.f32 %v905_v7, %v3483_v52  ;;  %v1796_v51 = vmul.f32 %v2054_v37, %v1792_v10 }
 0x40f   :  { %v927_v17 = vmul.f32 %v3521_v48, %v915_v18  ;;  %v884_v55 = vmul.f32 %v880_v36, %v872_v5  ;;  %v881_v42 = vsub.f32 2.0, %v877_v47  ;;  %v3591_v62 = vmul.f32 %v1729_v8, %v3493_v29  ;;  %v2058_v23 = vpop.eup %2057 }
 0x410   :  { %v916_v35 = vmul.f32 %v912_v12, %v904_v53  ;;  %v913_v28 = vsub.f32 2.0, %v909_v11  ;;  %v1768_v48 = vmul.f32 %v1764_v30, %v3498_v9  ;;  %v1800_v29 = vmul.f32 %v1796_v51, %v3502_v45  ;;  %v2060_v3 = vpop.eup %2059 }
 0x411   :  { %v931_v46 = vsel %vm851_vm4, %v927_v17, %v3440_v2  ;;  %v920_v63 = vsub.f32 0.0, %v884_v55  ;;  %v885_v5 = vmul.f32 %v881_v42, %v873_v57  ;;  %v1683_v55 = vmul.f32 %v3563_v61, %v3429_v15 }
 0x412   :  { %v3599_v18 = vsel %vm847_vm7, %v919_v19, %v931_v46  ;;  %v928_v52 = vmul.f32 %v3532_v21, %v916_v35  ;;  %v917_v53 = vmul.f32 %v913_v28, %v905_v7  ;;  %v1772_v8 = vsub.f32 2.0, %v1768_v48 }
 0x413   :  { %v947_v0 = vmul.f32 %v3599_v18, %v3599_v18  ;;  %v921_v9 = vsub.f32 0.0, %v885_v5  ;;  %v1804_v37 = vsub.f32 2.0, %v1800_v29  ;;  %v1690_v21 = vmul.f32 %v1686_v24, %v3413_v58 }
 0x414   :  { %v932_v2 = vsel %vm852_vm5, %v928_v52, %v3456_v13  ;;  %v929_v56 = vmul.f32 %v3547_v14, %v917_v53  ;;  %v1776_v38 = vmul.f32 %v1772_v8, %v1764_v30  ;;  %v866_v33 = vmul.f32 %v2058_v23, %v3567_v31 }
 0x415   :  { %v951_v4 = vmul.f32 0.080537446, %v947_v0  ;;  %v3614_v45 = vsel %vm848_vm8, %v920_v63, %v932_v2  ;;  %v1808_v57 = vmul.f32 %v1804_v37, %v1796_v51  ;;  %v3621_v36 = vand.u32 2147483647, %v3591_v62 }
 0x416   :  { %v948_v61 = vmul.f32 %v3614_v45, %v3614_v45  ;;  %v933_v13 = vsel %vm853_vm10, %v929_v56, %v3471_v6  ;;  %v1812_v24 = vsub.f32 0.0, %v1776_v38  ;;  %v898_v7 = vmul.f32 %v2060_v3, %v3570_v32 }
 0x417   :  { %v1931_v58 = vadd.f32 -0.13877685, %v951_v4  ;;  %v3629_v44 = vsel %vm849_vm12, %v921_v9, %v933_v13  ;;  %v1820_v19 = vmul.f32 %v3555_v49, %v1808_v57  ;;  %v870_v12 = vsub.f32 2.0, %v866_v33 }
 0x418   :  { %v952_v14 = vmul.f32 0.080537446, %v948_v61  ;;  %v949_v10 = vmul.f32 %v3629_v44, %v3629_v44  ;;  %v902_v17 = vsub.f32 2.0, %v898_v7  ;;  %v1687_v11 = vadd.f32 0.2548296, %v1683_v55 }
 0x419   :  { %v959_v47 = vmul.f32 %v1931_v58, %v947_v0  ;;  %v1824_v35 = vsel %vm1744_vm11, %v1820_v19, %v3486_v41  ;;  %v874_v42 = vmul.f32 %v2058_v23, %v870_v12  ;;  %v3638_v51 = vmax.f32 %v3621_v36, 1.0 }
 0x41a   :  { %v1932_v30 = vadd.f32 -0.13877685, %v952_v14  ;;  %v953_v63 = vmul.f32 0.080537446, %v949_v10  ;;  %v3642_v49 = vsel %vm1740_vm13, %v1812_v24, %v1824_v35  ;;  %v906_v28 = vmul.f32 %v2060_v3, %v902_v17 }
 0x41b   :  { %v963_v46 = vadd.f32 0.19977711, %v959_v47  ;;  %v1840_v52 = vmul.f32 %v3642_v49, %v3642_v49  ;;  %v878_v5 = vmul.f32 %v874_v42, %v3567_v31  ;;  %2061 = vrcp.f32 %v3638_v51 }
 0x41c   :  { %v960_v48 = vmul.f32 %v1932_v30, %v948_v61  ;;  %v1933_v53 = vadd.f32 -0.13877685, %v953_v63  ;;  %v910_v8 = vmul.f32 %v906_v28, %v3570_v32  ;;  %v3650_v55 = vadd.f32 1.0, %v3621_v36 }
 0x41d   :  { %v967_v29 = vmul.f32 %v963_v46, %v947_v0  ;;  %v1844_v9 = vmul.f32 0.080537446, %v1840_v52  ;;  %v882_v37 = vsub.f32 2.0, %v878_v5  ;;  %v1710_v23 = vmul.f32 %v3539_v1, %v1690_v21 }
 0x41e   :  { %v964_v2 = vadd.f32 0.19977711, %v960_v48  ;;  %v961_v56 = vmul.f32 %v1933_v53, %v949_v10  ;;  %v914_v38 = vsub.f32 2.0, %v910_v8  ;;  %2063 = vrcp.f32 %v3650_v55 }
 0x41f   :  { %v1935_v4 = vadd.f32 -0.3333295, %v967_v29  ;;  %v1949_v3 = vadd.f32 -0.13877685, %v1844_v9  ;;  %v886_v57 = vmul.f32 %v882_v37, %v874_v42  ;;  %v1691_v32 = vmul.f32 %v1687_v11, %v3429_v15 }
 0x420   :  { %v968_v31 = vmul.f32 %v964_v2, %v948_v61  ;;  %v965_v58 = vadd.f32 0.19977711, %v961_v56  ;;  %v918_v13 = vmul.f32 %v914_v38, %v906_v28  ;;  %v1930_v24 = vadd.f32 -1.0, %v3543_v40 }
 0x421   :  { %v975_v33 = vmul.f32 %v1935_v4, %v947_v0  ;;  %v1852_v14 = vmul.f32 %v1949_v3, %v1840_v52  ;;  %v922_v1 = vsub.f32 0.0, %v886_v57  ;;  %v1714_v21 = vsub.f32 1.0, %v1710_v23 }
 0x422   :  { %v1936_v7 = vadd.f32 -0.3333295, %v968_v31  ;;  %v969_v12 = vmul.f32 %v965_v58, %v949_v10  ;;  %v930_v47 = vmul.f32 %v1930_v24, %v918_v13  ;;  %v1711_v0 = vmul.f32 %v3584_v39, %v1691_v32 }
 0x423   :  { %v979_v19 = vmul.f32 %v975_v33, %v3599_v18  ;;  %v1856_v30 = vadd.f32 0.19977711, %v1852_v14  ;;  %v1722_v15 = vsub.f32 0.0, %v1714_v21  ;;  %v945_v53 = vsel %vm849_vm12, 1.5707964, %v3552_v34 }
 0x424   :  { %v976_v17 = vmul.f32 %v1936_v7, %v948_v61  ;;  %v1937_v35 = vadd.f32 -0.3333295, %v969_v12  ;;  %v934_v42 = vsel %vm854_vm0, %v930_v47, %v3543_v40  ;;  %v1715_v2 = vsub.f32 1.0, %v1711_v0 }
 0x425   :  { %v983_v11 = vadd.f32 %v979_v19, %v3525_v43  ;;  %v1860_v63 = vmul.f32 %v1856_v30, %v1840_v52  ;;  %v3670_v61 = vsel %vm850_vm2, %v922_v1, %v934_v42  ;;  %v1726_v39 = vsel %vm1718_vm15, %v1722_v15, %v1714_v21 }
 0x426   :  { %v980_v46 = vmul.f32 %v976_v17, %v3614_v45  ;;  %v977_v28 = vmul.f32 %v1937_v35, %v949_v10  ;;  %v950_v48 = vmul.f32 %v3670_v61, %v3670_v61  ;;  %v1730_v5 = vadd.f32 1.0, %v1726_v39 }
 0x427   :  { %v987_v43 = vadd.f32 %v983_v11, %v3599_v18  ;;  %v1953_v8 = vadd.f32 -0.3333295, %v1860_v63  ;;  %v1723_v33 = vsub.f32 0.0, %v1715_v2  ;;  %vm993_vm4 = vcmp.lt.f32.partialorder %v3461_v26, 0.0 }
 0x428   :  { %v984_v29 = vadd.f32 %v980_v46, %v3536_v25  ;;  %v2062_v9 = vpop.eup %2061  ;;  %v981_v37 = vmul.f32 %v977_v28, %v3629_v44  ;;  %v954_v18 = vmul.f32 0.080537446, %v950_v48  ;;  %v3684_v10 = vmul.f32 %v1730_v5, %v3517_v20  ;;  %v3831_v46 = vld [vmem:[#allocation18_spill] sm:$0xff] }
 0x429   :  { %v995_v60 = vsub.f32 0.0, %v987_v43  ;;  %v1836_v25 = vsel %vm1740_vm13, 1.5707964, %v3561_v22  ;;  %v1868_v6 = vmul.f32 %v1953_v8, %v1840_v52  ;;  %v1757_v34 = vmul.f32 %v2062_v9, %v3638_v51 }
 0x42a   :  { %v988_v23 = vadd.f32 %v984_v29, %v3614_v45  ;;  %v985_v56 = vadd.f32 %v981_v37, %v945_v53  ;;  %v1934_v38 = vadd.f32 -0.13877685, %v954_v18  ;;  %v3694_v31 = vand.u32 2147483647, %v3684_v10 }
 0x42b   :  { %v999_v4 = vsel %vm991_vm14, %v995_v60, %v987_v43  ;;  %v2064_v3 = vpop.eup %2063  ;;  %v1872_v45 = vmul.f32 %v1868_v6, %v3642_v49  ;;  %v1761_v32 = vsub.f32 2.0, %v1757_v34  ;;  %v1727_v26 = vsel %vm1719_vm3, %v1723_v33, %v1715_v2  ;;  %v3832_v34 = vld [vmem:[#allocation14_spill] sm:$0xff] }
 0x42c   :  { %v1003_v20 = vmul.f32 0.15915494, %v999_v4  ;;  %v996_v57 = vsub.f32 0.0, %v988_v23  ;;  %v989_v41 = vadd.f32 %v985_v56, %v3629_v44  ;;  %v962_v22 = vmul.f32 %v1934_v38, %v950_v48 }
 0x42d   :  { %v1789_v52 = vmul.f32 %v2064_v3, %v3650_v55  ;;  %v1876_v58 = vadd.f32 %v1872_v45, %v1836_v25  ;;  %v1765_v13 = vmul.f32 %v2062_v9, %v1761_v32  ;;  %v1750_v19 = vmax.f32 %v3694_v31, 1.0 }
 0x42e   :  { %1007 = vst [vmem:[#allocation7] sm:$0xff] %v1003_v20  ;;  %v1000_v16 = vsel %vm992_vm1, %v996_v57, %v988_v23  ;;  %v997_v7 = vsub.f32 0.0, %v989_v41  ;;  %v966_v14 = vadd.f32 0.19977711, %v962_v22  ;;  %v1782_v12 = vadd.f32 1.0, %v3694_v31 }
 0x42f   :  { %v1004_v24 = vmul.f32 0.15915494, %v1000_v16  ;;  %v1793_v1 = vsub.f32 2.0, %v1789_v52  ;;  %v1880_v21 = vadd.f32 %v1876_v58, %v3642_v49  ;;  %v1769_v44 = vmul.f32 %v1765_v13, %v3638_v51 }
 0x430   :  { %v1001_v47 = vsel %vm993_vm4, %v997_v7, %v989_v41  ;;  %v970_v54 = vmul.f32 %v966_v14, %v950_v48  ;;  %2065 = vrcp.f32 %v1750_v19  ;;  %vm1884_vm5 = vcmp.lt.f32.partialorder %v3474_v27, 0.0 }
 0x431   :  { %1008 = vst [vmem:[#allocation7 + $0x8] sm:$0xff] %v1004_v24  ;;  %v1797_v17 = vmul.f32 %v2064_v3, %v1793_v1  ;;  %v1005_v30 = vmul.f32 0.15915494, %v1001_v47  ;;  %v1888_v15 = vsub.f32 0.0, %v1880_v21  ;;  %v1773_v0 = vsub.f32 2.0, %v1769_v44 }
 0x432   :  { %v1938_v49 = vadd.f32 -0.3333295, %v970_v54  ;;  %2067 = vrcp.f32 %v1782_v12  ;;  %v942_v35 = vsel %vm854_vm0, 0.7853982, %v3829_v59  ;;  %v1611_v50 = vmul.f32 0.5, %v3831_v46 }
 0x433   :  { %v1801_v51 = vmul.f32 %v1797_v17, %v3650_v55  ;;  %1009 = vst [vmem:[#allocation7 + $0x10] sm:$0xff] %v1005_v30  ;;  %v1892_v11 = vsel %vm1884_vm5, %v1888_v15, %v1880_v21  ;;  %v1777_v42 = vmul.f32 %v1773_v0, %v1765_v13  ;;  %v1731_v28 = vadd.f32 1.0, %v1727_v26 }
 0x434   :  { %v1896_v63 = vmul.f32 0.15915494, %v1892_v11  ;;  %v978_v39 = vmul.f32 %v1938_v49, %v950_v48  ;;  %v1946_v55 = vadd.f32 -1.0, %v3621_v36  ;;  %v946_v53 = vsel %vm850_vm2, 1.5707964, %v942_v35 }
 0x435   :  { %v1805_v43 = vsub.f32 2.0, %v1801_v51  ;;  %v3716_v29 = vmul.f32 %v1731_v28, %v1611_v50  ;;  %v1813_v8 = vsub.f32 0.0, %v1777_v42  ;;  %vm1745_vm6 = vcmp.gt.f32.partialorder %v3621_v36, 0.41421357 }
 0x436   :  { %1901 = vst [vmem:[#allocation7 + $0x20] sm:$0xff] %v1896_v63  ;;  %v982_v27 = vmul.f32 %v978_v39, %v3670_v61  ;;  %vm1741_vm7 = vcmp.gt.f32.partialorder %v3621_v36, 2.4142137  ;;  %vm994_vm8 = vcmp.lt.f32.partialorder %v3832_v34, 0.0  ;;  %v1833_v47 = vsel %vm1745_vm6, 0.7853982, %v3829_v59 }
 0x437   :  { %v1809_v5 = vmul.f32 %v1805_v43, %v1797_v17  ;;  %v3721_v60 = vand.u32 2147483647, %v3716_v29  ;;  %v1947_v26 = vadd.f32 -1.0, %v3694_v31  ;;  %vm1746_vm9 = vcmp.gt.f32.partialorder %v3694_v31, 0.41421357 }
 0x438   :  { %v986_v2 = vadd.f32 %v982_v27, %v946_v53  ;;  %vm1742_vm10 = vcmp.gt.f32.partialorder %v3694_v31, 2.4142137  ;;  %vm1885_vm11 = vcmp.lt.f32.partialorder %v3591_v62, 0.0  ;;  %vm1886_vm15 = vcmp.lt.f32.partialorder %v3684_v10, 0.0 }
 0x439   :  { %v1821_v9 = vmul.f32 %v1946_v55, %v1809_v5  ;;  %v1751_v18 = vmax.f32 %v3721_v60, 1.0  ;;  %v1783_v23 = vadd.f32 1.0, %v3721_v60  ;;  %v1948_v34 = vadd.f32 -1.0, %v3721_v60 }
 0x43a   :  { %v990_v48 = vadd.f32 %v986_v2, %v3670_v61  ;;  %vm1747_vm12 = vcmp.gt.f32.partialorder %v3721_v60, 0.41421357  ;;  %vm1743_vm13 = vcmp.gt.f32.partialorder %v3721_v60, 2.4142137  ;;  %vm1887_vm14 = vcmp.lt.f32.partialorder %v3716_v29, 0.0 }
 0x43b   :  { %v1825_v37 = vsel %vm1745_vm6, %v1821_v9, %v3621_v36  ;;  %2069 = vrcp.f32 %v1751_v18 }
 0x43c   :  { %v1829_v40 = vsel %vm1741_vm7, %v1813_v8, %v1825_v37  ;;  %v998_v25 = vsub.f32 0.0, %v990_v48  ;;  %2071 = vrcp.f32 %v1783_v23 }
 0x43d   :  { %v1841_v6 = vmul.f32 %v1829_v40, %v1829_v40  ;;  %v2066_v4 = vpop.eup %2065 }
 0x43e   :  { %v1002_v61 = vsel %vm994_vm8, %v998_v25, %v990_v48  ;;  %v1758_v20 = vmul.f32 %v2066_v4, %v1750_v19 }
 0x43f   :  { %v1845_v56 = vmul.f32 0.080537446, %v1841_v6  ;;  %v2068_v38 = vpop.eup %2067  ;;  %v1006_v3 = vmul.f32 0.15915494, %v1002_v61 }
 0x440   :  { %v1790_v45 = vmul.f32 %v2068_v38, %v1782_v12  ;;  %v1762_v32 = vsub.f32 2.0, %v1758_v20 }
 0x441   :  { %v1950_v57 = vadd.f32 -0.13877685, %v1845_v56  ;;  %1010 = vst [vmem:[#allocation7 + $0x18] sm:$0xff] %v1006_v3  ;;  %v1834_v3 = vsel %vm1746_vm9, 0.7853982, %v3829_v59 }
 0x442   :  { %v1794_v22 = vsub.f32 2.0, %v1790_v45  ;;  %v1766_v52 = vmul.f32 %v2066_v4, %v1762_v32 }
 0x443   :  { %v1853_v41 = vmul.f32 %v1950_v57, %v1841_v6 }
 0x444   :  { %v1798_v16 = vmul.f32 %v2068_v38, %v1794_v22  ;;  %v1770_v58 = vmul.f32 %v1766_v52, %v1750_v19 }
 0x445   :  { %v1857_v33 = vadd.f32 0.19977711, %v1853_v41  ;;  %v1838_v41 = vsel %vm1742_vm10, 1.5707964, %v1834_v3 }
 0x446   :  { %v1802_v24 = vmul.f32 %v1798_v16, %v1782_v12  ;;  %v1774_v7 = vsub.f32 2.0, %v1770_v58  ;;  %v1837_v12 = vsel %vm1741_vm7, 1.5707964, %v1833_v47 }
 0x447   :  { %v1861_v13 = vmul.f32 %v1857_v33, %v1841_v6 }
 0x448   :  { %v1806_v1 = vsub.f32 2.0, %v1802_v24  ;;  %v1778_v21 = vmul.f32 %v1774_v7, %v1766_v52  ;;  %v2070_v44 = vpop.eup %2069 }
 0x449   :  { %v1954_v14 = vadd.f32 -0.3333295, %v1861_v13  ;;  %v2072_v30 = vpop.eup %2071  ;;  %v1759_v0 = vmul.f32 %v2070_v44, %v1751_v18 }
 0x44a   :  { %v1810_v17 = vmul.f32 %v1806_v1, %v1798_v16  ;;  %v1814_v15 = vsub.f32 0.0, %v1778_v21  ;;  %v1791_v51 = vmul.f32 %v2072_v30, %v1783_v23  ;;  %v1835_v1 = vsel %vm1747_vm12, 0.7853982, %v3829_v59 }
 0x44b   :  { %v1869_v54 = vmul.f32 %v1954_v14, %v1841_v6  ;;  %v1763_v11 = vsub.f32 2.0, %v1759_v0 }
 0x44c   :  { %v1822_v19 = vmul.f32 %v1947_v26, %v1810_v17  ;;  %v1795_v46 = vsub.f32 2.0, %v1791_v51 }
 0x44d   :  { %v1873_v49 = vmul.f32 %v1869_v54, %v1829_v40  ;;  %v1767_v63 = vmul.f32 %v2070_v44, %v1763_v11 }
 0x44e   :  { %v1826_v42 = vsel %vm1746_vm9, %v1822_v19, %v3694_v31  ;;  %v1799_v28 = vmul.f32 %v2072_v30, %v1795_v46  ;;  %v1839_v31 = vsel %vm1743_vm13, 1.5707964, %v1835_v1 }
 0x44f   :  { %v1877_v35 = vadd.f32 %v1873_v49, %v1837_v12  ;;  %v1830_v50 = vsel %vm1742_vm10, %v1814_v15, %v1826_v42  ;;  %v1771_v36 = vmul.f32 %v1767_v63, %v1751_v18 }
 0x450   :  { %v1842_v43 = vmul.f32 %v1830_v50, %v1830_v50  ;;  %v1803_v55 = vmul.f32 %v1799_v28, %v1783_v23 }
 0x451   :  { %v1881_v39 = vadd.f32 %v1877_v35, %v1829_v40  ;;  %v1775_v53 = vsub.f32 2.0, %v1771_v36 }
 0x452   :  { %v1846_v5 = vmul.f32 0.080537446, %v1842_v43  ;;  %v1807_v9 = vsub.f32 2.0, %v1803_v55 }
 0x453   :  { %v1889_v27 = vsub.f32 0.0, %v1881_v39  ;;  %v1779_v37 = vmul.f32 %v1775_v53, %v1767_v63 }
 0x454   :  { %v1951_v2 = vadd.f32 -0.13877685, %v1846_v5  ;;  %v1811_v6 = vmul.f32 %v1807_v9, %v1799_v28 }
 0x455   :  { %v1893_v8 = vsel %vm1885_vm11, %v1889_v27, %v1881_v39  ;;  %v1815_v40 = vsub.f32 0.0, %v1779_v37 }
 0x456   :  { %v1897_v48 = vmul.f32 0.15915494, %v1893_v8  ;;  %v1854_v25 = vmul.f32 %v1951_v2, %v1842_v43  ;;  %v1823_v61 = vmul.f32 %v1948_v34, %v1811_v6 }
 0x458   :  { %1902 = vst [vmem:[#allocation7 + $0x28] sm:$0xff] %v1897_v48  ;;  %v1858_v4 = vadd.f32 0.19977711, %v1854_v25  ;;  %v1827_v62 = vsel %vm1747_vm12, %v1823_v61, %v3721_v60 }
 0x459   :  { %v1831_v23 = vsel %vm1743_vm13, %v1815_v40, %v1827_v62 }
 0x45a   :  { %v1862_v18 = vmul.f32 %v1858_v4, %v1842_v43  ;;  %v1843_v38 = vmul.f32 %v1831_v23, %v1831_v23 }
 0x45c   :  { %v1955_v56 = vadd.f32 -0.3333295, %v1862_v18  ;;  %v1847_v57 = vmul.f32 0.080537446, %v1843_v38 }
 0x45e   :  { %v1870_v20 = vmul.f32 %v1955_v56, %v1842_v43  ;;  %v1952_v32 = vadd.f32 -0.13877685, %v1847_v57 }
 0x460   :  { %v1874_v45 = vmul.f32 %v1870_v20, %v1830_v50  ;;  %v1855_v52 = vmul.f32 %v1952_v32, %v1843_v38 }
 0x462   :  { %v1878_v22 = vadd.f32 %v1874_v45, %v1838_v41  ;;  %v1859_v16 = vadd.f32 0.19977711, %v1855_v52 }
 0x464   :  { %v1882_v33 = vadd.f32 %v1878_v22, %v1830_v50  ;;  %v1863_v13 = vmul.f32 %v1859_v16, %v1843_v38 }
 0x466   :  { %v1890_v58 = vsub.f32 0.0, %v1882_v33  ;;  %v1956_v7 = vadd.f32 -0.3333295, %v1863_v13 }
 0x468   :  { %v1894_v24 = vsel %vm1886_vm15, %v1890_v58, %v1882_v33  ;;  %v1871_v21 = vmul.f32 %v1956_v7, %v1843_v38 }
 0x469   :  { %v1898_v14 = vmul.f32 0.15915494, %v1894_v24 }
 0x46a   :  { %v1875_v44 = vmul.f32 %v1871_v21, %v1831_v23 }
 0x46b   :  { %1903 = vst [vmem:[#allocation7 + $0x30] sm:$0xff] %v1898_v14 }
 0x46c   :  { %v1879_v47 = vadd.f32 %v1875_v44, %v1839_v31 }
 0x46e   :  { %v1883_v54 = vadd.f32 %v1879_v47, %v1831_v23 }
 0x470   :  { %v1891_v17 = vsub.f32 0.0, %v1883_v54 }
 0x472   :  { %v1895_v10 = vsel %vm1887_vm14, %v1891_v17, %v1883_v54 }
 0x473   :  { %v1899_v26 = vmul.f32 0.15915494, %v1895_v10 }
 0x475   :  { %1904 = vst [vmem:[#allocation7 + $0x38] sm:$0xff] %v1899_v26 }
 0x476   :  { %2124 = shalt.err (!%p2121_p0)
}
 0x477   :  { %1916 = dma.vmem_to_hbm [thread:$0]  %s1911_s30, 1024, %s3779_s5, [#allocation4], %s2143_s28, %s2143_s28, %s2144_s29  }
 0x478   :  { %2137 = dma.done.wait [#allocation4], 1024  }
 0x479   :  { %2138 = vsyncadd [#allocation4], 4294966272 }
 0x47a   :  { %1920 = vsyncpa [#allocation3], 1 }
 0x47b   :  { %1921 = vsyncpa [#allocation6], 1 }
 0x47c   :  { %1922 = vsyncpa [#allocation4], 1 }

</bundles_post_ra>
